<compile_context>
chip_gen: v7x
topology: tpu7x:2x2x1
jax: 0.10.0
libtpu: 0.0.40
codegen_flags: <defaults>
</compile_context>

<pallas_src>
import math
import numpy as np

import jax
import jax.numpy as jnp
from jax import lax
from jax.experimental import pallas as pl
from jax.experimental.pallas import tpu as pltpu

# ----------------------------- configuration -------------------------------
# FFTransformerCouplingLayer(channels=4, hidden_channels=32, kernel_size=3,
#                            n_layers=2, n_heads=2, p_dropout=0,
#                            filter_channels=64, mean_only=False,
#                            gin_channels=0)   -> g=None, reverse=False path.
B = 2
T = 16
CHANNELS = 4
HALF = CHANNELS // 2
HIDDEN = 32
FILTER = 64
KSIZE = 3
N_LAYERS = 2
N_HEADS = 2
HEAD_DIM = HIDDEN // N_HEADS
ATTN_SCALE = 1.0 / math.sqrt(HEAD_DIM)
LN_EPS = 1e-5

_T_POW2 = (T & (T - 1)) == 0
_LOG2_T = int(round(math.log2(T))) if _T_POW2 else 0


# ------------------------------ kernel helpers ------------------------------
def _dense(x, w, b):
    """(rows, Cin) @ (Cin, Cout) + (1, Cout)  (== PyTorch 1x1 Conv1d, chan-last)."""
    return jnp.dot(x, w, preferred_element_type=jnp.float32) + b


def _layer_norm(x, gamma, beta):
    """LayerNorm over the channel (last) dim, like attentions.LayerNorm."""
    mu = jnp.mean(x, axis=-1, keepdims=True)
    var = jnp.mean(jnp.square(x - mu), axis=-1, keepdims=True)
    return (x - mu) * lax.rsqrt(var + LN_EPS) * gamma + beta


def _div_t(v):   # v // T  (row index -> batch-block id)
    return jnp.right_shift(v, _LOG2_T) if _T_POW2 else v // T


def _mod_t(v):   # v % T   (row index -> position within its batch block)
    return jnp.bitwise_and(v, T - 1) if _T_POW2 else v % T


# --------------------------------- kernel -----------------------------------
def coupling_fwd_kernel(x0_ref, x1_ref, mask_ref,
                        w_pre_ref, b_pre_ref,
                        wqkv_ref, bqkv_ref, wo_ref, bo_ref, g0_ref, be0_ref,
                        w1_ref, c1_ref, w2_ref, c2_ref, g1_ref, be1_ref,
                        w_post_ref, b_post_ref,
                        out_ref):
    rows = x0_ref.shape[0]        # T (batched grid) or B*T (folded batch)

    x0 = x0_ref[...]              # (rows, HALF)
    x1 = x1_ref[...]              # (rows, HALF)
    mask = mask_ref[...]          # (rows, 1)

    # Additive attention bias built in registers: causal within each length-T
    # block, -1e4 across blocks / future positions (block-diag when the batch
    # is folded into rows; plain causal when rows == T).
    r = lax.broadcasted_iota(jnp.int32, (rows, rows), 0)
    c = lax.broadcasted_iota(jnp.int32, (rows, rows), 1)
    keep = (r >= c) & (_div_t(r) == _div_t(c))
    bias = jnp.where(keep, 0.0, -1e4).astype(jnp.float32)

    # Per-tap validity masks for the causal convs (hoisted out of the loop).
    rid = lax.broadcasted_iota(jnp.int32, (rows, 1), 0)
    pos = _mod_t(rid)
    tap_valid = [pos >= (KSIZE - 1 - tap) for tap in range(KSIZE)]

    def unfold_causal(z):
        # (rows, C) -> (rows, K*C): column block `tap` holds z[t-(K-1-tap)],
        # zero-filled for the first K-1 rows of every length-T block.  The
        # shift rides the XLU (pltpu.roll); no VMEM scratch round-trip.
        cols = []
        for tap in range(KSIZE):
            s = KSIZE - 1 - tap
            if s == 0:
                cols.append(z)
            else:
                zr = pltpu.roll(z, s, 0)           # zr[t] = z[(t - s) mod rows]
                cols.append(jnp.where(tap_valid[tap], zr, 0.0))
        return jnp.concatenate(cols, axis=-1)

    # pre: 1x1 conv over channels
    h = _dense(x0, w_pre_ref[...], b_pre_ref[...]) * mask

    # ------------- FFT encoder (attentions.FFT, isflow=True, g=None) --------
    # NOTE: attention mask is causal-only (commons.subsequent_mask) and the
    # LayerNorm residuals are not re-masked -- both match the PyTorch module.
    xe = h * mask
    for i in range(N_LAYERS):
        # --- causal multi-head self-attention, fused QKV + fused out-proj ---
        qkv = _dense(xe, wqkv_ref[i], bqkv_ref[i])       # (rows, 3*HIDDEN)
        o_heads = []
        for hh in range(N_HEADS):
            q_h = qkv[:, hh * HEAD_DIM:(hh + 1) * HEAD_DIM]
            k_h = qkv[:, HIDDEN + hh * HEAD_DIM:HIDDEN + (hh + 1) * HEAD_DIM]
            v_h = qkv[:, 2 * HIDDEN + hh * HEAD_DIM:
                      2 * HIDDEN + (hh + 1) * HEAD_DIM]
            s = jnp.einsum('qd,kd->qk', q_h, k_h,
                           preferred_element_type=jnp.float32) + bias
            s = s - jnp.max(s, axis=-1, keepdims=True)
            e = jnp.exp(s)
            p = e * pl.reciprocal(jnp.sum(e, axis=-1, keepdims=True),
                                  approx=True)
            o_heads.append(jnp.dot(p, v_h, preferred_element_type=jnp.float32))
        o = jnp.concatenate(o_heads, axis=-1)            # (rows, HIDDEN)
        y = _dense(o, wo_ref[i], bo_ref[i])              # single out-proj matmul
        xe = _layer_norm(xe + y, g0_ref[i], be0_ref[i])

        # --- causal FFN: each conv is ONE unfolded (rows,K*Cin)@(K*Cin,Cout) ---
        zu = unfold_causal(xe * mask)
        z1 = jnp.maximum(_dense(zu, w1_ref[i], c1_ref[i]), 0.0) * mask
        z2 = _dense(unfold_causal(z1), w2_ref[i], c2_ref[i]) * mask
        xe = _layer_norm(xe + z2, g1_ref[i], be1_ref[i])

    h = xe * mask + h

    # post: 1x1 conv -> (m, logs), affine coupling (reverse=False).  Single
    # lane-contiguous output slab [x1n | logs] -> one store / output DMA.
    stats = _dense(h, w_post_ref[...], b_post_ref[...]) * mask
    m = stats[:, :HALF]
    logs = stats[:, HALF:]
    x1n = m + x1 * jnp.exp(logs) * mask
    out_ref[...] = jnp.concatenate([x1n, logs], axis=-1)


# ------------------------- parameter handling --------------------------------
def init_params(key):
    """Parameters in the PyTorch Conv1d layout: weight (out, in, k), bias (out,)."""
    keys = jax.random.split(key, 16 + 12 * N_LAYERS)
    kit = iter(keys)

    def rnd(shape, scale=0.2):
        return (scale * jax.random.normal(next(kit), shape)).astype(jnp.float32)

    P = {
        'pre_w': rnd((HIDDEN, HALF, 1)),
        'pre_b': rnd((HIDDEN,)),
        # NOTE(synk): the PyTorch module zero-inits `post` (identity flow at
        # init). We use small non-zero values so the coupling hot path is
        # exercised and numerically checkable against the reference.
        'post_w': rnd((CHANNELS, HIDDEN, 1), scale=0.05),
        'post_b': rnd((CHANNELS,), scale=0.05),
    }
    for name in ('q_w', 'q_b', 'k_w', 'k_b', 'v_w', 'v_b', 'o_w', 'o_b',
                 'g0', 'be0', 'f1_w', 'f1_b', 'f2_w', 'f2_b', 'g1', 'be1'):
        P[name] = []
    for _ in range(N_LAYERS):
        qw, qb = rnd((HIDDEN, HIDDEN, 1)), rnd((HIDDEN,))
        P['q_w'].append(qw)
        P['q_b'].append(qb)
        # proximal_init=True: conv_k starts as a copy of conv_q
        P['k_w'].append(qw)
        P['k_b'].append(qb)
        P['v_w'].append(rnd((HIDDEN, HIDDEN, 1)))
        P['v_b'].append(rnd((HIDDEN,)))
        P['o_w'].append(rnd((HIDDEN, HIDDEN, 1)))
        P['o_b'].append(rnd((HIDDEN,)))
        P['g0'].append(jnp.ones((HIDDEN,), jnp.float32))
        P['be0'].append(jnp.zeros((HIDDEN,), jnp.float32))
        P['f1_w'].append(rnd((FILTER, HIDDEN, KSIZE)))
        P['f1_b'].append(rnd((FILTER,)))
        P['f2_w'].append(rnd((HIDDEN, FILTER, KSIZE)))
        P['f2_b'].append(rnd((HIDDEN,)))
        P['g1'].append(jnp.ones((HIDDEN,), jnp.float32))
        P['be1'].append(jnp.zeros((HIDDEN,), jnp.float32))
    return P


def _to_kernel_params(P):
    """Convert torch-layout params to the fused, channels-last kernel layout."""
    def oc_to_io(w):        # (out, in, 1) -> (in, out)
        return jnp.transpose(w[:, :, 0], (1, 0))

    def conv_to_fused(w):   # (out, in, k) -> (k*in, out), tap-major rows
        k, cin, cout = w.shape[2], w.shape[1], w.shape[0]
        return jnp.transpose(w, (2, 1, 0)).reshape(k * cin, cout)

    def stack_b(bs):
        return jnp.stack([b[None, :] for b in bs])

    wqkv, bqkv, wo, bo = [], [], [], []
    for i in range(N_LAYERS):
        wq = oc_to_io(P['q_w'][i]) * ATTN_SCALE      # fold attention scale
        wk = oc_to_io(P['k_w'][i])
        wv = oc_to_io(P['v_w'][i])
        bq = P['q_b'][i] * ATTN_SCALE
        bk = P['k_b'][i]
        bv = P['v_b'][i]
        # fused columns: [q (all heads) | k (all heads) | v (all heads)]
        wqkv.append(jnp.concatenate([wq, wk, wv], axis=1))     # (HIDDEN, 3*HIDDEN)
        bqkv.append(jnp.concatenate([bq, bk, bv])[None, :])    # (1, 3*HIDDEN)
        wo.append(oc_to_io(P['o_w'][i]))                       # (HIDDEN, HIDDEN)
        bo.append(P['o_b'][i][None, :])

    return [
        oc_to_io(P['pre_w']), P['pre_b'][None, :],
        jnp.stack(wqkv), jnp.stack(bqkv),
        jnp.stack(wo), jnp.stack(bo),
        stack_b(P['g0']), stack_b(P['be0']),
        jnp.stack([conv_to_fused(w) for w in P['f1_w']]), stack_b(P['f1_b']),
        jnp.stack([conv_to_fused(w) for w in P['f2_w']]), stack_b(P['f2_b']),
        stack_b(P['g1']), stack_b(P['be1']),
        oc_to_io(P['post_w']), P['post_b'][None, :],
    ]


# ------------------------------ wrapper --------------------------------------
def _multi_tc_device() -> bool:
    """True when the batch should stay a parallel grid axis (multiple
    TensorCores per addressable device: v7x, v4/v5p megacore)."""
    try:
        kind = jax.devices()[0].device_kind.lower()
    except Exception:
        return False
    return any(tag in kind for tag in ("v4", "v5p", "v7", "7x"))


def fft_transformer_coupling_forward(x_nct, x_mask_n1t, params, reverse=False):
    """Forward (reverse=False): returns (x, logdet) exactly like the module."""
    if reverse:
        # TODO(synk): reverse=True branch ((x1 - m) * exp(-logs) * mask) not wired.
        raise NotImplementedError("reverse=True path is not implemented")

    b, _, t = x_nct.shape
    x_btc = jnp.transpose(x_nct, (0, 2, 1)).astype(jnp.float32)      # (B, T, C)
    mask_bt1 = jnp.transpose(x_mask_n1t, (0, 2, 1)).astype(jnp.float32)
    x0 = x_btc[:, :, :HALF]
    x1 = x_btc[:, :, HALF:]

    kparams = _to_kernel_params(params)

    def full_spec(shape):
        nd = len(shape)
        return pl.BlockSpec(tuple(shape), lambda i: (0,) * nd)

    folded = not _multi_tc_device()
    if folded:
        # Single TensorCore (v5e/v6e/...): fold batch into the row (sublane)
        # axis, grid=(1,) -> no per-batch grid-step overhead, 2x matmul rows.
        data = [x0.reshape(b * t, HALF), x1.reshape(b * t, HALF),
                mask_bt1.reshape(b * t, 1)]
        data_specs = [full_spec(a.shape) for a in data]
        out_spec = full_spec((b * t, CHANNELS))
        out_shape = jax.ShapeDtypeStruct((b * t, CHANNELS), jnp.float32)
        grid = (1,)
        semantics = ("arbitrary",)
    else:
        # Multi-TC devices (v7x / megacore): one batch element per grid step,
        # sharded across cores via the parallel batch axis.
        def batch_spec(tail):
            nt = len(tail)
            return pl.BlockSpec((None,) + tuple(tail),
                                lambda i: (i,) + (0,) * nt)
        data = [x0, x1, mask_bt1]
        data_specs = [batch_spec((t, HALF)), batch_spec((t, HALF)),
                      batch_spec((t, 1))]
        out_spec = batch_spec((t, CHANNELS))
        out_shape = jax.ShapeDtypeStruct((b, t, CHANNELS), jnp.float32)
        grid = (b,)
        semantics = ("parallel",)

    out = pl.pallas_call(
        coupling_fwd_kernel,
        out_shape=out_shape,
        grid_spec=pltpu.PrefetchScalarGridSpec(
            num_scalar_prefetch=0,
            grid=grid,
            in_specs=data_specs + [full_spec(p.shape) for p in kparams],
            out_specs=out_spec),
        compiler_params=pltpu.CompilerParams(
            dimension_semantics=semantics),
    )(*data, *kparams)

    if folded:
        out = out.reshape(b, t, CHANNELS)
    x1n = out[..., :HALF]
    logs = out[..., HALF:]
    x_out_btc = jnp.concatenate([x0, x1n], axis=-1)
    logdet = jnp.sum(logs, axis=(1, 2))
    return jnp.transpose(x_out_btc, (0, 2, 1)), logdet


# ----------------------- pure-JAX reference (NCL layout) ---------------------
def reference_forward(x, x_mask, P):
    def conv1x1(w, b, z):
        return jnp.einsum('oi,bit->bot', w[:, :, 0], z) + b[None, :, None]

    def causal_conv(w, b, z):
        k = w.shape[2]
        zp = jnp.pad(z, ((0, 0), (0, 0), (k - 1, 0)))
        out = sum(jnp.einsum('oi,bit->bot', w[:, :, tap],
                             zp[:, :, tap:tap + z.shape[2]]) for tap in range(k))
        return out + b[None, :, None]

    def layer_norm_c(z, gamma, beta):
        mu = jnp.mean(z, axis=1, keepdims=True)
        var = jnp.mean(jnp.square(z - mu), axis=1, keepdims=True)
        return ((z - mu) / jnp.sqrt(var + LN_EPS)) * gamma[None, :, None] \
            + beta[None, :, None]

    x0, x1 = x[:, :HALF], x[:, HALF:]
    h = conv1x1(P['pre_w'], P['pre_b'], x0) * x_mask
    xe = h * x_mask
    tlen = x.shape[2]
    causal = jnp.tril(jnp.ones((tlen, tlen), jnp.float32))
    for i in range(N_LAYERS):
        q = conv1x1(P['q_w'][i], P['q_b'][i], xe)
        k = conv1x1(P['k_w'][i], P['k_b'][i], xe)
        v = conv1x1(P['v_w'][i], P['v_b'][i], xe)
        qh = q.reshape(B, N_HEADS, HEAD_DIM, tlen)
        kh = k.reshape(B, N_HEADS, HEAD_DIM, tlen)
        vh = v.reshape(B, N_HEADS, HEAD_DIM, tlen)
        s = jnp.einsum('bndq,bndk->bnqk', qh, kh) * ATTN_SCALE
        s = jnp.where(causal[None, None] > 0, s, -1e4)
        p = jax.nn.softmax(s, axis=-1)
        o = jnp.einsum('bnqk,bndk->bndq', p, vh).reshape(B, HIDDEN, tlen)
        y = conv1x1(P['o_w'][i], P['o_b'][i], o)
        xe = layer_norm_c(xe + y, P['g0'][i], P['be0'][i])
        z = causal_conv(P['f1_w'][i], P['f1_b'][i], xe * x_mask)
        z = jnp.maximum(z, 0.0)
        z = causal_conv(P['f2_w'][i], P['f2_b'][i], z * x_mask) * x_mask
        xe = layer_norm_c(xe + z, P['g1'][i], P['be1'][i])
    h_enc = xe * x_mask
    hh = h_enc + h
    stats = conv1x1(P['post_w'], P['post_b'], hh) * x_mask
    m, logs = stats[:, :HALF], stats[:, HALF:]
    x1n = m + x1 * jnp.exp(logs) * x_mask
    xout = jnp.concatenate([x0, x1n], axis=1)
    logdet = jnp.sum(logs, axis=(1, 2))
    return xout, logdet


# --------------------------------- main --------------------------------------
if __name__ == "__main__":
    key = jax.random.PRNGKey(0)
    kx, kp = jax.random.split(key)
    P = init_params(kp)

    x = jax.random.normal(kx, (B, CHANNELS, T), jnp.float32)      # NCL like torch
    lengths = jnp.array([T, T - 4], dtype=jnp.int32)
    x_mask = (jnp.arange(T)[None, :] < lengths[:, None]) \
        .astype(jnp.float32)[:, None, :]                          # (B, 1, T)

    xout, logdet = fft_transformer_coupling_forward(x, x_mask, P)
    xout = jax.block_until_ready(xout)
    logdet = jax.block_until_ready(logdet)

    ref_x, ref_ld = reference_forward(x, x_mask, P)
    # Tolerance is looser than pure-f32 because the kernel uses the EUP
    # approximate reciprocal for the softmax normalization; structural errors
    # (wrong layouts/masking/shifts) would be O(0.1-1) and still be caught.
    np.testing.assert_allclose(np.asarray(xout), np.asarray(ref_x),
                               rtol=2e-2, atol=2e-2)
    np.testing.assert_allclose(np.asarray(logdet), np.asarray(ref_ld),
                               rtol=2e-2, atol=2e-2)
    print("KERNEL_OK")
</pallas_src>

<mosaic_0001>
module attributes {stable_mosaic.version = 11 : i64} {
  func.func @coupling_fwd_kernel(%arg0: i32, %arg1: memref<32x2xf32, #tpu.memory_space<vmem>>, %arg2: memref<32x2xf32, #tpu.memory_space<vmem>>, %arg3: memref<32x1xf32, #tpu.memory_space<vmem>>, %arg4: memref<2x32xf32, #tpu.memory_space<vmem>>, %arg5: memref<1x32xf32, #tpu.memory_space<vmem>>, %arg6: memref<2x32x96xf32, #tpu.memory_space<vmem>>, %arg7: memref<2x1x96xf32, #tpu.memory_space<vmem>>, %arg8: memref<2x32x32xf32, #tpu.memory_space<vmem>>, %arg9: memref<2x1x32xf32, #tpu.memory_space<vmem>>, %arg10: memref<2x1x32xf32, #tpu.memory_space<vmem>>, %arg11: memref<2x1x32xf32, #tpu.memory_space<vmem>>, %arg12: memref<2x96x64xf32, #tpu.memory_space<vmem>>, %arg13: memref<2x1x64xf32, #tpu.memory_space<vmem>>, %arg14: memref<2x192x32xf32, #tpu.memory_space<vmem>>, %arg15: memref<2x1x32xf32, #tpu.memory_space<vmem>>, %arg16: memref<2x1x32xf32, #tpu.memory_space<vmem>>, %arg17: memref<2x1x32xf32, #tpu.memory_space<vmem>>, %arg18: memref<32x4xf32, #tpu.memory_space<vmem>>, %arg19: memref<1x4xf32, #tpu.memory_space<vmem>>, %arg20: memref<32x4xf32, #tpu.memory_space<vmem>>) attributes {dimension_semantics = [#tpu.dimension_semantics<arbitrary>], iteration_bounds = array<i64: 1>, scalar_prefetch = 0 : i64, scratch_operands = 0 : i64, tpu.core_type = #tpu.core_type<tc>, window_params = [{pipeline_mode = #tpu.pipeline_mode<synchronous>, transform_indices = @transform_0, window_bounds = array<i64: 32, 2>}, {pipeline_mode = #tpu.pipeline_mode<synchronous>, transform_indices = @transform_1, window_bounds = array<i64: 32, 2>}, {pipeline_mode = #tpu.pipeline_mode<synchronous>, transform_indices = @transform_2, window_bounds = array<i64: 32, 1>}, {pipeline_mode = #tpu.pipeline_mode<synchronous>, transform_indices = @transform_3, window_bounds = array<i64: 2, 32>}, {pipeline_mode = #tpu.pipeline_mode<synchronous>, transform_indices = @transform_4, window_bounds = array<i64: 1, 32>}, {pipeline_mode = #tpu.pipeline_mode<synchronous>, transform_indices = @transform_5, window_bounds = array<i64: 2, 32, 96>}, {pipeline_mode = #tpu.pipeline_mode<synchronous>, transform_indices = @transform_6, window_bounds = array<i64: 2, 1, 96>}, {pipeline_mode = #tpu.pipeline_mode<synchronous>, transform_indices = @transform_7, window_bounds = array<i64: 2, 32, 32>}, {pipeline_mode = #tpu.pipeline_mode<synchronous>, transform_indices = @transform_8, window_bounds = array<i64: 2, 1, 32>}, {pipeline_mode = #tpu.pipeline_mode<synchronous>, transform_indices = @transform_9, window_bounds = array<i64: 2, 1, 32>}, {pipeline_mode = #tpu.pipeline_mode<synchronous>, transform_indices = @transform_10, window_bounds = array<i64: 2, 1, 32>}, {pipeline_mode = #tpu.pipeline_mode<synchronous>, transform_indices = @transform_11, window_bounds = array<i64: 2, 96, 64>}, {pipeline_mode = #tpu.pipeline_mode<synchronous>, transform_indices = @transform_12, window_bounds = array<i64: 2, 1, 64>}, {pipeline_mode = #tpu.pipeline_mode<synchronous>, transform_indices = @transform_13, window_bounds = array<i64: 2, 192, 32>}, {pipeline_mode = #tpu.pipeline_mode<synchronous>, transform_indices = @transform_14, window_bounds = array<i64: 2, 1, 32>}, {pipeline_mode = #tpu.pipeline_mode<synchronous>, transform_indices = @transform_15, window_bounds = array<i64: 2, 1, 32>}, {pipeline_mode = #tpu.pipeline_mode<synchronous>, transform_indices = @transform_16, window_bounds = array<i64: 2, 1, 32>}, {pipeline_mode = #tpu.pipeline_mode<synchronous>, transform_indices = @transform_17, window_bounds = array<i64: 32, 4>}, {pipeline_mode = #tpu.pipeline_mode<synchronous>, transform_indices = @transform_18, window_bounds = array<i64: 1, 4>}, {pipeline_mode = #tpu.pipeline_mode<synchronous>, transform_indices = @transform_19, window_bounds = array<i64: 32, 4>}]} {
    %c0 = arith.constant 0 : index
    %c0_0 = arith.constant 0 : index
    %0 = vector.load %arg1[%c0, %c0_0] : memref<32x2xf32, #tpu.memory_space<vmem>>, vector<32x2xf32>
    %c0_1 = arith.constant 0 : index
    %c0_2 = arith.constant 0 : index
    %1 = vector.load %arg2[%c0_1, %c0_2] : memref<32x2xf32, #tpu.memory_space<vmem>>, vector<32x2xf32>
    %c0_3 = arith.constant 0 : index
    %c0_4 = arith.constant 0 : index
    %2 = vector.load %arg3[%c0_3, %c0_4] : memref<32x1xf32, #tpu.memory_space<vmem>>, vector<32x1xf32>
    %3 = tpu.iota {dimensions = array<i32: 0>} : vector<32x32xi32>
    %4 = tpu.iota {dimensions = array<i32: 1>} : vector<32x32xi32>
    %5 = arith.cmpi sge, %3, %4 : vector<32x32xi32>
    %c4_i32 = arith.constant 4 : i32
    %6 = vector.broadcast %c4_i32 : i32 to vector<32x32xi32>
    %7 = arith.shrsi %3, %6 : vector<32x32xi32>
    %c4_i32_5 = arith.constant 4 : i32
    %8 = vector.broadcast %c4_i32_5 : i32 to vector<32x32xi32>
    %9 = arith.shrsi %4, %8 : vector<32x32xi32>
    %10 = arith.cmpi eq, %7, %9 : vector<32x32xi32>
    %11 = arith.andi %5, %10 : vector<32x32xi1>
    %cst = arith.constant 0.000000e+00 : f32
    %cst_6 = arith.constant -1.000000e+04 : f32
    %12 = vector.broadcast %cst : f32 to vector<32x32xf32>
    %13 = vector.broadcast %cst_6 : f32 to vector<32x32xf32>
    %14 = arith.select %11, %12, %13 : vector<32x32xi1>, vector<32x32xf32>
    %15 = tpu.iota {dimensions = array<i32: 0>} : vector<32x1xi32>
    %c15_i32 = arith.constant 15 : i32
    %16 = vector.broadcast %c15_i32 : i32 to vector<32x1xi32>
    %17 = arith.andi %15, %16 : vector<32x1xi32>
    %c2_i32 = arith.constant 2 : i32
    %18 = vector.broadcast %c2_i32 : i32 to vector<32x1xi32>
    %19 = arith.cmpi sge, %17, %18 : vector<32x1xi32>
    %c1_i32 = arith.constant 1 : i32
    %20 = vector.broadcast %c1_i32 : i32 to vector<32x1xi32>
    %21 = arith.cmpi sge, %17, %20 : vector<32x1xi32>
    %c0_7 = arith.constant 0 : index
    %c0_8 = arith.constant 0 : index
    %22 = vector.load %arg4[%c0_7, %c0_8] : memref<2x32xf32, #tpu.memory_space<vmem>>, vector<2x32xf32>
    %c0_9 = arith.constant 0 : index
    %c0_10 = arith.constant 0 : index
    %23 = vector.load %arg5[%c0_9, %c0_10] : memref<1x32xf32, #tpu.memory_space<vmem>>, vector<1x32xf32>
    %cst_11 = arith.constant dense<0.000000e+00> : vector<32x32xf32>
    %24 = tpu.matmul %0, %22, %cst_11 {dimension_numbers = #tpu.dot_dimension_numbers<[1], [0], [0], [1], [0, 0, 1, 1], [], []>} : vector<32x2xf32>, vector<2x32xf32>, vector<32x32xf32> -> vector<32x32xf32>
    %25 = vector.broadcast %23 : vector<1x32xf32> to vector<32x32xf32>
    %26 = arith.addf %24, %25 : vector<32x32xf32>
    %27 = vector.broadcast %2 : vector<32x1xf32> to vector<32x32xf32>
    %28 = arith.mulf %26, %27 : vector<32x32xf32>
    %29 = vector.broadcast %2 : vector<32x1xf32> to vector<32x32xf32>
    %30 = arith.mulf %28, %29 : vector<32x32xf32>
    %c0_12 = arith.constant 0 : index
    %c0_13 = arith.constant 0 : index
    %c0_14 = arith.constant 0 : index
    %31 = vector.load %arg6[%c0_12, %c0_13, %c0_14] : memref<2x32x96xf32, #tpu.memory_space<vmem>>, vector<1x32x96xf32>
    %32 = vector.shape_cast %31 : vector<1x32x96xf32> to vector<32x96xf32>
    %c0_15 = arith.constant 0 : index
    %c0_16 = arith.constant 0 : index
    %c0_17 = arith.constant 0 : index
    %33 = vector.load %arg7[%c0_15, %c0_16, %c0_17] : memref<2x1x96xf32, #tpu.memory_space<vmem>>, vector<1x1x96xf32>
    %34 = vector.shape_cast %33 : vector<1x1x96xf32> to vector<1x96xf32>
    %cst_18 = arith.constant dense<0.000000e+00> : vector<32x96xf32>
    %35 = tpu.matmul %30, %32, %cst_18 {dimension_numbers = #tpu.dot_dimension_numbers<[1], [0], [0], [1], [0, 0, 1, 1], [], []>} : vector<32x32xf32>, vector<32x96xf32>, vector<32x96xf32> -> vector<32x96xf32>
    %36 = vector.broadcast %34 : vector<1x96xf32> to vector<32x96xf32>
    %37 = arith.addf %35, %36 : vector<32x96xf32>
    %38 = vector.extract_strided_slice %37 {offsets = [0, 0], sizes = [32, 16], strides = [1, 1]} : vector<32x96xf32> to vector<32x16xf32>
    %39 = vector.extract_strided_slice %37 {offsets = [0, 32], sizes = [32, 16], strides = [1, 1]} : vector<32x96xf32> to vector<32x16xf32>
    %40 = vector.extract_strided_slice %37 {offsets = [0, 64], sizes = [32, 16], strides = [1, 1]} : vector<32x96xf32> to vector<32x16xf32>
    "tpu.trace_start"() <{level = 10 : i32, message = "qd,kd->qk"}> : () -> ()
    %cst_19 = arith.constant dense<0.000000e+00> : vector<32x32xf32>
    %41 = tpu.matmul %38, %39, %cst_19 {dimension_numbers = #tpu.dot_dimension_numbers<[1], [1], [0], [0], [0, 0, 1, 0], [], []>} : vector<32x16xf32>, vector<32x16xf32>, vector<32x32xf32> -> vector<32x32xf32>
    "tpu.trace_stop"() : () -> ()
    %42 = arith.addf %41, %14 : vector<32x32xf32>
    %cst_20 = arith.constant dense<0xFF800000> : vector<32xf32>
    %43 = vector.multi_reduction <maximumf>, %42, %cst_20 [1] : vector<32x32xf32> to vector<32xf32>
    %44 = vector.shape_cast %43 : vector<32xf32> to vector<32x1xf32>
    %45 = vector.broadcast %44 : vector<32x1xf32> to vector<32x32xf32>
    %46 = arith.subf %42, %45 : vector<32x32xf32>
    %47 = math.exp %46 : vector<32x32xf32>
    %cst_21 = arith.constant dense<0.000000e+00> : vector<32xf32>
    %48 = vector.multi_reduction <add>, %47, %cst_21 [1] : vector<32x32xf32> to vector<32xf32>
    %49 = vector.shape_cast %48 : vector<32xf32> to vector<32x1xf32>
    %50 = tpu.reciprocal %49 {approx = true} : vector<32x1xf32> -> vector<32x1xf32>
    %51 = vector.broadcast %50 : vector<32x1xf32> to vector<32x32xf32>
    %52 = arith.mulf %47, %51 : vector<32x32xf32>
    %cst_22 = arith.constant dense<0.000000e+00> : vector<32x16xf32>
    %53 = tpu.matmul %52, %40, %cst_22 {dimension_numbers = #tpu.dot_dimension_numbers<[1], [0], [0], [1], [0, 0, 1, 1], [], []>} : vector<32x32xf32>, vector<32x16xf32>, vector<32x16xf32> -> vector<32x16xf32>
    %54 = vector.extract_strided_slice %37 {offsets = [0, 16], sizes = [32, 16], strides = [1, 1]} : vector<32x96xf32> to vector<32x16xf32>
    %55 = vector.extract_strided_slice %37 {offsets = [0, 48], sizes = [32, 16], strides = [1, 1]} : vector<32x96xf32> to vector<32x16xf32>
    %56 = vector.extract_strided_slice %37 {offsets = [0, 80], sizes = [32, 16], strides = [1, 1]} : vector<32x96xf32> to vector<32x16xf32>
    "tpu.trace_start"() <{level = 10 : i32, message = "qd,kd->qk"}> : () -> ()
    %cst_23 = arith.constant dense<0.000000e+00> : vector<32x32xf32>
    %57 = tpu.matmul %54, %55, %cst_23 {dimension_numbers = #tpu.dot_dimension_numbers<[1], [1], [0], [0], [0, 0, 1, 0], [], []>} : vector<32x16xf32>, vector<32x16xf32>, vector<32x32xf32> -> vector<32x32xf32>
    "tpu.trace_stop"() : () -> ()
    %58 = arith.addf %57, %14 : vector<32x32xf32>
    %cst_24 = arith.constant dense<0xFF800000> : vector<32xf32>
    %59 = vector.multi_reduction <maximumf>, %58, %cst_24 [1] : vector<32x32xf32> to vector<32xf32>
    %60 = vector.shape_cast %59 : vector<32xf32> to vector<32x1xf32>
    %61 = vector.broadcast %60 : vector<32x1xf32> to vector<32x32xf32>
    %62 = arith.subf %58, %61 : vector<32x32xf32>
    %63 = math.exp %62 : vector<32x32xf32>
    %cst_25 = arith.constant dense<0.000000e+00> : vector<32xf32>
    %64 = vector.multi_reduction <add>, %63, %cst_25 [1] : vector<32x32xf32> to vector<32xf32>
    %65 = vector.shape_cast %64 : vector<32xf32> to vector<32x1xf32>
    %66 = tpu.reciprocal %65 {approx = true} : vector<32x1xf32> -> vector<32x1xf32>
    %67 = vector.broadcast %66 : vector<32x1xf32> to vector<32x32xf32>
    %68 = arith.mulf %63, %67 : vector<32x32xf32>
    %cst_26 = arith.constant dense<0.000000e+00> : vector<32x16xf32>
    %69 = tpu.matmul %68, %56, %cst_26 {dimension_numbers = #tpu.dot_dimension_numbers<[1], [0], [0], [1], [0, 0, 1, 1], [], []>} : vector<32x32xf32>, vector<32x16xf32>, vector<32x16xf32> -> vector<32x16xf32>
    %70 = tpu.concatenate %53, %69 in 1 : vector<32x16xf32>, vector<32x16xf32> -> vector<32x32xf32>
    %c0_27 = arith.constant 0 : index
    %c0_28 = arith.constant 0 : index
    %c0_29 = arith.constant 0 : index
    %71 = vector.load %arg8[%c0_27, %c0_28, %c0_29] : memref<2x32x32xf32, #tpu.memory_space<vmem>>, vector<1x32x32xf32>
    %72 = vector.shape_cast %71 : vector<1x32x32xf32> to vector<32x32xf32>
    %c0_30 = arith.constant 0 : index
    %c0_31 = arith.constant 0 : index
    %c0_32 = arith.constant 0 : index
    %73 = vector.load %arg9[%c0_30, %c0_31, %c0_32] : memref<2x1x32xf32, #tpu.memory_space<vmem>>, vector<1x1x32xf32>
    %74 = vector.shape_cast %73 : vector<1x1x32xf32> to vector<1x32xf32>
    %cst_33 = arith.constant dense<0.000000e+00> : vector<32x32xf32>
    %75 = tpu.matmul %70, %72, %cst_33 {dimension_numbers = #tpu.dot_dimension_numbers<[1], [0], [0], [1], [0, 0, 1, 1], [], []>} : vector<32x32xf32>, vector<32x32xf32>, vector<32x32xf32> -> vector<32x32xf32>
    %76 = vector.broadcast %74 : vector<1x32xf32> to vector<32x32xf32>
    %77 = arith.addf %75, %76 : vector<32x32xf32>
    %78 = arith.addf %30, %77 : vector<32x32xf32>
    %c0_34 = arith.constant 0 : index
    %c0_35 = arith.constant 0 : index
    %c0_36 = arith.constant 0 : index
    %79 = vector.load %arg10[%c0_34, %c0_35, %c0_36] : memref<2x1x32xf32, #tpu.memory_space<vmem>>, vector<1x1x32xf32>
    %80 = vector.shape_cast %79 : vector<1x1x32xf32> to vector<1x32xf32>
    %c0_37 = arith.constant 0 : index
    %c0_38 = arith.constant 0 : index
    %c0_39 = arith.constant 0 : index
    %81 = vector.load %arg11[%c0_37, %c0_38, %c0_39] : memref<2x1x32xf32, #tpu.memory_space<vmem>>, vector<1x1x32xf32>
    %82 = vector.shape_cast %81 : vector<1x1x32xf32> to vector<1x32xf32>
    %cst_40 = arith.constant dense<0.000000e+00> : vector<32xf32>
    %83 = vector.multi_reduction <add>, %78, %cst_40 [1] : vector<32x32xf32> to vector<32xf32>
    %84 = vector.shape_cast %83 : vector<32xf32> to vector<32x1xf32>
    %cst_41 = arith.constant 3.200000e+01 : f32
    %85 = vector.broadcast %cst_41 : f32 to vector<32x1xf32>
    %86 = arith.divf %84, %85 : vector<32x1xf32>
    %87 = vector.broadcast %86 : vector<32x1xf32> to vector<32x32xf32>
    %88 = arith.subf %78, %87 : vector<32x32xf32>
    %89 = arith.mulf %88, %88 : vector<32x32xf32>
    %cst_42 = arith.constant dense<0.000000e+00> : vector<32xf32>
    %90 = vector.multi_reduction <add>, %89, %cst_42 [1] : vector<32x32xf32> to vector<32xf32>
    %91 = vector.shape_cast %90 : vector<32xf32> to vector<32x1xf32>
    %cst_43 = arith.constant 3.200000e+01 : f32
    %92 = vector.broadcast %cst_43 : f32 to vector<32x1xf32>
    %93 = arith.divf %91, %92 : vector<32x1xf32>
    %94 = vector.broadcast %86 : vector<32x1xf32> to vector<32x32xf32>
    %95 = arith.subf %78, %94 : vector<32x32xf32>
    %cst_44 = arith.constant 9.99999974E-6 : f32
    %96 = vector.broadcast %cst_44 : f32 to vector<32x1xf32>
    %97 = arith.addf %93, %96 : vector<32x1xf32>
    %98 = math.rsqrt %97 : vector<32x1xf32>
    %99 = vector.broadcast %98 : vector<32x1xf32> to vector<32x32xf32>
    %100 = arith.mulf %95, %99 : vector<32x32xf32>
    %101 = vector.broadcast %80 : vector<1x32xf32> to vector<32x32xf32>
    %102 = arith.mulf %100, %101 : vector<32x32xf32>
    %103 = vector.broadcast %82 : vector<1x32xf32> to vector<32x32xf32>
    %104 = arith.addf %102, %103 : vector<32x32xf32>
    %105 = vector.broadcast %2 : vector<32x1xf32> to vector<32x32xf32>
    %106 = arith.mulf %104, %105 : vector<32x32xf32>
    %c2_i32_45 = arith.constant 2 : i32
    %107 = tpu.dynamic_rotate %106 by %c2_i32_45 dim 0 : vector<32x32xf32>, i32 -> vector<32x32xf32>
    %cst_46 = arith.constant 0.000000e+00 : f32
    %108 = vector.shape_cast %19 : vector<32x1xi1> to vector<32x1xi1>
    %109 = vector.broadcast %108 : vector<32x1xi1> to vector<32x32xi1>
    %110 = vector.broadcast %cst_46 : f32 to vector<32x32xf32>
    %111 = arith.select %109, %107, %110 : vector<32x32xi1>, vector<32x32xf32>
    %c1_i32_47 = arith.constant 1 : i32
    %112 = tpu.dynamic_rotate %106 by %c1_i32_47 dim 0 : vector<32x32xf32>, i32 -> vector<32x32xf32>
    %cst_48 = arith.constant 0.000000e+00 : f32
    %113 = vector.shape_cast %21 : vector<32x1xi1> to vector<32x1xi1>
    %114 = vector.broadcast %113 : vector<32x1xi1> to vector<32x32xi1>
    %115 = vector.broadcast %cst_48 : f32 to vector<32x32xf32>
    %116 = arith.select %114, %112, %115 : vector<32x32xi1>, vector<32x32xf32>
    %117 = tpu.concatenate %111, %116, %106 in 1 : vector<32x32xf32>, vector<32x32xf32>, vector<32x32xf32> -> vector<32x96xf32>
    %c0_49 = arith.constant 0 : index
    %c0_50 = arith.constant 0 : index
    %c0_51 = arith.constant 0 : index
    %118 = vector.load %arg12[%c0_49, %c0_50, %c0_51] : memref<2x96x64xf32, #tpu.memory_space<vmem>>, vector<1x96x64xf32>
    %119 = vector.shape_cast %118 : vector<1x96x64xf32> to vector<96x64xf32>
    %c0_52 = arith.constant 0 : index
    %c0_53 = arith.constant 0 : index
    %c0_54 = arith.constant 0 : index
    %120 = vector.load %arg13[%c0_52, %c0_53, %c0_54] : memref<2x1x64xf32, #tpu.memory_space<vmem>>, vector<1x1x64xf32>
    %121 = vector.shape_cast %120 : vector<1x1x64xf32> to vector<1x64xf32>
    %cst_55 = arith.constant dense<0.000000e+00> : vector<32x64xf32>
    %122 = tpu.matmul %117, %119, %cst_55 {dimension_numbers = #tpu.dot_dimension_numbers<[1], [0], [0], [1], [0, 0, 1, 1], [], []>} : vector<32x96xf32>, vector<96x64xf32>, vector<32x64xf32> -> vector<32x64xf32>
    %123 = vector.broadcast %121 : vector<1x64xf32> to vector<32x64xf32>
    %124 = arith.addf %122, %123 : vector<32x64xf32>
    %cst_56 = arith.constant 0.000000e+00 : f32
    %125 = vector.broadcast %cst_56 : f32 to vector<32x64xf32>
    %126 = arith.maximumf %124, %125 : vector<32x64xf32>
    %127 = vector.broadcast %2 : vector<32x1xf32> to vector<32x64xf32>
    %128 = arith.mulf %126, %127 : vector<32x64xf32>
    %c2_i32_57 = arith.constant 2 : i32
    %129 = tpu.dynamic_rotate %128 by %c2_i32_57 dim 0 : vector<32x64xf32>, i32 -> vector<32x64xf32>
    %cst_58 = arith.constant 0.000000e+00 : f32
    %130 = vector.shape_cast %19 : vector<32x1xi1> to vector<32x1xi1>
    %131 = vector.broadcast %130 : vector<32x1xi1> to vector<32x64xi1>
    %132 = vector.broadcast %cst_58 : f32 to vector<32x64xf32>
    %133 = arith.select %131, %129, %132 : vector<32x64xi1>, vector<32x64xf32>
    %c1_i32_59 = arith.constant 1 : i32
    %134 = tpu.dynamic_rotate %128 by %c1_i32_59 dim 0 : vector<32x64xf32>, i32 -> vector<32x64xf32>
    %cst_60 = arith.constant 0.000000e+00 : f32
    %135 = vector.shape_cast %21 : vector<32x1xi1> to vector<32x1xi1>
    %136 = vector.broadcast %135 : vector<32x1xi1> to vector<32x64xi1>
    %137 = vector.broadcast %cst_60 : f32 to vector<32x64xf32>
    %138 = arith.select %136, %134, %137 : vector<32x64xi1>, vector<32x64xf32>
    %139 = tpu.concatenate %133, %138, %128 in 1 : vector<32x64xf32>, vector<32x64xf32>, vector<32x64xf32> -> vector<32x192xf32>
    %c0_61 = arith.constant 0 : index
    %c0_62 = arith.constant 0 : index
    %c0_63 = arith.constant 0 : index
    %140 = vector.load %arg14[%c0_61, %c0_62, %c0_63] : memref<2x192x32xf32, #tpu.memory_space<vmem>>, vector<1x192x32xf32>
    %141 = vector.shape_cast %140 : vector<1x192x32xf32> to vector<192x32xf32>
    %c0_64 = arith.constant 0 : index
    %c0_65 = arith.constant 0 : index
    %c0_66 = arith.constant 0 : index
    %142 = vector.load %arg15[%c0_64, %c0_65, %c0_66] : memref<2x1x32xf32, #tpu.memory_space<vmem>>, vector<1x1x32xf32>
    %143 = vector.shape_cast %142 : vector<1x1x32xf32> to vector<1x32xf32>
    %cst_67 = arith.constant dense<0.000000e+00> : vector<32x32xf32>
    %144 = tpu.matmul %139, %141, %cst_67 {dimension_numbers = #tpu.dot_dimension_numbers<[1], [0], [0], [1], [0, 0, 1, 1], [], []>} : vector<32x192xf32>, vector<192x32xf32>, vector<32x32xf32> -> vector<32x32xf32>
    %145 = vector.broadcast %143 : vector<1x32xf32> to vector<32x32xf32>
    %146 = arith.addf %144, %145 : vector<32x32xf32>
    %147 = vector.broadcast %2 : vector<32x1xf32> to vector<32x32xf32>
    %148 = arith.mulf %146, %147 : vector<32x32xf32>
    %149 = arith.addf %104, %148 : vector<32x32xf32>
    %c0_68 = arith.constant 0 : index
    %c0_69 = arith.constant 0 : index
    %c0_70 = arith.constant 0 : index
    %150 = vector.load %arg16[%c0_68, %c0_69, %c0_70] : memref<2x1x32xf32, #tpu.memory_space<vmem>>, vector<1x1x32xf32>
    %151 = vector.shape_cast %150 : vector<1x1x32xf32> to vector<1x32xf32>
    %c0_71 = arith.constant 0 : index
    %c0_72 = arith.constant 0 : index
    %c0_73 = arith.constant 0 : index
    %152 = vector.load %arg17[%c0_71, %c0_72, %c0_73] : memref<2x1x32xf32, #tpu.memory_space<vmem>>, vector<1x1x32xf32>
    %153 = vector.shape_cast %152 : vector<1x1x32xf32> to vector<1x32xf32>
    %cst_74 = arith.constant dense<0.000000e+00> : vector<32xf32>
    %154 = vector.multi_reduction <add>, %149, %cst_74 [1] : vector<32x32xf32> to vector<32xf32>
    %155 = vector.shape_cast %154 : vector<32xf32> to vector<32x1xf32>
    %cst_75 = arith.constant 3.200000e+01 : f32
    %156 = vector.broadcast %cst_75 : f32 to vector<32x1xf32>
    %157 = arith.divf %155, %156 : vector<32x1xf32>
    %158 = vector.broadcast %157 : vector<32x1xf32> to vector<32x32xf32>
    %159 = arith.subf %149, %158 : vector<32x32xf32>
    %160 = arith.mulf %159, %159 : vector<32x32xf32>
    %cst_76 = arith.constant dense<0.000000e+00> : vector<32xf32>
    %161 = vector.multi_reduction <add>, %160, %cst_76 [1] : vector<32x32xf32> to vector<32xf32>
    %162 = vector.shape_cast %161 : vector<32xf32> to vector<32x1xf32>
    %cst_77 = arith.constant 3.200000e+01 : f32
    %163 = vector.broadcast %cst_77 : f32 to vector<32x1xf32>
    %164 = arith.divf %162, %163 : vector<32x1xf32>
    %165 = vector.broadcast %157 : vector<32x1xf32> to vector<32x32xf32>
    %166 = arith.subf %149, %165 : vector<32x32xf32>
    %cst_78 = arith.constant 9.99999974E-6 : f32
    %167 = vector.broadcast %cst_78 : f32 to vector<32x1xf32>
    %168 = arith.addf %164, %167 : vector<32x1xf32>
    %169 = math.rsqrt %168 : vector<32x1xf32>
    %170 = vector.broadcast %169 : vector<32x1xf32> to vector<32x32xf32>
    %171 = arith.mulf %166, %170 : vector<32x32xf32>
    %172 = vector.broadcast %151 : vector<1x32xf32> to vector<32x32xf32>
    %173 = arith.mulf %171, %172 : vector<32x32xf32>
    %174 = vector.broadcast %153 : vector<1x32xf32> to vector<32x32xf32>
    %175 = arith.addf %173, %174 : vector<32x32xf32>
    %c1 = arith.constant 1 : index
    %c0_79 = arith.constant 0 : index
    %c0_80 = arith.constant 0 : index
    %176 = vector.load %arg6[%c1, %c0_79, %c0_80] : memref<2x32x96xf32, #tpu.memory_space<vmem>>, vector<1x32x96xf32>
    %177 = vector.shape_cast %176 : vector<1x32x96xf32> to vector<32x96xf32>
    %c1_81 = arith.constant 1 : index
    %c0_82 = arith.constant 0 : index
    %c0_83 = arith.constant 0 : index
    %178 = vector.load %arg7[%c1_81, %c0_82, %c0_83] : memref<2x1x96xf32, #tpu.memory_space<vmem>>, vector<1x1x96xf32>
    %179 = vector.shape_cast %178 : vector<1x1x96xf32> to vector<1x96xf32>
    %cst_84 = arith.constant dense<0.000000e+00> : vector<32x96xf32>
    %180 = tpu.matmul %175, %177, %cst_84 {dimension_numbers = #tpu.dot_dimension_numbers<[1], [0], [0], [1], [0, 0, 1, 1], [], []>} : vector<32x32xf32>, vector<32x96xf32>, vector<32x96xf32> -> vector<32x96xf32>
    %181 = vector.broadcast %179 : vector<1x96xf32> to vector<32x96xf32>
    %182 = arith.addf %180, %181 : vector<32x96xf32>
    %183 = vector.extract_strided_slice %182 {offsets = [0, 0], sizes = [32, 16], strides = [1, 1]} : vector<32x96xf32> to vector<32x16xf32>
    %184 = vector.extract_strided_slice %182 {offsets = [0, 32], sizes = [32, 16], strides = [1, 1]} : vector<32x96xf32> to vector<32x16xf32>
    %185 = vector.extract_strided_slice %182 {offsets = [0, 64], sizes = [32, 16], strides = [1, 1]} : vector<32x96xf32> to vector<32x16xf32>
    "tpu.trace_start"() <{level = 10 : i32, message = "qd,kd->qk"}> : () -> ()
    %cst_85 = arith.constant dense<0.000000e+00> : vector<32x32xf32>
    %186 = tpu.matmul %183, %184, %cst_85 {dimension_numbers = #tpu.dot_dimension_numbers<[1], [1], [0], [0], [0, 0, 1, 0], [], []>} : vector<32x16xf32>, vector<32x16xf32>, vector<32x32xf32> -> vector<32x32xf32>
    "tpu.trace_stop"() : () -> ()
    %187 = arith.addf %186, %14 : vector<32x32xf32>
    %cst_86 = arith.constant dense<0xFF800000> : vector<32xf32>
    %188 = vector.multi_reduction <maximumf>, %187, %cst_86 [1] : vector<32x32xf32> to vector<32xf32>
    %189 = vector.shape_cast %188 : vector<32xf32> to vector<32x1xf32>
    %190 = vector.broadcast %189 : vector<32x1xf32> to vector<32x32xf32>
    %191 = arith.subf %187, %190 : vector<32x32xf32>
    %192 = math.exp %191 : vector<32x32xf32>
    %cst_87 = arith.constant dense<0.000000e+00> : vector<32xf32>
    %193 = vector.multi_reduction <add>, %192, %cst_87 [1] : vector<32x32xf32> to vector<32xf32>
    %194 = vector.shape_cast %193 : vector<32xf32> to vector<32x1xf32>
    %195 = tpu.reciprocal %194 {approx = true} : vector<32x1xf32> -> vector<32x1xf32>
    %196 = vector.broadcast %195 : vector<32x1xf32> to vector<32x32xf32>
    %197 = arith.mulf %192, %196 : vector<32x32xf32>
    %cst_88 = arith.constant dense<0.000000e+00> : vector<32x16xf32>
    %198 = tpu.matmul %197, %185, %cst_88 {dimension_numbers = #tpu.dot_dimension_numbers<[1], [0], [0], [1], [0, 0, 1, 1], [], []>} : vector<32x32xf32>, vector<32x16xf32>, vector<32x16xf32> -> vector<32x16xf32>
    %199 = vector.extract_strided_slice %182 {offsets = [0, 16], sizes = [32, 16], strides = [1, 1]} : vector<32x96xf32> to vector<32x16xf32>
    %200 = vector.extract_strided_slice %182 {offsets = [0, 48], sizes = [32, 16], strides = [1, 1]} : vector<32x96xf32> to vector<32x16xf32>
    %201 = vector.extract_strided_slice %182 {offsets = [0, 80], sizes = [32, 16], strides = [1, 1]} : vector<32x96xf32> to vector<32x16xf32>
    "tpu.trace_start"() <{level = 10 : i32, message = "qd,kd->qk"}> : () -> ()
    %cst_89 = arith.constant dense<0.000000e+00> : vector<32x32xf32>
    %202 = tpu.matmul %199, %200, %cst_89 {dimension_numbers = #tpu.dot_dimension_numbers<[1], [1], [0], [0], [0, 0, 1, 0], [], []>} : vector<32x16xf32>, vector<32x16xf32>, vector<32x32xf32> -> vector<32x32xf32>
    "tpu.trace_stop"() : () -> ()
    %203 = arith.addf %202, %14 : vector<32x32xf32>
    %cst_90 = arith.constant dense<0xFF800000> : vector<32xf32>
    %204 = vector.multi_reduction <maximumf>, %203, %cst_90 [1] : vector<32x32xf32> to vector<32xf32>
    %205 = vector.shape_cast %204 : vector<32xf32> to vector<32x1xf32>
    %206 = vector.broadcast %205 : vector<32x1xf32> to vector<32x32xf32>
    %207 = arith.subf %203, %206 : vector<32x32xf32>
    %208 = math.exp %207 : vector<32x32xf32>
    %cst_91 = arith.constant dense<0.000000e+00> : vector<32xf32>
    %209 = vector.multi_reduction <add>, %208, %cst_91 [1] : vector<32x32xf32> to vector<32xf32>
    %210 = vector.shape_cast %209 : vector<32xf32> to vector<32x1xf32>
    %211 = tpu.reciprocal %210 {approx = true} : vector<32x1xf32> -> vector<32x1xf32>
    %212 = vector.broadcast %211 : vector<32x1xf32> to vector<32x32xf32>
    %213 = arith.mulf %208, %212 : vector<32x32xf32>
    %cst_92 = arith.constant dense<0.000000e+00> : vector<32x16xf32>
    %214 = tpu.matmul %213, %201, %cst_92 {dimension_numbers = #tpu.dot_dimension_numbers<[1], [0], [0], [1], [0, 0, 1, 1], [], []>} : vector<32x32xf32>, vector<32x16xf32>, vector<32x16xf32> -> vector<32x16xf32>
    %215 = tpu.concatenate %198, %214 in 1 : vector<32x16xf32>, vector<32x16xf32> -> vector<32x32xf32>
    %c1_93 = arith.constant 1 : index
    %c0_94 = arith.constant 0 : index
    %c0_95 = arith.constant 0 : index
    %216 = vector.load %arg8[%c1_93, %c0_94, %c0_95] : memref<2x32x32xf32, #tpu.memory_space<vmem>>, vector<1x32x32xf32>
    %217 = vector.shape_cast %216 : vector<1x32x32xf32> to vector<32x32xf32>
    %c1_96 = arith.constant 1 : index
    %c0_97 = arith.constant 0 : index
    %c0_98 = arith.constant 0 : index
    %218 = vector.load %arg9[%c1_96, %c0_97, %c0_98] : memref<2x1x32xf32, #tpu.memory_space<vmem>>, vector<1x1x32xf32>
    %219 = vector.shape_cast %218 : vector<1x1x32xf32> to vector<1x32xf32>
    %cst_99 = arith.constant dense<0.000000e+00> : vector<32x32xf32>
    %220 = tpu.matmul %215, %217, %cst_99 {dimension_numbers = #tpu.dot_dimension_numbers<[1], [0], [0], [1], [0, 0, 1, 1], [], []>} : vector<32x32xf32>, vector<32x32xf32>, vector<32x32xf32> -> vector<32x32xf32>
    %221 = vector.broadcast %219 : vector<1x32xf32> to vector<32x32xf32>
    %222 = arith.addf %220, %221 : vector<32x32xf32>
    %223 = arith.addf %175, %222 : vector<32x32xf32>
    %c1_100 = arith.constant 1 : index
    %c0_101 = arith.constant 0 : index
    %c0_102 = arith.constant 0 : index
    %224 = vector.load %arg10[%c1_100, %c0_101, %c0_102] : memref<2x1x32xf32, #tpu.memory_space<vmem>>, vector<1x1x32xf32>
    %225 = vector.shape_cast %224 : vector<1x1x32xf32> to vector<1x32xf32>
    %c1_103 = arith.constant 1 : index
    %c0_104 = arith.constant 0 : index
    %c0_105 = arith.constant 0 : index
    %226 = vector.load %arg11[%c1_103, %c0_104, %c0_105] : memref<2x1x32xf32, #tpu.memory_space<vmem>>, vector<1x1x32xf32>
    %227 = vector.shape_cast %226 : vector<1x1x32xf32> to vector<1x32xf32>
    %cst_106 = arith.constant dense<0.000000e+00> : vector<32xf32>
    %228 = vector.multi_reduction <add>, %223, %cst_106 [1] : vector<32x32xf32> to vector<32xf32>
    %229 = vector.shape_cast %228 : vector<32xf32> to vector<32x1xf32>
    %cst_107 = arith.constant 3.200000e+01 : f32
    %230 = vector.broadcast %cst_107 : f32 to vector<32x1xf32>
    %231 = arith.divf %229, %230 : vector<32x1xf32>
    %232 = vector.broadcast %231 : vector<32x1xf32> to vector<32x32xf32>
    %233 = arith.subf %223, %232 : vector<32x32xf32>
    %234 = arith.mulf %233, %233 : vector<32x32xf32>
    %cst_108 = arith.constant dense<0.000000e+00> : vector<32xf32>
    %235 = vector.multi_reduction <add>, %234, %cst_108 [1] : vector<32x32xf32> to vector<32xf32>
    %236 = vector.shape_cast %235 : vector<32xf32> to vector<32x1xf32>
    %cst_109 = arith.constant 3.200000e+01 : f32
    %237 = vector.broadcast %cst_109 : f32 to vector<32x1xf32>
    %238 = arith.divf %236, %237 : vector<32x1xf32>
    %239 = vector.broadcast %231 : vector<32x1xf32> to vector<32x32xf32>
    %240 = arith.subf %223, %239 : vector<32x32xf32>
    %cst_110 = arith.constant 9.99999974E-6 : f32
    %241 = vector.broadcast %cst_110 : f32 to vector<32x1xf32>
    %242 = arith.addf %238, %241 : vector<32x1xf32>
    %243 = math.rsqrt %242 : vector<32x1xf32>
    %244 = vector.broadcast %243 : vector<32x1xf32> to vector<32x32xf32>
    %245 = arith.mulf %240, %244 : vector<32x32xf32>
    %246 = vector.broadcast %225 : vector<1x32xf32> to vector<32x32xf32>
    %247 = arith.mulf %245, %246 : vector<32x32xf32>
    %248 = vector.broadcast %227 : vector<1x32xf32> to vector<32x32xf32>
    %249 = arith.addf %247, %248 : vector<32x32xf32>
    %250 = vector.broadcast %2 : vector<32x1xf32> to vector<32x32xf32>
    %251 = arith.mulf %249, %250 : vector<32x32xf32>
    %c2_i32_111 = arith.constant 2 : i32
    %252 = tpu.dynamic_rotate %251 by %c2_i32_111 dim 0 : vector<32x32xf32>, i32 -> vector<32x32xf32>
    %cst_112 = arith.constant 0.000000e+00 : f32
    %253 = vector.shape_cast %19 : vector<32x1xi1> to vector<32x1xi1>
    %254 = vector.broadcast %253 : vector<32x1xi1> to vector<32x32xi1>
    %255 = vector.broadcast %cst_112 : f32 to vector<32x32xf32>
    %256 = arith.select %254, %252, %255 : vector<32x32xi1>, vector<32x32xf32>
    %c1_i32_113 = arith.constant 1 : i32
    %257 = tpu.dynamic_rotate %251 by %c1_i32_113 dim 0 : vector<32x32xf32>, i32 -> vector<32x32xf32>
    %cst_114 = arith.constant 0.000000e+00 : f32
    %258 = vector.shape_cast %21 : vector<32x1xi1> to vector<32x1xi1>
    %259 = vector.broadcast %258 : vector<32x1xi1> to vector<32x32xi1>
    %260 = vector.broadcast %cst_114 : f32 to vector<32x32xf32>
    %261 = arith.select %259, %257, %260 : vector<32x32xi1>, vector<32x32xf32>
    %262 = tpu.concatenate %256, %261, %251 in 1 : vector<32x32xf32>, vector<32x32xf32>, vector<32x32xf32> -> vector<32x96xf32>
    %c1_115 = arith.constant 1 : index
    %c0_116 = arith.constant 0 : index
    %c0_117 = arith.constant 0 : index
    %263 = vector.load %arg12[%c1_115, %c0_116, %c0_117] : memref<2x96x64xf32, #tpu.memory_space<vmem>>, vector<1x96x64xf32>
    %264 = vector.shape_cast %263 : vector<1x96x64xf32> to vector<96x64xf32>
    %c1_118 = arith.constant 1 : index
    %c0_119 = arith.constant 0 : index
    %c0_120 = arith.constant 0 : index
    %265 = vector.load %arg13[%c1_118, %c0_119, %c0_120] : memref<2x1x64xf32, #tpu.memory_space<vmem>>, vector<1x1x64xf32>
    %266 = vector.shape_cast %265 : vector<1x1x64xf32> to vector<1x64xf32>
    %cst_121 = arith.constant dense<0.000000e+00> : vector<32x64xf32>
    %267 = tpu.matmul %262, %264, %cst_121 {dimension_numbers = #tpu.dot_dimension_numbers<[1], [0], [0], [1], [0, 0, 1, 1], [], []>} : vector<32x96xf32>, vector<96x64xf32>, vector<32x64xf32> -> vector<32x64xf32>
    %268 = vector.broadcast %266 : vector<1x64xf32> to vector<32x64xf32>
    %269 = arith.addf %267, %268 : vector<32x64xf32>
    %cst_122 = arith.constant 0.000000e+00 : f32
    %270 = vector.broadcast %cst_122 : f32 to vector<32x64xf32>
    %271 = arith.maximumf %269, %270 : vector<32x64xf32>
    %272 = vector.broadcast %2 : vector<32x1xf32> to vector<32x64xf32>
    %273 = arith.mulf %271, %272 : vector<32x64xf32>
    %c2_i32_123 = arith.constant 2 : i32
    %274 = tpu.dynamic_rotate %273 by %c2_i32_123 dim 0 : vector<32x64xf32>, i32 -> vector<32x64xf32>
    %cst_124 = arith.constant 0.000000e+00 : f32
    %275 = vector.shape_cast %19 : vector<32x1xi1> to vector<32x1xi1>
    %276 = vector.broadcast %275 : vector<32x1xi1> to vector<32x64xi1>
    %277 = vector.broadcast %cst_124 : f32 to vector<32x64xf32>
    %278 = arith.select %276, %274, %277 : vector<32x64xi1>, vector<32x64xf32>
    %c1_i32_125 = arith.constant 1 : i32
    %279 = tpu.dynamic_rotate %273 by %c1_i32_125 dim 0 : vector<32x64xf32>, i32 -> vector<32x64xf32>
    %cst_126 = arith.constant 0.000000e+00 : f32
    %280 = vector.shape_cast %21 : vector<32x1xi1> to vector<32x1xi1>
    %281 = vector.broadcast %280 : vector<32x1xi1> to vector<32x64xi1>
    %282 = vector.broadcast %cst_126 : f32 to vector<32x64xf32>
    %283 = arith.select %281, %279, %282 : vector<32x64xi1>, vector<32x64xf32>
    %284 = tpu.concatenate %278, %283, %273 in 1 : vector<32x64xf32>, vector<32x64xf32>, vector<32x64xf32> -> vector<32x192xf32>
    %c1_127 = arith.constant 1 : index
    %c0_128 = arith.constant 0 : index
    %c0_129 = arith.constant 0 : index
    %285 = vector.load %arg14[%c1_127, %c0_128, %c0_129] : memref<2x192x32xf32, #tpu.memory_space<vmem>>, vector<1x192x32xf32>
    %286 = vector.shape_cast %285 : vector<1x192x32xf32> to vector<192x32xf32>
    %c1_130 = arith.constant 1 : index
    %c0_131 = arith.constant 0 : index
    %c0_132 = arith.constant 0 : index
    %287 = vector.load %arg15[%c1_130, %c0_131, %c0_132] : memref<2x1x32xf32, #tpu.memory_space<vmem>>, vector<1x1x32xf32>
    %288 = vector.shape_cast %287 : vector<1x1x32xf32> to vector<1x32xf32>
    %cst_133 = arith.constant dense<0.000000e+00> : vector<32x32xf32>
    %289 = tpu.matmul %284, %286, %cst_133 {dimension_numbers = #tpu.dot_dimension_numbers<[1], [0], [0], [1], [0, 0, 1, 1], [], []>} : vector<32x192xf32>, vector<192x32xf32>, vector<32x32xf32> -> vector<32x32xf32>
    %290 = vector.broadcast %288 : vector<1x32xf32> to vector<32x32xf32>
    %291 = arith.addf %289, %290 : vector<32x32xf32>
    %292 = vector.broadcast %2 : vector<32x1xf32> to vector<32x32xf32>
    %293 = arith.mulf %291, %292 : vector<32x32xf32>
    %294 = arith.addf %249, %293 : vector<32x32xf32>
    %c1_134 = arith.constant 1 : index
    %c0_135 = arith.constant 0 : index
    %c0_136 = arith.constant 0 : index
    %295 = vector.load %arg16[%c1_134, %c0_135, %c0_136] : memref<2x1x32xf32, #tpu.memory_space<vmem>>, vector<1x1x32xf32>
    %296 = vector.shape_cast %295 : vector<1x1x32xf32> to vector<1x32xf32>
    %c1_137 = arith.constant 1 : index
    %c0_138 = arith.constant 0 : index
    %c0_139 = arith.constant 0 : index
    %297 = vector.load %arg17[%c1_137, %c0_138, %c0_139] : memref<2x1x32xf32, #tpu.memory_space<vmem>>, vector<1x1x32xf32>
    %298 = vector.shape_cast %297 : vector<1x1x32xf32> to vector<1x32xf32>
    %cst_140 = arith.constant dense<0.000000e+00> : vector<32xf32>
    %299 = vector.multi_reduction <add>, %294, %cst_140 [1] : vector<32x32xf32> to vector<32xf32>
    %300 = vector.shape_cast %299 : vector<32xf32> to vector<32x1xf32>
    %cst_141 = arith.constant 3.200000e+01 : f32
    %301 = vector.broadcast %cst_141 : f32 to vector<32x1xf32>
    %302 = arith.divf %300, %301 : vector<32x1xf32>
    %303 = vector.broadcast %302 : vector<32x1xf32> to vector<32x32xf32>
    %304 = arith.subf %294, %303 : vector<32x32xf32>
    %305 = arith.mulf %304, %304 : vector<32x32xf32>
    %cst_142 = arith.constant dense<0.000000e+00> : vector<32xf32>
    %306 = vector.multi_reduction <add>, %305, %cst_142 [1] : vector<32x32xf32> to vector<32xf32>
    %307 = vector.shape_cast %306 : vector<32xf32> to vector<32x1xf32>
    %cst_143 = arith.constant 3.200000e+01 : f32
    %308 = vector.broadcast %cst_143 : f32 to vector<32x1xf32>
    %309 = arith.divf %307, %308 : vector<32x1xf32>
    %310 = vector.broadcast %302 : vector<32x1xf32> to vector<32x32xf32>
    %311 = arith.subf %294, %310 : vector<32x32xf32>
    %cst_144 = arith.constant 9.99999974E-6 : f32
    %312 = vector.broadcast %cst_144 : f32 to vector<32x1xf32>
    %313 = arith.addf %309, %312 : vector<32x1xf32>
    %314 = math.rsqrt %313 : vector<32x1xf32>
    %315 = vector.broadcast %314 : vector<32x1xf32> to vector<32x32xf32>
    %316 = arith.mulf %311, %315 : vector<32x32xf32>
    %317 = vector.broadcast %296 : vector<1x32xf32> to vector<32x32xf32>
    %318 = arith.mulf %316, %317 : vector<32x32xf32>
    %319 = vector.broadcast %298 : vector<1x32xf32> to vector<32x32xf32>
    %320 = arith.addf %318, %319 : vector<32x32xf32>
    %321 = vector.broadcast %2 : vector<32x1xf32> to vector<32x32xf32>
    %322 = arith.mulf %320, %321 : vector<32x32xf32>
    %323 = arith.addf %322, %28 : vector<32x32xf32>
    %c0_145 = arith.constant 0 : index
    %c0_146 = arith.constant 0 : index
    %324 = vector.load %arg18[%c0_145, %c0_146] : memref<32x4xf32, #tpu.memory_space<vmem>>, vector<32x4xf32>
    %c0_147 = arith.constant 0 : index
    %c0_148 = arith.constant 0 : index
    %325 = vector.load %arg19[%c0_147, %c0_148] : memref<1x4xf32, #tpu.memory_space<vmem>>, vector<1x4xf32>
    %cst_149 = arith.constant dense<0.000000e+00> : vector<32x4xf32>
    %326 = tpu.matmul %323, %324, %cst_149 {dimension_numbers = #tpu.dot_dimension_numbers<[1], [0], [0], [1], [0, 0, 1, 1], [], []>} : vector<32x32xf32>, vector<32x4xf32>, vector<32x4xf32> -> vector<32x4xf32>
    %327 = vector.broadcast %325 : vector<1x4xf32> to vector<32x4xf32>
    %328 = arith.addf %326, %327 : vector<32x4xf32>
    %329 = vector.broadcast %2 : vector<32x1xf32> to vector<32x4xf32>
    %330 = arith.mulf %328, %329 : vector<32x4xf32>
    %331 = vector.extract_strided_slice %330 {offsets = [0, 0], sizes = [32, 2], strides = [1, 1]} : vector<32x4xf32> to vector<32x2xf32>
    %332 = vector.extract_strided_slice %330 {offsets = [0, 2], sizes = [32, 2], strides = [1, 1]} : vector<32x4xf32> to vector<32x2xf32>
    %333 = math.exp %332 : vector<32x2xf32>
    %334 = arith.mulf %1, %333 : vector<32x2xf32>
    %335 = vector.broadcast %2 : vector<32x1xf32> to vector<32x2xf32>
    %336 = arith.mulf %334, %335 : vector<32x2xf32>
    %337 = arith.addf %331, %336 : vector<32x2xf32>
    %338 = tpu.concatenate %337, %332 in 1 : vector<32x2xf32>, vector<32x2xf32> -> vector<32x4xf32>
    %c0_150 = arith.constant 0 : index
    %c0_151 = arith.constant 0 : index
    %339 = vector.load %arg20[%c0_150, %c0_151] : memref<32x4xf32, #tpu.memory_space<vmem>>, vector<32x4xf32>
    tpu.vector_store %arg20[%c0_150, %c0_151], %338 {strides = array<i32>} : memref<32x4xf32, #tpu.memory_space<vmem>>, vector<32x4xf32>,
    return
  }
  func.func @transform_0(%arg0: i32) -> (i32, i32) {
    %c0_i32 = arith.constant 0 : i32
    %c0_i32_0 = arith.constant 0 : i32
    %c0_i32_1 = arith.constant 0 : i32
    return %c0_i32, %c0_i32_0 : i32, i32
  }
  func.func @transform_1(%arg0: i32) -> (i32, i32) {
    %c0_i32 = arith.constant 0 : i32
    %c0_i32_0 = arith.constant 0 : i32
    %c0_i32_1 = arith.constant 0 : i32
    return %c0_i32, %c0_i32_0 : i32, i32
  }
  func.func @transform_2(%arg0: i32) -> (i32, i32) {
    %c0_i32 = arith.constant 0 : i32
    %c0_i32_0 = arith.constant 0 : i32
    %c0_i32_1 = arith.constant 0 : i32
    return %c0_i32, %c0_i32_0 : i32, i32
  }
  func.func @transform_3(%arg0: i32) -> (i32, i32) {
    %c0_i32 = arith.constant 0 : i32
    %c0_i32_0 = arith.constant 0 : i32
    %c0_i32_1 = arith.constant 0 : i32
    return %c0_i32, %c0_i32_0 : i32, i32
  }
  func.func @transform_4(%arg0: i32) -> (i32, i32) {
    %c0_i32 = arith.constant 0 : i32
    %c0_i32_0 = arith.constant 0 : i32
    %c0_i32_1 = arith.constant 0 : i32
    return %c0_i32, %c0_i32_0 : i32, i32
  }
  func.func @transform_5(%arg0: i32) -> (i32, i32, i32) {
    %c0_i32 = arith.constant 0 : i32
    %c0_i32_0 = arith.constant 0 : i32
    %c0_i32_1 = arith.constant 0 : i32
    %c0_i32_2 = arith.constant 0 : i32
    return %c0_i32, %c0_i32_0, %c0_i32_1 : i32, i32, i32
  }
  func.func @transform_6(%arg0: i32) -> (i32, i32, i32) {
    %c0_i32 = arith.constant 0 : i32
    %c0_i32_0 = arith.constant 0 : i32
    %c0_i32_1 = arith.constant 0 : i32
    %c0_i32_2 = arith.constant 0 : i32
    return %c0_i32, %c0_i32_0, %c0_i32_1 : i32, i32, i32
  }
  func.func @transform_7(%arg0: i32) -> (i32, i32, i32) {
    %c0_i32 = arith.constant 0 : i32
    %c0_i32_0 = arith.constant 0 : i32
    %c0_i32_1 = arith.constant 0 : i32
    %c0_i32_2 = arith.constant 0 : i32
    return %c0_i32, %c0_i32_0, %c0_i32_1 : i32, i32, i32
  }
  func.func @transform_8(%arg0: i32) -> (i32, i32, i32) {
    %c0_i32 = arith.constant 0 : i32
    %c0_i32_0 = arith.constant 0 : i32
    %c0_i32_1 = arith.constant 0 : i32
    %c0_i32_2 = arith.constant 0 : i32
    return %c0_i32, %c0_i32_0, %c0_i32_1 : i32, i32, i32
  }
  func.func @transform_9(%arg0: i32) -> (i32, i32, i32) {
    %c0_i32 = arith.constant 0 : i32
    %c0_i32_0 = arith.constant 0 : i32
    %c0_i32_1 = arith.constant 0 : i32
    %c0_i32_2 = arith.constant 0 : i32
    return %c0_i32, %c0_i32_0, %c0_i32_1 : i32, i32, i32
  }
  func.func @transform_10(%arg0: i32) -> (i32, i32, i32) {
    %c0_i32 = arith.constant 0 : i32
    %c0_i32_0 = arith.constant 0 : i32
    %c0_i32_1 = arith.constant 0 : i32
    %c0_i32_2 = arith.constant 0 : i32
    return %c0_i32, %c0_i32_0, %c0_i32_1 : i32, i32, i32
  }
  func.func @transform_11(%arg0: i32) -> (i32, i32, i32) {
    %c0_i32 = arith.constant 0 : i32
    %c0_i32_0 = arith.constant 0 : i32
    %c0_i32_1 = arith.constant 0 : i32
    %c0_i32_2 = arith.constant 0 : i32
    return %c0_i32, %c0_i32_0, %c0_i32_1 : i32, i32, i32
  }
  func.func @transform_12(%arg0: i32) -> (i32, i32, i32) {
    %c0_i32 = arith.constant 0 : i32
    %c0_i32_0 = arith.constant 0 : i32
    %c0_i32_1 = arith.constant 0 : i32
    %c0_i32_2 = arith.constant 0 : i32
    return %c0_i32, %c0_i32_0, %c0_i32_1 : i32, i32, i32
  }
  func.func @transform_13(%arg0: i32) -> (i32, i32, i32) {
    %c0_i32 = arith.constant 0 : i32
    %c0_i32_0 = arith.constant 0 : i32
    %c0_i32_1 = arith.constant 0 : i32
    %c0_i32_2 = arith.constant 0 : i32
    return %c0_i32, %c0_i32_0, %c0_i32_1 : i32, i32, i32
  }
  func.func @transform_14(%arg0: i32) -> (i32, i32, i32) {
    %c0_i32 = arith.constant 0 : i32
    %c0_i32_0 = arith.constant 0 : i32
    %c0_i32_1 = arith.constant 0 : i32
    %c0_i32_2 = arith.constant 0 : i32
    return %c0_i32, %c0_i32_0, %c0_i32_1 : i32, i32, i32
  }
  func.func @transform_15(%arg0: i32) -> (i32, i32, i32) {
    %c0_i32 = arith.constant 0 : i32
    %c0_i32_0 = arith.constant 0 : i32
    %c0_i32_1 = arith.constant 0 : i32
    %c0_i32_2 = arith.constant 0 : i32
    return %c0_i32, %c0_i32_0, %c0_i32_1 : i32, i32, i32
  }
  func.func @transform_16(%arg0: i32) -> (i32, i32, i32) {
    %c0_i32 = arith.constant 0 : i32
    %c0_i32_0 = arith.constant 0 : i32
    %c0_i32_1 = arith.constant 0 : i32
    %c0_i32_2 = arith.constant 0 : i32
    return %c0_i32, %c0_i32_0, %c0_i32_1 : i32, i32, i32
  }
  func.func @transform_17(%arg0: i32) -> (i32, i32) {
    %c0_i32 = arith.constant 0 : i32
    %c0_i32_0 = arith.constant 0 : i32
    %c0_i32_1 = arith.constant 0 : i32
    return %c0_i32, %c0_i32_0 : i32, i32
  }
  func.func @transform_18(%arg0: i32) -> (i32, i32) {
    %c0_i32 = arith.constant 0 : i32
    %c0_i32_0 = arith.constant 0 : i32
    %c0_i32_1 = arith.constant 0 : i32
    return %c0_i32, %c0_i32_0 : i32, i32
  }
  func.func @transform_19(%arg0: i32) -> (i32, i32) {
    %c0_i32 = arith.constant 0 : i32
    %c0_i32_0 = arith.constant 0 : i32
    %c0_i32_1 = arith.constant 0 : i32
    return %c0_i32, %c0_i32_0 : i32, i32
  }
}

</mosaic_0001>

<bundles_post_ra>
// kernel: tpu_custom_call.1
= control target key start
LH: loop header
LB: loop body
LE: loop exit
PB: predicated region body
PF: predicated region fallthrough
CT: control target
= control target key end

     0   :  { %vm135_vm0 = vcmask 1041408   ;;  %vm122_vm1 = vcmask 15360   ;;  %v4035_v3 = vmov 0   ;;  %vm263_vm2 = vcmask 261120   ;;  %s4036_s21 = smov 96   ;;  %s4040_s23 = smov 48   ;;  %s5214_s3 = inlined_call_operand.vmem [shape: f32[2,32], index: 3, kind: input, shape index: {}]   ;;  %s5215_s0 = inlined_call_operand.vmem [shape: f32[32,2], index: 0, kind: input, shape index: {}]   ;;  %s5216_s2 = inlined_call_operand.vmem [shape: f32[32,1], index: 2, kind: input, shape index: {}]   ;;  %s5217_s5 = inlined_call_operand.vmem [shape: f32[2,32,96], index: 5, kind: input, shape index: {}]   ;;  %s5218_s4 = inlined_call_operand.vmem [shape: f32[1,32], index: 4, kind: input, shape index: {}]   ;;  %s5219_s6 = inlined_call_operand.vmem [shape: f32[2,1,96], index: 6, kind: input, shape index: {}]   ;;  %s5220_s7 = inlined_call_operand.vmem [shape: f32[2,32,32], index: 7, kind: input, shape index: {}]   ;;  %s5221_s8 = inlined_call_operand.vmem [shape: f32[2,1,32], index: 8, kind: input, shape index: {}]   ;;  %s5222_s11 = inlined_call_operand.vmem [shape: f32[2,96,64], index: 11, kind: input, shape index: {}]   ;;  %s5223_s9 = inlined_call_operand.vmem [shape: f32[2,1,32], index: 9, kind: input, shape index: {}]   ;;  %s5224_s10 = inlined_call_operand.vmem [shape: f32[2,1,32], index: 10, kind: input, shape index: {}]   ;;  %s5225_s13 = inlined_call_operand.vmem [shape: f32[2,192,32], index: 13, kind: input, shape index: {}]   ;;  %s5226_s12 = inlined_call_operand.vmem [shape: f32[2,1,64], index: 12, kind: input, shape index: {}]   ;;  %s5227_s14 = inlined_call_operand.vmem [shape: f32[2,1,32], index: 14, kind: input, shape index: {}]   ;;  %s5228_s15 = inlined_call_operand.vmem [shape: f32[2,1,32], index: 15, kind: input, shape index: {}]   ;;  %s5229_s16 = inlined_call_operand.vmem [shape: f32[2,1,32], index: 16, kind: input, shape index: {}]   ;;  %s5230_s17 = inlined_call_operand.vmem [shape: f32[32,4], index: 17, kind: input, shape index: {}]   ;;  %s5231_s18 = inlined_call_operand.vmem [shape: f32[1,4], index: 18, kind: input, shape index: {}]   ;;  %s5232_s1 = inlined_call_operand.vmem [shape: f32[32,2], index: 1, kind: input, shape index: {}]   ;;  %s5233_s19 = inlined_call_operand.vmem [shape: f32[32,4], index: 19, kind: output, shape index: {}]  }
   0x1   :  { %5241 = sst [smem:[#allocation2_spill]] %s5214_s3  ;;  %3849 = vset.pattern.permute.xlu0 %v4035_v3  ;;  %3850 = vset.pattern.permute.xlu1 %v4035_v3  ;;  %v3048_v17 = vld [vmem:[%s5218_s4] ss:$0 sm:$0xff]  ;;  %vm373_vm3 = vcmask 130048   ;;  %s4041_s24 = smov 64  }
   0x2   :  { %5242 = sst [smem:[#allocation3_spill]] %s5215_s0  ;;  %s5245_s20 = sld [smem:[#allocation2_spill]]  ;;  %v3054_v37 = vld [vmem:[%s5219_s6] ss:$0 sm:$0xff]  ;;  %vm4258_vm4 = vmpackc.low %vm373_vm3, %vm373_vm3 }
   0x3   :  { %5243 = sst [smem:[#allocation4_spill]] %s5216_s2  ;;  %s5246_s22 = sld [smem:[#allocation3_spill]] }
   0x4   :  { %5244 = sst [smem:[#allocation5_spill]] %s5217_s5  ;;  %s5247_s27 = sld [smem:[#allocation4_spill]] }
   0x5   :  { %s5248_s25 = sld [smem:[#allocation5_spill]]  ;;  %s4037_s0 = smov 80  }
   0x6   :  { %s4038_s2 = smov 112   ;;  %s5237_s4 = smov 16  }
   0x8   :  { %v114_v0 = vld [vmem:[%s5245_s20] sm:$0x3]  ;;  %s5239_s20 = smov 32  }
   0x9   :  { %v62_v1 = vld [vmem:[%s5246_s22] sm:$0xff]  ;;  %v63_v2 = vld [vmem:[%s5246_s22 + $0x8] sm:$0xff]  ;;  %3348 = vmatprep.subr.msk.mxu0 %vm135_vm0, %v114_v0  ;;  %v64_v4 = vld [vmem:[%s5246_s22 + $0x10] sm:$0xff] }
   0xa   :  { %3350 = vmatprep.mubr.msk.f32.mxu0 %vm122_vm1, %v62_v1  ;;  %v70_v5 = vld [vmem:[%s5247_s27] sm:$0xff]  ;;  %3349 = vmatpush3.msk.msra.mxu0 %vm135_vm0, %v114_v0  ;;  %v72_v6 = vld [vmem:[%s5247_s27 + $0x10] sm:$0xff]  ;;  %v71_v7 = vld [vmem:[%s5247_s27 + $0x8] sm:$0xff] }
   0xb   :  { %226 = vperm.xlu0 %3849, %v70_v5   ;;  %3351 = vmatmul.mubr.msk.f32.vlgmr.msra.gmra.mrb[0].mxu0 %vm122_vm1, %v63_v2  ;;  %v65_v8 = vld [vmem:[%s5246_s22 + $0x18] sm:$0xff]  ;;  %v252_v10 = vld [vmem:[%s5248_s25] sm:$0xff]  ;;  %v253_v11 = vld [vmem:[%s5248_s25 + $0x8] sm:$0xff]  ;;  %v74_v5 = vlaneseq  ;;  %s5259_s22 = smov 16  }
   0xc   :  { %236 = vperm.xlu1 %3850, %v72_v6   ;;  %3353 = vmatprep.mubr.msk.f32.mxu0 %vm122_vm1, %v64_v4  ;;  %v73_v9 = vld [vmem:[%s5247_s27 + $0x18] sm:$0xff]  ;;  %v3598_v12 = vpack.c.bf16 %v253_v11, %v252_v10  ;;  %v254_v13 = vld [vmem:[%s5248_s25 + $0x10] sm:$0xff] }
   0xd   :  { %v255_v14 = vld [vmem:[%s5248_s25 + $0x18] sm:$0xff]  ;;  %v4285_v6 = vshrl.u32 %v74_v5, 7 }
   0xe   :  { %3599 = vmatprep.subr.bf16.mxu1 %v3598_v12  ;;  %v3602_v15 = vpack.c.bf16 %v255_v14, %v254_v13 }
   0xf   :  { %231 = vperm.xlu0 %3849, %v71_v7   ;;  %3354 = vmatmul.mubr.msk.f32.gmra.mrb[2].mxu0 %vm122_vm1, %v65_v8  ;;  %v76_v8 = vadd.s32 8, %v4285_v6 }
  0x10   :  { %241 = vperm.xlu1 %3850, %v73_v9   ;;  %3601 = vmatpush3.bf16.msra.mxu1 %v3598_v12  ;;  %v80_v9 = vand.u32 127, %v74_v5 }
  0x11   :  { %3603 = vmatprep.subr.bf16.mxu1 %v3602_v15  ;;  %v86_v12 = vshra.s32 %v76_v8, 4 }
  0x12   :  { %v89_v13 = vshra.s32 %v80_v9, 4  ;;  %vm82_vm5 = vcmp.ge.s32.totalorder %v76_v8, %v80_v9  ;;  %vm81_vm7 = vcmp.ge.s32.totalorder %v4285_v6, %v80_v9 }
  0x14   :  { %3605 = vmatpush3.bf16.msra.mxu1 %v3602_v15  ;;  %v85_v15 = vshra.s32 %v4285_v6, 4  ;;  %vm91_vm6 = vcmp.eq.s32.totalorder %v86_v12, %v89_v13 }
  0x15   :  { %vm95_vm9 = vmand %vm82_vm5, %vm91_vm6  ;;  %vm1113_vm5 = vcmp.lt.s32.totalorder %v4285_v6, 2  ;;  %vm1134_vm6 = vcmp.lt.s32.totalorder %v4285_v6, 1 }
  0x16   :  { %vm90_vm8 = vcmp.eq.s32.totalorder %v85_v15, %v89_v13 }
  0x17   :  { %vm94_vm10 = vmand %vm81_vm7, %vm90_vm8 }
  0x8a   :  { %v4189_v16 = vpop.permute.xlu0 %226 }
  0x8b   :  { %v4194_v18 = vpop.permute.xlu1 %236 }
  0x8e   :  { %v4196_v22 = vpop.permute.xlu0 %231 }
  0x8f   :  { %v4204_v27 = vpop.permute.xlu1 %241 }
  0xde   :  { %v3352_v19 = vpop.f32.mrb[0].mxu0 }
  0xdf   :  { %v211_v20 = vadd.f32 %v3352_v19, %v3048_v17  ;;  %v205_v21 = vpop.f32.mrb[1].mxu0  ;;  %v78_v19 = vadd.s32 24, %v4285_v6 }
  0xe0   :  { %v206_v23 = vadd.f32 %v3048_v17, %v205_v21 }
  0xe1   :  { %v4199_v24 = vmul.f32 %v4196_v22, %v211_v20  ;;  %v88_v21 = vshra.s32 %v78_v19, 4  ;;  %vm84_vm13 = vcmp.ge.s32.totalorder %v78_v19, %v80_v9 }
  0xe2   :  { %v4202_v25 = vmul.f32 %v4189_v16, %v206_v23  ;;  %v3355_v26 = vpop.f32.mrb[2].mxu0  ;;  %v4039_v23 = vmov -10000.0  }
  0xe3   :  { %v221_v28 = vadd.f32 %v3355_v26, %v3048_v17  ;;  %v215_v29 = vpop.f32.mrb[3].mxu0  ;;  %v4212_v32 = vmul.f32 %v4199_v24, %v4196_v22  ;;  %v4296_v26 = vsel %vm95_vm9, 0.0, %v4039_v23  ;;  %vm93_vm14 = vcmp.eq.s32.totalorder %v88_v21, %v89_v13 }
  0xe4   :  { %v216_v30 = vadd.f32 %v3048_v17, %v215_v29  ;;  %v4208_v31 = vmul.f32 %v4202_v25, %v4189_v16  ;;  %v4290_v17 = vadd.s32 16, %v4285_v6  ;;  %vm97_vm0 = vmand %vm84_vm13, %vm93_vm14 }
  0xe5   :  { %v4215_v33 = vmul.f32 %v4204_v27, %v221_v28  ;;  %v4298_v28 = vsel %vm94_vm10, 0.0, %v4039_v23 }
  0xe6   :  { %v4218_v34 = vmul.f32 %v4194_v18, %v216_v30  ;;  %3364 = vmatprep.mubr.msk.f32.mxu1 %vm263_vm2, %v4208_v31  ;;  %v87_v20 = vshra.s32 %v4290_v17, 4  ;;  %vm83_vm11 = vcmp.ge.s32.totalorder %v4290_v17, %v80_v9 }
  0xe7   :  { %3365 = vmatmul.mubr.msk.f32.vlgmr.msra.gmra.mrb[0].mxu1 %vm263_vm2, %v4212_v32  ;;  %v4230_v36 = vmul.f32 %v4215_v33, %v4204_v27 }
  0xe8   :  { %v4226_v35 = vmul.f32 %v4218_v34, %v4194_v18  ;;  %vm92_vm12 = vcmp.eq.s32.totalorder %v87_v20, %v89_v13 }
  0xe9   :  { %vm96_vm15 = vmand %vm83_vm11, %vm92_vm12  ;;  %vm1187_vm11 = vcmask 523264   ;;  %vm1211_vm12 = vcmask 785408  }
  0xea   :  { %3367 = vmatprep.mubr.msk.f32.mxu1 %vm263_vm2, %v4226_v35 }
  0xeb   :  { %3368 = vmatmul.mubr.msk.f32.gmra.mrb[2].mxu1 %vm263_vm2, %v4230_v36 }
 0x1ba   :  { %v3366_v38 = vpop.f32.mrb[0].mxu1 }
 0x1bb   :  { %v348_v39 = vadd.f32 %v3366_v38, %v3054_v37  ;;  %v342_v40 = vpop.f32.mrb[1].mxu1 }
 0x1bc   :  { %v343_v41 = vadd.f32 %v3054_v37, %v342_v40 }
 0x1be   :  { %v3369_v42 = vpop.f32.mrb[2].mxu1  ;;  %3378 = vmatprep.mubr.msk.f32.mxu0 %vm373_vm3, %v343_v41  ;;  %v4240_v43 = vpack.i.bf16 %v348_v39, %v343_v41 }
 0x1bf   :  { %v358_v44 = vadd.f32 %v3369_v42, %v3054_v37  ;;  %v352_v45 = vpop.f32.mrb[3].mxu1 }
 0x1c0   :  { %v353_v46 = vadd.f32 %v3054_v37, %v352_v45  ;;  %3852 = vrot.lane.b32.xlu0 %v4240_v43, %s4036_s21 }
 0x1c2   :  { %v4244_v47 = vpack.i.bf16 %v358_v44, %v353_v46 }
 0x1c4   :  { %3857 = vrot.lane.b32.xlu1 %v4244_v47, %s4036_s21  ;;  %3862 = vrot.lane.b32.xlu0 %v4240_v43, %s4037_s0 }
 0x1c8   :  { %3867 = vrot.lane.b32.xlu1 %v4244_v47, %s4037_s0  ;;  %628 = vrot.lane.b32.xlu0 %v343_v41, %s4038_s2  ;;  %v4306_v41 = vsel %vm96_vm15, 0.0, %v4039_v23 }
 0x1cc   :  { %630 = vrot.lane.b32.xlu1 %v348_v39, %s4038_s2  ;;  %632 = vrot.lane.b32.xlu0 %v353_v46, %s4038_s2 }
 0x1d0   :  { %634 = vrot.lane.b32.xlu1 %v358_v44, %s4038_s2 }
 0x232   :  { %v3853_v48 = vpop.permute.xlu0 %3852 }
 0x233   :  { %v3855_v49 = vunpack.i.h.bf16 %v3853_v48  ;;  %v3854_v50 = vunpack.i.l.bf16 %v3853_v48  ;;  %v4310_v48 = vsel %vm97_vm0, 0.0, %v4039_v23 }
 0x235   :  { %v3606_v52 = vpack.c.bf16 %v3855_v49, %v3854_v50 }
 0x236   :  { %v3858_v53 = vpop.permute.xlu1 %3857  ;;  %v3863_v56 = vpop.permute.xlu0 %3862 }
 0x237   :  { %v3860_v54 = vunpack.i.h.bf16 %v3858_v53  ;;  %v3859_v55 = vunpack.i.l.bf16 %v3858_v53  ;;  %3608 = vmatprep.subr.msk.bf16.mxu0 %vm4258_vm4, %v3606_v52  ;;  %v3865_v58 = vunpack.i.h.bf16 %v3863_v56  ;;  %v3864_v59 = vunpack.i.l.bf16 %v3863_v56 }
 0x238   :  { %3611 = vmatpush3.bf16.xpose.msk.msra.mxu0 %vm4258_vm4, %v3606_v52 }
 0x239   :  { %v3612_v57 = vpack.c.bf16 %v3860_v54, %v3859_v55  ;;  %v3626_v60 = vpack.c.bf16 %v3865_v58, %v3864_v59 }
 0x23a   :  { %v3868_v61 = vpop.permute.xlu1 %3867  ;;  %v629_v1 = vpop.permute.xlu0 %628 }
 0x23b   :  { %3614 = vmatprep.subr.msk.bf16.mxu0 %vm4258_vm4, %v3612_v57  ;;  %v3870_v62 = vunpack.i.h.bf16 %v3868_v61  ;;  %v3869_v63 = vunpack.i.l.bf16 %v3868_v61 }
 0x23d   :  { %v3632_v0 = vpack.c.bf16 %v3870_v62, %v3869_v63 }
 0x23e   :  { %v631_v2 = vpop.permute.xlu1 %630  ;;  %v633_v3 = vpop.permute.xlu0 %632 }
 0x240   :  { %3617 = vmatpush3.bf16.xpose.msk.msra.mxu0 %vm4258_vm4, %v3612_v57 }
 0x241   :  { %3628 = vmatprep.subr.msk.bf16.mxu0 %vm4258_vm4, %v3626_v60 }
 0x242   :  { %v635_v4 = vpop.permute.xlu1 %634 }
 0x247   :  { %3379 = vmatmul.mubr.msk.f32.vlgmr.msra.gmra.mrb[4].mxu0 %vm373_vm3, %v348_v39 }
 0x248   :  { %3381 = vmatprep.mubr.msk.f32.mxu0 %vm373_vm3, %v353_v46  ;;  %3631 = vmatpush3.bf16.xpose.msk.msra.mxu0 %vm4258_vm4, %v3626_v60 }
 0x249   :  { %3634 = vmatprep.subr.msk.bf16.mxu0 %vm4258_vm4, %v3632_v0 }
 0x24b   :  { %3382 = vmatmul.mubr.msk.f32.gmra.mrb[6].mxu0 %vm373_vm3, %v358_v44 }
 0x24c   :  { %3406 = vmatprep.mubr.msk.f32.mxu0 %vm373_vm3, %v629_v1 }
 0x250   :  { %3637 = vmatpush3.bf16.xpose.msk.msra.mxu0 %vm4258_vm4, %v3632_v0 }
 0x257   :  { %3407 = vmatmul.mubr.msk.f32.vlgmr.msra.gmra.mrb[8].mxu0 %vm373_vm3, %v631_v2 }
 0x258   :  { %3409 = vmatprep.mubr.msk.f32.mxu0 %vm373_vm3, %v633_v3 }
 0x25b   :  { %3410 = vmatmul.mubr.msk.f32.gmra.mrb[10].mxu0 %vm373_vm3, %v635_v4 }
 0x31a   :  { %v3380_v7 = vpop.f32.mrb[4].mxu0 }
 0x31b   :  { %v456_v10 = vpop.f32.mrb[5].mxu0  ;;  %v462_v55 = vadd.f32 %v3380_v7, %v4296_v26 }
 0x31c   :  { %v4303_v39 = vadd.f32 %v456_v10, %v4298_v28 }
 0x31d   :  { %v478_v58 = vsel %vm263_vm2, %v462_v55, -inf }
 0x31e   :  { %v3383_v11 = vpop.f32.mrb[6].mxu0  ;;  %v475_v50 = vsel %vm263_vm2, %v4303_v39, -inf }
 0x31f   :  { %v466_v14 = vpop.f32.mrb[7].mxu0  ;;  %v472_v57 = vadd.f32 %v3383_v11, %v4310_v48 }
 0x320   :  { %v467_v49 = vadd.f32 %v466_v14, %v4306_v41 }
 0x321   :  { %v484_v59 = vsel %vm263_vm2, %v472_v57, -inf }
 0x322   :  { %v481_v54 = vsel %vm263_vm2, %v467_v49, -inf }
 0x32a   :  { %v3408_v29 = vpop.f32.mrb[8].mxu0 }
 0x32b   :  { %v732_v30 = vadd.f32 %v3408_v29, %v4296_v26  ;;  %v726_v37 = vpop.f32.mrb[9].mxu0 }
 0x32c   :  { %v727_v38 = vadd.f32 %v726_v37, %v4298_v28 }
 0x32d   :  { %v748_v40 = vsel %vm263_vm2, %v732_v30, -inf }
 0x32e   :  { %749 = vmax.xlane.f32.xlu1 %v748_v40  ;;  %v3411_v42 = vpop.f32.mrb[10].mxu0  ;;  %v745_v44 = vsel %vm263_vm2, %v727_v38, -inf }
 0x32f   :  { %v736_v45 = vpop.f32.mrb[11].mxu0  ;;  %746 = vmax.xlane.f32.xlu0 %v745_v44  ;;  %v742_v52 = vadd.f32 %v3411_v42, %v4310_v48 }
 0x330   :  { %v737_v46 = vadd.f32 %v736_v45, %v4306_v41 }
 0x331   :  { %v754_v56 = vsel %vm263_vm2, %v742_v52, -inf }
 0x332   :  { %476 = vmax.xlane.f32.xlu1 %v475_v50  ;;  %v751_v53 = vsel %vm263_vm2, %v737_v46, -inf }
 0x333   :  { %752 = vmax.xlane.f32.xlu0 %v751_v53 }
 0x336   :  { %482 = vmax.xlane.f32.xlu1 %v481_v54 }
 0x337   :  { %755 = vmax.xlane.f32.xlu0 %v754_v56 }
 0x33b   :  { %479 = vmax.xlane.f32.xlu0 %v478_v58 }
 0x33f   :  { %485 = vmax.xlane.f32.xlu0 %v484_v59 }
 0x3bb   :  { %v750_v60 = vpop.xlane.xlu1 %749 }
 0x3bc   :  { %v758_v61 = vsub.f32 %v732_v30, %v750_v60  ;;  %v747_v62 = vpop.xlane.xlu0 %746 }
 0x3bd   :  { %v757_v63 = vsub.f32 %v727_v38, %v747_v62 }
 0x3be   :  { %v763_v0 = vmul.f32 1.442695, %v758_v61 }
 0x3bf   :  { %v761_v1 = vmul.f32 1.442695, %v757_v63  ;;  %v477_v20 = vpop.xlane.xlu1 %476 }
 0x3c0   :  { %3931 = vpow2.f32 %v763_v0  ;;  %v753_v2 = vpop.xlane.xlu0 %752  ;;  %v487_v23 = vsub.f32 %v4303_v39, %v477_v20 }
 0x3c1   :  { %3933 = vpow2.f32 %v761_v1  ;;  %v759_v3 = vsub.f32 %v737_v46, %v753_v2 }
 0x3c2   :  { %v491_v37 = vmul.f32 1.442695, %v487_v23 }
 0x3c3   :  { %v765_v4 = vmul.f32 1.442695, %v759_v3  ;;  %v483_v29 = vpop.xlane.xlu1 %482 }
 0x3c4   :  { %v756_v5 = vpop.xlane.xlu0 %755  ;;  %v489_v30 = vsub.f32 %v467_v49, %v483_v29 }
 0x3c5   :  { %3935 = vpow2.f32 %v765_v4  ;;  %v760_v7 = vsub.f32 %v742_v52, %v756_v5 }
 0x3c6   :  { %v495_v42 = vmul.f32 1.442695, %v489_v30 }
 0x3c7   :  { %v767_v8 = vmul.f32 1.442695, %v760_v7 }
 0x3c8   :  { %v480_v21 = vpop.xlane.xlu0 %479 }
 0x3c9   :  { %3937 = vpow2.f32 %v767_v8  ;;  %v488_v38 = vsub.f32 %v462_v55, %v480_v21 }
 0x3ca   :  { %v4323_v9 = vpop.eup %3931  ;;  %3939 = vpow2.f32 %v491_v37 }
 0x3cb   :  { %v3934_v10 = vpop.eup %3933  ;;  %v772_v11 = vsel %vm263_vm2, %v4323_v9, 0.0  ;;  %v493_v44 = vmul.f32 1.442695, %v488_v38  ;;  %3941 = vpow2.f32 %v495_v42 }
 0x3cc   :  { %773 = vadd.xlane.f32.xlu0 %v772_v11  ;;  %v769_v12 = vsel %vm263_vm2, %v3934_v10, 0.0  ;;  %v486_v40 = vpop.xlane.xlu0 %485 }
 0x3cd   :  { %770 = vadd.xlane.f32.xlu1 %v769_v12  ;;  %v490_v45 = vsub.f32 %v472_v57, %v486_v40  ;;  %3943 = vpow2.f32 %v493_v44 }
 0x3cf   :  { %v4328_v13 = vpop.eup %3935  ;;  %v497_v46 = vmul.f32 1.442695, %v490_v45 }
 0x3d0   :  { %v775_v14 = vsel %vm263_vm2, %v4328_v13, 0.0 }
 0x3d1   :  { %776 = vadd.xlane.f32.xlu1 %v775_v14  ;;  %3945 = vpow2.f32 %v497_v46 }
 0x3d3   :  { %v4332_v15 = vpop.eup %3937 }
 0x3d4   :  { %v778_v19 = vsel %vm263_vm2, %v4332_v15, 0.0  ;;  %v3940_v50 = vpop.eup %3939 }
 0x3d5   :  { %779 = vadd.xlane.f32.xlu0 %v778_v19  ;;  %v4341_v52 = vpop.eup %3941  ;;  %v499_v53 = vsel %vm263_vm2, %v3940_v50, 0.0 }
 0x3d6   :  { %v505_v49 = vsel %vm263_vm2, %v4341_v52, 0.0 }
 0x3d7   :  { %v4344_v54 = vpop.eup %3943 }
 0x3d8   :  { %v502_v39 = vsel %vm263_vm2, %v4344_v54, 0.0 }
 0x3db   :  { %v4350_v55 = vpop.eup %3945 }
 0x3dc   :  { %v508_v56 = vsel %vm263_vm2, %v4350_v55, 0.0 }
 0x3e2   :  { %3872 = vrot.lane.b32.xlu1 %v4240_v43, %s4040_s23 }
 0x3eb   :  { %3877 = vrot.lane.b32.xlu0 %v4244_v47, %s4040_s23 }
 0x406   :  { %500 = vadd.xlane.f32.xlu1 %v499_v53 }
 0x40a   :  { %503 = vadd.xlane.f32.xlu0 %v502_v39  ;;  %506 = vadd.xlane.f32.xlu1 %v505_v49  ;;  %v918_v49 = vld [vmem:[%s5220_s7] sm:$0xff] }
 0x40e   :  { %509 = vadd.xlane.f32.xlu0 %v508_v56  ;;  %v919_v56 = vld [vmem:[%s5220_s7 + $0x8] sm:$0xff] }
 0x41b   :  { %3882 = vrot.lane.b32.xlu1 %v4240_v43, %s4041_s24 }
 0x424   :  { %3887 = vrot.lane.b32.xlu0 %v4244_v47, %s4041_s24 }
 0x459   :  { %v774_v58 = vpop.xlane.xlu0 %773 }
 0x45a   :  { %v771_v57 = vpop.xlane.xlu1 %770 }
 0x45b   :  { %3947 = vrcp.f32 %v771_v57 }
 0x45c   :  { %3949 = vrcp.f32 %v774_v58 }
 0x45e   :  { %v777_v59 = vpop.xlane.xlu1 %776 }
 0x45f   :  { %3951 = vrcp.f32 %v777_v59 }
 0x462   :  { %v780_v60 = vpop.xlane.xlu0 %779  ;;  %v3873_v61 = vpop.permute.xlu1 %3872 }
 0x463   :  { %v3875_v62 = vunpack.i.h.bf16 %v3873_v61  ;;  %v3874_v63 = vunpack.i.l.bf16 %v3873_v61  ;;  %3953 = vrcp.f32 %v780_v60 }
 0x465   :  { %v3948_v0 = vpop.eup %3947  ;;  %v3638_v1 = vpack.c.bf16 %v3875_v62, %v3874_v63 }
 0x466   :  { %v3878_v2 = vpop.permute.xlu0 %3877  ;;  %v785_v3 = vmul.f32 %v3948_v0, %v3934_v10  ;;  %v3950_v5 = vpop.eup %3949 }
 0x467   :  { %v3880_v4 = vunpack.i.h.bf16 %v3878_v2  ;;  %v3879_v43 = vunpack.i.l.bf16 %v3878_v2  ;;  %3639 = vmatprep.subr.bf16.mxu0 %v3638_v1  ;;  %v786_v8 = vmul.f32 %v3950_v5, %v4323_v9 }
 0x468   :  { %3641 = vmatpush3.bf16.msra.mxu0 %v3638_v1  ;;  %3420 = vmatprep.mubr.msk.f32.mxu0 %vm263_vm2, %v785_v3 }
 0x469   :  { %v3642_v47 = vpack.c.bf16 %v3880_v4, %v3879_v43  ;;  %v3952_v7 = vpop.eup %3951 }
 0x46a   :  { %v787_v12 = vmul.f32 %v3952_v7, %v4328_v13 }
 0x46b   :  { %3643 = vmatprep.subr.bf16.mxu0 %v3642_v47 }
 0x46c   :  { %3645 = vmatpush3.bf16.msra.mxu0 %v3642_v47 }
 0x46d   :  { %v3954_v11 = vpop.eup %3953 }
 0x46e   :  { %v788_v10 = vmul.f32 %v3954_v11, %v4332_v15  ;;  %v3083_v11 = vld [vmem:[%s5221_s8] ss:$0 sm:$0xff] }
 0x46f   :  { %3421 = vmatmul.mubr.msk.f32.vlgmr.msra.gmra.mrb[12].mxu0 %vm263_vm2, %v786_v8 }
 0x470   :  { %3423 = vmatprep.mubr.msk.f32.mxu0 %vm263_vm2, %v787_v12 }
 0x473   :  { %3424 = vmatmul.mubr.msk.f32.gmra.mrb[14].mxu0 %vm263_vm2, %v788_v10 }
 0x493   :  { %v501_v14 = vpop.xlane.xlu1 %500 }
 0x494   :  { %3955 = vrcp.f32 %v501_v14 }
 0x497   :  { %v504_v19 = vpop.xlane.xlu0 %503  ;;  %v507_v20 = vpop.xlane.xlu1 %506 }
 0x498   :  { %3957 = vrcp.f32 %v504_v19 }
 0x499   :  { %3959 = vrcp.f32 %v507_v20 }
 0x49b   :  { %v510_v21 = vpop.xlane.xlu0 %509  ;;  %v3883_v23 = vpop.permute.xlu1 %3882 }
 0x49c   :  { %v3885_v9 = vunpack.i.h.bf16 %v3883_v23  ;;  %v3884_v29 = vunpack.i.l.bf16 %v3883_v23  ;;  %3961 = vrcp.f32 %v510_v21 }
 0x49e   :  { %v3956_v13 = vpop.eup %3955  ;;  %v3618_v30 = vpack.c.bf16 %v3885_v9, %v3884_v29 }
 0x49f   :  { %v3888_v37 = vpop.permute.xlu0 %3887  ;;  %v515_v38 = vmul.f32 %v3956_v13, %v3940_v50 }
 0x4a0   :  { %v3890_v40 = vunpack.i.h.bf16 %v3888_v37  ;;  %v3889_v42 = vunpack.i.l.bf16 %v3888_v37  ;;  %3619 = vmatprep.subr.bf16.mxu1 %v3618_v30 }
 0x4a1   :  { %3621 = vmatpush3.bf16.msra.mxu1 %v3618_v30  ;;  %3392 = vmatprep.mubr.msk.f32.mxu1 %vm263_vm2, %v515_v38 }
 0x4a2   :  { %v3622_v15 = vpack.c.bf16 %v3890_v40, %v3889_v42  ;;  %v3958_v44 = vpop.eup %3957 }
 0x4a3   :  { %v3960_v45 = vpop.eup %3959  ;;  %v516_v46 = vmul.f32 %v3958_v44, %v4344_v54  ;;  %v3646_v54 = vpack.c.bf16 %v919_v56, %v918_v49 }
 0x4a4   :  { %3623 = vmatprep.subr.bf16.mxu1 %v3622_v15  ;;  %v517_v39 = vmul.f32 %v3960_v45, %v4341_v52  ;;  %v920_v52 = vld [vmem:[%s5220_s7 + $0x10] sm:$0xff] }
 0x4a5   :  { %3625 = vmatpush3.bf16.msra.mxu1 %v3622_v15  ;;  %3647 = vmatprep.subr.bf16.mxu0 %v3646_v54 }
 0x4a6   :  { %v3962_v53 = vpop.eup %3961  ;;  %3649 = vmatpush3.bf16.msra.mxu0 %v3646_v54 }
 0x4a7   :  { %v518_v50 = vmul.f32 %v3962_v53, %v4350_v55  ;;  %v921_v55 = vld [vmem:[%s5220_s7 + $0x18] sm:$0xff] }
 0x4a8   :  { %3393 = vmatmul.mubr.msk.f32.vlgmr.msra.gmra.mrb[4].mxu1 %vm263_vm2, %v516_v46  ;;  %v3650_v57 = vpack.c.bf16 %v921_v55, %v920_v52 }
 0x4a9   :  { %3395 = vmatprep.mubr.msk.f32.mxu1 %vm263_vm2, %v517_v39 }
 0x4aa   :  { %3651 = vmatprep.subr.bf16.mxu0 %v3650_v57 }
 0x4ab   :  { %3653 = vmatpush3.bf16.msra.mxu0 %v3650_v57 }
 0x4ac   :  { %3396 = vmatmul.mubr.msk.f32.gmra.mrb[6].mxu1 %vm263_vm2, %v518_v50 }
 0x542   :  { %v3422_v58 = vpop.f32.mrb[12].mxu0 }
 0x543   :  { %v879_v59 = vpop.f32.mrb[13].mxu0 }
 0x544   :  { %902 = vrot.lane.b32.xlu1 %v879_v59, %s5237_s4 }
 0x546   :  { %v3425_v60 = vpop.f32.mrb[14].mxu0 }
 0x547   :  { %v889_v61 = vpop.f32.mrb[15].mxu0 }
 0x548   :  { %904 = vrot.lane.b32.xlu1 %v3422_v58, %s5237_s4  ;;  %906 = vrot.lane.b32.xlu0 %v889_v61, %s5237_s4 }
 0x54c   :  { %908 = vrot.lane.b32.xlu1 %v3425_v60, %s5237_s4 }
 0x57b   :  { %v3394_v62 = vpop.f32.mrb[4].mxu1 }
 0x57c   :  { %v609_v63 = vpop.f32.mrb[5].mxu1 }
 0x57f   :  { %v3397_v0 = vpop.f32.mrb[6].mxu1 }
 0x580   :  { %v619_v1 = vpop.f32.mrb[7].mxu1 }
 0x5b6   :  { %v903_v2 = vpop.permute.xlu1 %902 }
 0x5b7   :  { %v914_v3 = vsel %vm373_vm3, %v609_v63, %v903_v2  ;;  %v1193_v63 = vld [vmem:[%s5222_s11 + $0x8] sm:$0xff]  ;;  %v1195_v2 = vld [vmem:[%s5222_s11 + $0x18] sm:$0xff] }
 0x5b8   :  { %3434 = vmatprep.mubr.msk.f32.mxu0 %vm263_vm2, %v914_v3 }
 0x5ba   :  { %v905_v4 = vpop.permute.xlu1 %904  ;;  %v907_v43 = vpop.permute.xlu0 %906 }
 0x5bb   :  { %v915_v47 = vsel %vm373_vm3, %v3394_v62, %v905_v4  ;;  %v916_v5 = vsel %vm373_vm3, %v619_v1, %v907_v43  ;;  %v1192_v62 = vld [vmem:[%s5222_s11] sm:$0xff]  ;;  %v1197_v43 = vld [vmem:[%s5222_s11 + $0x28] sm:$0xff] }
 0x5bc   :  { %3435 = vmatmul.mubr.msk.f32.vlgmr.msra.gmra.mrb[16].mxu0 %vm263_vm2, %v915_v47  ;;  %v3654_v1 = vpack.c.bf16 %v1193_v63, %v1192_v62  ;;  %v1196_v4 = vld [vmem:[%s5222_s11 + $0x20] sm:$0xff]  ;;  %v102_v63 = vand.u32 15, %v4285_v6 }
 0x5bd   :  { %3437 = vmatprep.mubr.msk.f32.mxu0 %vm263_vm2, %v916_v5  ;;  %v3662_v47 = vpack.c.bf16 %v1197_v43, %v1196_v4  ;;  %v1198_v5 = vld [vmem:[%s5222_s11 + $0x30] sm:$0xff] }
 0x5be   :  { %v909_v7 = vpop.permute.xlu1 %908  ;;  %3655 = vmatprep.subr.bf16.mxu1 %v3654_v1  ;;  %vm4501_vm7 = vcmp.ge.s32.totalorder %v102_v63, 1  ;;  %vm4529_vm9 = vcmp.ge.s32.totalorder %v102_v63, 2  ;;  %v1362_v63 = vld [vmem:[%s5225_s13 + $0x8] sm:$0xff] }
 0x5bf   :  { %v917_v8 = vsel %vm373_vm3, %v3397_v0, %v909_v7  ;;  %v1194_v0 = vld [vmem:[%s5222_s11 + $0x10] sm:$0xff]  ;;  %3657 = vmatpush3.bf16.msra.mxu1 %v3654_v1  ;;  %v1199_v7 = vld [vmem:[%s5222_s11 + $0x38] sm:$0xff] }
 0x5c0   :  { %3438 = vmatmul.mubr.msk.f32.gmra.mrb[18].mxu0 %vm263_vm2, %v917_v8  ;;  %v3658_v3 = vpack.c.bf16 %v1195_v2, %v1194_v0  ;;  %v3666_v8 = vpack.c.bf16 %v1199_v7, %v1198_v5  ;;  %v104_v2 = vand.u32 15, %v4290_v17 }
 0x5c2   :  { %3659 = vmatprep.subr.bf16.mxu1 %v3658_v3  ;;  %vm4508_vm8 = vcmp.ge.s32.totalorder %v104_v2, 1  ;;  %vm4533_vm10 = vcmp.ge.s32.totalorder %v104_v2, 2  ;;  %v1364_v2 = vld [vmem:[%s5225_s13 + $0x18] sm:$0xff] }
 0x5c3   :  { %3661 = vmatpush3.bf16.msra.mxu1 %v3658_v3 }
 0x5c4   :  { %3663 = vmatprep.subr.bf16.mxu1 %v3662_v47 }
 0x5c7   :  { %3665 = vmatpush3.bf16.msra.mxu1 %v3662_v47 }
 0x5c8   :  { %3667 = vmatprep.subr.bf16.mxu1 %v3666_v8 }
 0x5cb   :  { %3669 = vmatpush3.bf16.msra.mxu1 %v3666_v8 }
 0x68f   :  { %v3436_v12 = vpop.f32.mrb[16].mxu0 }
 0x690   :  { %v1007_v10 = vpop.f32.mrb[17].mxu0  ;;  %v1013_v14 = vadd.f32 %v3436_v12, %v3083_v11 }
 0x691   :  { %v1008_v19 = vadd.f32 %v3083_v11, %v1007_v10 }
 0x692   :  { %v1027_v30 = vadd.f32 %v1013_v14, %v4212_v32 }
 0x693   :  { %v3439_v20 = vpop.f32.mrb[18].mxu0  ;;  %v1026_v21 = vadd.f32 %v1008_v19, %v4208_v31 }
 0x694   :  { %v1023_v23 = vadd.f32 %v3439_v20, %v3083_v11  ;;  %v1017_v9 = vpop.f32.mrb[19].mxu0  ;;  %v1035_v40 = vsel %vm263_vm2, %v1027_v30, 0.0 }
 0x695   :  { %v1018_v29 = vadd.f32 %v3083_v11, %v1017_v9  ;;  %v1032_v13 = vsel %vm263_vm2, %v1026_v21, 0.0 }
 0x696   :  { %1033 = vadd.xlane.f32.xlu0 %v1032_v13  ;;  %v1029_v37 = vadd.f32 %v1023_v23, %v4230_v36 }
 0x697   :  { %v1028_v42 = vadd.f32 %v1018_v29, %v4226_v35 }
 0x698   :  { %v1041_v38 = vsel %vm263_vm2, %v1029_v37, 0.0 }
 0x699   :  { %1042 = vadd.xlane.f32.xlu1 %v1041_v38  ;;  %v1038_v31 = vsel %vm263_vm2, %v1028_v42, 0.0  ;;  %v3088_v38 = vld [vmem:[%s5223_s9] ss:$0 sm:$0xff] }
 0x69a   :  { %1036 = vadd.xlane.f32.xlu0 %v1035_v40 }
 0x69e   :  { %1039 = vadd.xlane.f32.xlu0 %v1038_v31  ;;  %v1201_v31 = vld [vmem:[%s5222_s11 + $0x48] sm:$0xff] }
 0x723   :  { %v1034_v15 = vpop.xlane.xlu0 %1033 }
 0x724   :  { %v1045_v44 = vmul.f32 0.03125, %v1034_v15  ;;  %v3089_v15 = vld [vmem:[%s5224_s10] ss:$0 sm:$0xff] }
 0x726   :  { %v4407_v45 = vsub.f32 %v1026_v21, %v1045_v44  ;;  %v1043_v46 = vpop.xlane.xlu1 %1042 }
 0x727   :  { %v1048_v32 = vmul.f32 0.03125, %v1043_v46  ;;  %v1037_v53 = vpop.xlane.xlu0 %1036 }
 0x728   :  { %v1046_v39 = vmul.f32 0.03125, %v1037_v53  ;;  %v1053_v36 = vmul.f32 %v4407_v45, %v4407_v45 }
 0x729   :  { %v4411_v50 = vsub.f32 %v1029_v37, %v1048_v32 }
 0x72a   :  { %v4413_v49 = vsub.f32 %v1027_v30, %v1046_v39  ;;  %v1057_v35 = vsel %vm263_vm2, %v1053_v36, 0.0  ;;  %v1203_v36 = vld [vmem:[%s5222_s11 + $0x58] sm:$0xff] }
 0x72b   :  { %1058 = vadd.xlane.f32.xlu1 %v1057_v35  ;;  %v1040_v56 = vpop.xlane.xlu0 %1039  ;;  %v1056_v54 = vmul.f32 %v4411_v50, %v4411_v50 }
 0x72c   :  { %v1047_v52 = vmul.f32 0.03125, %v1040_v56  ;;  %v1054_v55 = vmul.f32 %v4413_v49, %v4413_v49 }
 0x72d   :  { %v1066_v57 = vsel %vm263_vm2, %v1056_v54, 0.0 }
 0x72e   :  { %v4421_v58 = vsub.f32 %v1028_v42, %v1047_v52  ;;  %1067 = vadd.xlane.f32.xlu0 %v1066_v57  ;;  %v1060_v59 = vsel %vm263_vm2, %v1054_v55, 0.0  ;;  %v1200_v42 = vld [vmem:[%s5222_s11 + $0x40] sm:$0xff] }
 0x72f   :  { %1061 = vadd.xlane.f32.xlu1 %v1060_v59  ;;  %v3670_v44 = vpack.c.bf16 %v1201_v31, %v1200_v42 }
 0x730   :  { %v1055_v60 = vmul.f32 %v4421_v58, %v4421_v58 }
 0x731   :  { %3671 = vmatprep.subr.bf16.mxu1 %v3670_v44 }
 0x732   :  { %v1063_v61 = vsel %vm263_vm2, %v1055_v60, 0.0  ;;  %3673 = vmatpush3.bf16.msra.mxu1 %v3670_v44 }
 0x733   :  { %1064 = vadd.xlane.f32.xlu0 %v1063_v61 }
 0x7b8   :  { %v1059_v11 = vpop.xlane.xlu1 %1058 }
 0x7b9   :  { %v1069_v12 = vmul.f32 0.03125, %v1059_v11 }
 0x7bb   :  { %v1073_v10 = vadd.f32 1e-05, %v1069_v12  ;;  %v1068_v14 = vpop.xlane.xlu0 %1067 }
 0x7bc   :  { %v1072_v19 = vmul.f32 0.03125, %v1068_v14  ;;  %v1062_v20 = vpop.xlane.xlu1 %1061 }
 0x7bd   :  { %3963 = vrsqrt.f32 %v1073_v10  ;;  %v1070_v21 = vmul.f32 0.03125, %v1062_v20 }
 0x7be   :  { %v1076_v23 = vadd.f32 1e-05, %v1072_v19 }
 0x7bf   :  { %v1074_v9 = vadd.f32 1e-05, %v1070_v21 }
 0x7c0   :  { %3965 = vrsqrt.f32 %v1076_v23  ;;  %v1065_v29 = vpop.xlane.xlu0 %1064 }
 0x7c1   :  { %3967 = vrsqrt.f32 %v1074_v9  ;;  %v1071_v13 = vmul.f32 0.03125, %v1065_v29 }
 0x7c3   :  { %v1075_v30 = vadd.f32 1e-05, %v1071_v13 }
 0x7c5   :  { %3969 = vrsqrt.f32 %v1075_v30 }
 0x7c7   :  { %v3964_v37 = vpop.eup %3963 }
 0x7c8   :  { %v1081_v40 = vmul.f32 %v3964_v37, %v4407_v45  ;;  %v1202_v45 = vld [vmem:[%s5222_s11 + $0x50] sm:$0xff] }
 0x7c9   :  { %v3674_v54 = vpack.c.bf16 %v1203_v36, %v1202_v45 }
 0x7ca   :  { %v3966_v46 = vpop.eup %3965  ;;  %v1091_v32 = vmul.f32 %v3088_v38, %v1081_v40 }
 0x7cb   :  { %v3968_v53 = vpop.eup %3967  ;;  %v1084_v39 = vmul.f32 %v3966_v46, %v4411_v50  ;;  %3675 = vmatprep.subr.bf16.mxu1 %v3674_v54 }
 0x7cc   :  { %v1082_v35 = vmul.f32 %v3968_v53, %v4413_v49  ;;  %v4472_v56 = vadd.f32 %v3089_v15, %v1091_v32  ;;  %3677 = vmatpush3.bf16.msra.mxu1 %v3674_v54 }
 0x7cd   :  { %v1094_v52 = vmul.f32 %v3088_v38, %v1084_v39 }
 0x7ce   :  { %v1092_v55 = vmul.f32 %v3088_v38, %v1082_v35  ;;  %v1105_v50 = vmul.f32 %v4472_v56, %v4189_v16 }
 0x7cf   :  { %v3970_v57 = vpop.eup %3969  ;;  %v4476_v59 = vadd.f32 %v3089_v15, %v1094_v52 }
 0x7d0   :  { %v1083_v60 = vmul.f32 %v3970_v57, %v4421_v58  ;;  %v4479_v61 = vadd.f32 %v3089_v15, %v1092_v55  ;;  %v1130_v1 = vrot.slane %v1105_v50, 7  ;;  %v1109_v58 = vrot.slane %v1105_v50, 6 }
 0x7d1   :  { %v1108_v49 = vmul.f32 %v4476_v59, %v4204_v27 }
 0x7d2   :  { %v1106_v62 = vmul.f32 %v4479_v61, %v4196_v22  ;;  %v1093_v0 = vmul.f32 %v3088_v38, %v1083_v60 }
 0x7d3   :  { %v1112_v3 = vrot.slane %v1108_v49, 6  ;;  %v1133_v43 = vrot.slane %v1108_v49, 7 }
 0x7d4   :  { %1173 = vrot.lane.b32.xlu1 %v1106_v62, %s4041_s24  ;;  %v1131_v4 = vrot.slane %v1106_v62, 7  ;;  %v4490_v47 = vadd.f32 %v3089_v15, %v1093_v0  ;;  %v1110_v5 = vrot.slane %v1106_v62, 6  ;;  %v1361_v62 = vld [vmem:[%s5225_s13] sm:$0xff]  ;;  %v1363_v0 = vld [vmem:[%s5225_s13 + $0x10] sm:$0xff] }
 0x7d5   :  { %v1117_v7 = vsel %vm1113_vm5, %v1112_v3, %v1109_v58  ;;  %v1138_v10 = vsel %vm1134_vm6, %v1133_v43, %v1130_v1 }
 0x7d6   :  { %v1137_v8 = vsel %vm1134_vm6, %v1130_v1, %v1131_v4  ;;  %v1107_v11 = vmul.f32 %v4490_v47, %v4194_v18  ;;  %v1116_v17 = vsel %vm1113_vm5, %v1109_v58, %v1110_v5  ;;  %v1147_v29 = vsel %vm4501_vm7, %v1138_v10, 0.0 }
 0x7d7   :  { %1157 = vrot.lane.b32.xlu0 %v1137_v8, %s5239_s20  ;;  %v1126_v46 = vsel %vm4529_vm9, %v1117_v7, 0.0  ;;  %v3679_v1 = vpack.c.bf16 %v1362_v63, %v1361_v62  ;;  %v3682_v58 = vpack.c.bf16 %v1364_v2, %v1363_v0  ;;  %v1368_v7 = vld [vmem:[%s5225_s13 + $0x38] sm:$0xff] }
 0x7d8   :  { %1171 = vrot.lane.b32.xlu1 %v1105_v50, %s4041_s24  ;;  %v1132_v19 = vrot.slane %v1107_v11, 7  ;;  %v1111_v20 = vrot.slane %v1107_v11, 6 }
 0x7da   :  { %v1136_v21 = vsel %vm1134_vm6, %v1131_v4, %v1132_v19  ;;  %v1115_v23 = vsel %vm1113_vm5, %v1110_v5, %v1111_v20  ;;  %v1114_v9 = vsel %vm1113_vm5, %v1111_v20, %v1112_v3  ;;  %v1135_v30 = vsel %vm1134_vm6, %v1132_v19, %v1133_v43  ;;  %v1365_v3 = vld [vmem:[%s5225_s13 + $0x20] sm:$0xff]  ;;  %v1366_v4 = vld [vmem:[%s5225_s13 + $0x28] sm:$0xff]  ;;  %v1367_v5 = vld [vmem:[%s5225_s13 + $0x30] sm:$0xff] }
 0x7db   :  { %v1149_v13 = vsel %vm4508_vm8, %v1136_v21, 0.0  ;;  %v1128_v36 = vsel %vm4533_vm10, %v1115_v23, 0.0  ;;  %v3685_v43 = vpack.c.bf16 %v1366_v4, %v1365_v3  ;;  %v3688_v8 = vpack.c.bf16 %v1368_v7, %v1367_v5  ;;  %v1371_v19 = vld [vmem:[%s5225_s13 + $0x50] sm:$0xff]  ;;  %v1372_v20 = vld [vmem:[%s5225_s13 + $0x58] sm:$0xff]  ;;  %v1373_v23 = vld [vmem:[%s5225_s13 + $0x60] sm:$0xff] }
 0x7dc   :  { %1155 = vrot.lane.b32.xlu1 %v1147_v29, %s5239_s20  ;;  %1159 = vrot.lane.b32.xlu0 %v1149_v13, %s5239_s20  ;;  %v3694_v21 = vpack.c.bf16 %v1372_v20, %v1371_v19  ;;  %v1375_v13 = vld [vmem:[%s5225_s13 + $0x70] sm:$0xff] }
 0x7e0   :  { %1175 = vrot.lane.b32.xlu0 %v1107_v11, %s4041_s24  ;;  %1161 = vrot.lane.b32.xlu1 %v1135_v30, %s5239_s20  ;;  %v1369_v11 = vld [vmem:[%s5225_s13 + $0x40] sm:$0xff]  ;;  %v1376_v30 = vld [vmem:[%s5225_s13 + $0x78] sm:$0xff] }
 0x7e4   :  { %1177 = vrot.lane.b32.xlu1 %v1108_v49, %s4041_s24  ;;  %v4044_v49 = vmov 0.0|0.0  }
 0x7e5   :  { %3678 = vmatprep.subr.bf16.mxu0 %v4044_v49 }
 0x7e6   :  { %3680 = vmatpush1.bf16.msra.mxu0 %v3679_v1 }
 0x7e7   :  { %3681 = vmatprep.subr.bf16.mxu0 %v4044_v49 }
 0x7ea   :  { %3683 = vmatpush1.bf16.msra.mxu0 %v3682_v58 }
 0x7eb   :  { %3684 = vmatprep.subr.bf16.mxu0 %v4044_v49 }
 0x7ee   :  { %3686 = vmatpush1.bf16.msra.mxu0 %v3685_v43 }
 0x7ef   :  { %3687 = vmatprep.subr.bf16.mxu0 %v4044_v49 }
 0x7f2   :  { %3689 = vmatpush1.bf16.msra.mxu0 %v3688_v8 }
 0x7f3   :  { %3690 = vmatprep.subr.bf16.mxu0 %v4044_v49 }
 0x846   :  { %v1174_v37 = vpop.permute.xlu1 %1173 }
 0x849   :  { %v1158_v38 = vpop.permute.xlu0 %1157 }
 0x84a   :  { %v1172_v40 = vpop.permute.xlu1 %1171  ;;  %v1184_v15 = vsel %vm263_vm2, %v1116_v17, %v1158_v38  ;;  %v1370_v17 = vld [vmem:[%s5225_s13 + $0x48] sm:$0xff]  ;;  %v1377_v38 = vld [vmem:[%s5225_s13 + $0x80] sm:$0xff] }
 0x84b   :  { %v1189_v45 = vsel %vm1187_vm11, %v1184_v15, %v1174_v37  ;;  %v3691_v10 = vpack.c.bf16 %v1370_v17, %v1369_v11  ;;  %v3700_v37 = vpack.c.bf16 %v1376_v30, %v1375_v13 }
 0x84d   :  { %3692 = vmatpush1.bf16.msra.mxu0 %v3691_v10 }
 0x84e   :  { %v1156_v44 = vpop.permute.xlu1 %1155  ;;  %v1160_v32 = vpop.permute.xlu0 %1159  ;;  %3693 = vmatprep.subr.bf16.mxu0 %v4044_v49 }
 0x84f   :  { %v1183_v53 = vsel %vm263_vm2, %v1126_v46, %v1156_v44  ;;  %v1185_v35 = vsel %vm263_vm2, %v1128_v36, %v1160_v32  ;;  %v1379_v44 = vld [vmem:[%s5225_s13 + $0x90] sm:$0xff]  ;;  %v1380_v46 = vld [vmem:[%s5225_s13 + $0x98] sm:$0xff] }
 0x850   :  { %v1188_v39 = vsel %vm1187_vm11, %v1183_v53, %v1172_v40  ;;  %v1378_v40 = vld [vmem:[%s5225_s13 + $0x88] sm:$0xff]  ;;  %v3706_v32 = vpack.c.bf16 %v1380_v46, %v1379_v44  ;;  %v1381_v53 = vld [vmem:[%s5225_s13 + $0xa0] sm:$0xff]  ;;  %v1383_v36 = vld [vmem:[%s5225_s13 + $0xb0] sm:$0xff] }
 0x851   :  { %3464 = vmatprep.mubr.msk.f32.mxu1 %vm1211_vm12, %v1188_v39  ;;  %3695 = vmatpush1.bf16.msra.mxu0 %v3694_v21  ;;  %v3703_v15 = vpack.c.bf16 %v1378_v40, %v1377_v38  ;;  %v1382_v39 = vld [vmem:[%s5225_s13 + $0xa8] sm:$0xff] }
 0x852   :  { %v1162_v54 = vpop.permute.xlu1 %1161  ;;  %3465 = vmatmul.mubr.msk.f32.vlgmr.msra.gmra.mrb[8].mxu1 %vm1211_vm12, %v1189_v45  ;;  %v1176_v52 = vpop.permute.xlu0 %1175  ;;  %3696 = vmatprep.subr.bf16.mxu0 %v4044_v49  ;;  %v3709_v45 = vpack.c.bf16 %v1382_v39, %v1381_v53 }
 0x853   :  { %v1190_v55 = vsel %vm1187_vm11, %v1185_v35, %v1176_v52  ;;  %v1186_v57 = vsel %vm263_vm2, %v1114_v9, %v1162_v54  ;;  %v1374_v9 = vld [vmem:[%s5225_s13 + $0x68] sm:$0xff]  ;;  %v1384_v35 = vld [vmem:[%s5225_s13 + $0xb8] sm:$0xff]  ;;  %v3090_v54 = vld [vmem:[%s5226_s12] ss:$0 sm:$0xff] }
 0x854   :  { %3467 = vmatprep.mubr.msk.f32.mxu1 %vm1211_vm12, %v1190_v55  ;;  %v3697_v29 = vpack.c.bf16 %v1374_v9, %v1373_v23  ;;  %v3712_v52 = vpack.c.bf16 %v1384_v35, %v1383_v36 }
 0x856   :  { %v1178_v50 = vpop.permute.xlu1 %1177  ;;  %3698 = vmatpush1.bf16.msra.mxu0 %v3697_v29 }
 0x857   :  { %v1191_v60 = vsel %vm1187_vm11, %v1186_v57, %v1178_v50  ;;  %3699 = vmatprep.subr.bf16.mxu0 %v4044_v49 }
 0x858   :  { %3468 = vmatmul.mubr.msk.f32.gmra.mrb[10].mxu1 %vm1211_vm12, %v1191_v60 }
 0x85a   :  { %3701 = vmatpush1.bf16.msra.mxu0 %v3700_v37 }
 0x85b   :  { %3702 = vmatprep.subr.bf16.mxu0 %v4044_v49 }
 0x85e   :  { %3704 = vmatpush1.bf16.msra.mxu0 %v3703_v15 }
 0x85f   :  { %3705 = vmatprep.subr.bf16.mxu0 %v4044_v49 }
 0x862   :  { %3707 = vmatpush1.bf16.msra.mxu0 %v3706_v32 }
 0x863   :  { %3708 = vmatprep.subr.bf16.mxu0 %v4044_v49 }
 0x866   :  { %3710 = vmatpush1.bf16.msra.mxu0 %v3709_v45 }
 0x867   :  { %3711 = vmatprep.subr.bf16.mxu0 %v4044_v49 }
 0x86a   :  { %3713 = vmatpush1.bf16.msra.mxu0 %v3712_v52 }
 0x925   :  { %v3466_v55 = vpop.f32.mrb[8].mxu1 }
 0x926   :  { %v1296_v57 = vadd.f32 %v3466_v55, %v3090_v54  ;;  %v1290_v50 = vpop.f32.mrb[9].mxu1 }
 0x927   :  { %v1291_v60 = vadd.f32 %v3090_v54, %v1290_v50 }
 0x928   :  { %v1310_v62 = vmax.f32 %v1296_v57, 0.0 }
 0x929   :  { %v1309_v63 = vmax.f32 %v1291_v60, 0.0  ;;  %v3095_v60 = vld [vmem:[%s5227_s14] ss:$0 sm:$0xff] }
 0x92a   :  { %v1314_v0 = vmul.f32 %v1310_v62, %v4196_v22 }
 0x92b   :  { %v1313_v1 = vmul.f32 %v1309_v63, %v4189_v16  ;;  %v3469_v2 = vpop.f32.mrb[10].mxu1 }
 0x92c   :  { %v1306_v58 = vadd.f32 %v3469_v2, %v3090_v54  ;;  %v1300_v3 = vpop.f32.mrb[11].mxu1  ;;  %v1330_v4 = vrot.slane %v1314_v0, 7  ;;  %v1318_v40 = vrot.slane %v1314_v0, 6 }
 0x92d   :  { %v1301_v43 = vadd.f32 %v3090_v54, %v1300_v3  ;;  %3096 = vmatprep.mubr.msk.f32.mxu0 %vm1187_vm11, %v1313_v1  ;;  %v1329_v5 = vrot.slane %v1313_v1, 7  ;;  %v1317_v37 = vrot.slane %v1313_v1, 6 }
 0x92e   :  { %v1312_v7 = vmax.f32 %v1306_v58, 0.0 }
 0x92f   :  { %v1311_v8 = vmax.f32 %v1301_v43, 0.0  ;;  %v1335_v11 = vsel %vm1134_vm6, %v1329_v5, %v1330_v4  ;;  %v1323_v39 = vsel %vm1113_vm5, %v1317_v37, %v1318_v40 }
 0x930   :  { %v1316_v17 = vmul.f32 %v1312_v7, %v4204_v27  ;;  %1347 = vrot.lane.b32.xlu1 %v1335_v11, %s4041_s24 }
 0x931   :  { %v1315_v10 = vmul.f32 %v1311_v8, %v4194_v18 }
 0x932   :  { %v1332_v19 = vrot.slane %v1316_v17, 7  ;;  %v1320_v30 = vrot.slane %v1316_v17, 6 }
 0x933   :  { %v1331_v20 = vrot.slane %v1315_v10, 7  ;;  %v1319_v46 = vrot.slane %v1315_v10, 6 }
 0x934   :  { %v1336_v21 = vsel %vm1134_vm6, %v1332_v19, %v1329_v5  ;;  %v1324_v38 = vsel %vm1113_vm5, %v1320_v30, %v1317_v37 }
 0x935   :  { %v1337_v23 = vsel %vm4501_vm7, %v1336_v21, 0.0  ;;  %v1333_v9 = vsel %vm1134_vm6, %v1331_v20, %v1332_v19  ;;  %v1334_v29 = vsel %vm1134_vm6, %v1330_v4, %v1331_v20  ;;  %v1325_v44 = vsel %vm4529_vm9, %v1324_v38, 0.0 }
 0x936   :  { %1345 = vrot.lane.b32.xlu0 %v1337_v23, %s4041_s24  ;;  %1351 = vrot.lane.b32.xlu1 %v1333_v9, %s4041_s24  ;;  %v1339_v13 = vsel %vm4508_vm8, %v1334_v29, 0.0  ;;  %v1322_v36 = vsel %vm1113_vm5, %v1318_v40, %v1319_v46  ;;  %v1321_v57 = vsel %vm1113_vm5, %v1319_v46, %v1320_v30 }
 0x937   :  { %v1327_v54 = vsel %vm4533_vm10, %v1322_v36, 0.0 }
 0x93a   :  { %1349 = vrot.lane.b32.xlu0 %v1339_v13, %s4041_s24 }
 0x9a2   :  { %v1348_v53 = vpop.permute.xlu1 %1347 }
 0x9a3   :  { %v1358_v45 = vsel %vm1187_vm11, %v1323_v39, %v1348_v53 }
 0x9a8   :  { %v1346_v15 = vpop.permute.xlu0 %1345  ;;  %v1352_v55 = vpop.permute.xlu1 %1351 }
 0x9a9   :  { %v1357_v32 = vsel %vm1187_vm11, %v1325_v44, %v1346_v15  ;;  %v1360_v50 = vsel %vm1187_vm11, %v1321_v57, %v1352_v55 }
 0x9aa   :  { %1469 = vmatmul.mubr.f32.vlgmr.msra.gmra.mrb[20].mxu0 %v1357_v32 }
 0x9ab   :  { %3097 = vmatprep.mubr.msk.f32.mxu0 %vm1187_vm11, %v1314_v0 }
 0x9ac   :  { %v1350_v35 = vpop.permute.xlu0 %1349 }
 0x9ad   :  { %v1359_v52 = vsel %vm1187_vm11, %v1327_v54, %v1350_v35 }
 0x9ae   :  { %1474 = vmatmul.mubr.f32.gmra.mrb[22].mxu0 %v1358_v45 }
 0x9af   :  { %3098 = vmatprep.mubr.msk.f32.mxu0 %vm1187_vm11, %v1315_v10 }
 0x9b2   :  { %1479 = vmatmul.mubr.f32.gmra.mrb[24].mxu0 %v1359_v52 }
 0x9b3   :  { %3099 = vmatprep.mubr.msk.f32.mxu0 %vm1187_vm11, %v1316_v17 }
 0x9b6   :  { %1484 = vmatmul.mubr.f32.gmra.mrb[26].mxu0 %v1360_v50 }
 0xa7d   :  { %v1470_v62 = vpop.f32.mrb[20].mxu0 }
 0xa7e   :  { %v1471_v63 = vadd.f32 %v3095_v60, %v1470_v62  ;;  %v1472_v0 = vpop.f32.mrb[21].mxu0  ;;  %v3103_v62 = vld [vmem:[%s5248_s25 + $0x28] sm:$0xff] }
 0xa7f   :  { %v3104_v0 = vld [vmem:[%s5248_s25 + $0x30] sm:$0xff] }
 0xa80   :  { %v1489_v1 = vmul.f32 %v1471_v63, %v4189_v16 }
 0xa81   :  { %v1475_v2 = vpop.f32.mrb[22].mxu0 }
 0xa82   :  { %v1476_v58 = vadd.f32 %v3095_v60, %v1475_v2  ;;  %v1477_v3 = vpop.f32.mrb[23].mxu0  ;;  %v1493_v4 = vadd.f32 %v1489_v1, %v4472_v56  ;;  %v3105_v1 = vld [vmem:[%s5248_s25 + $0x38] sm:$0xff] }
 0xa83   :  { %v3718_v2 = vpack.c.bf16 %v3105_v1, %v3104_v0 }
 0xa84   :  { %v1490_v43 = vmul.f32 %v1476_v58, %v4196_v22  ;;  %v1499_v5 = vsel %vm263_vm2, %v1493_v4, 0.0 }
 0xa85   :  { %1500 = vadd.xlane.f32.xlu0 %v1499_v5  ;;  %v1480_v7 = vpop.f32.mrb[24].mxu0 }
 0xa86   :  { %v1481_v8 = vadd.f32 %v3095_v60, %v1480_v7  ;;  %v1482_v11 = vpop.f32.mrb[25].mxu0  ;;  %v1494_v17 = vadd.f32 %v1490_v43, %v4479_v61 }
 0xa88   :  { %v1491_v10 = vmul.f32 %v1481_v8, %v4194_v18  ;;  %v1502_v19 = vsel %vm263_vm2, %v1494_v17, 0.0 }
 0xa89   :  { %1503 = vadd.xlane.f32.xlu1 %v1502_v19  ;;  %v1485_v20 = vpop.f32.mrb[26].mxu0 }
 0xa8a   :  { %v1486_v21 = vadd.f32 %v3095_v60, %v1485_v20  ;;  %v1487_v23 = vpop.f32.mrb[27].mxu0  ;;  %v1495_v56 = vadd.f32 %v1491_v10, %v4490_v47  ;;  %v3102_v60 = vld [vmem:[%s5248_s25 + $0x20] sm:$0xff] }
 0xa8b   :  { %v3714_v63 = vpack.c.bf16 %v3103_v62, %v3102_v60  ;;  %v3100_v23 = vld [vmem:[%s5228_s15] ss:$0 sm:$0xff] }
 0xa8c   :  { %v1492_v9 = vmul.f32 %v1486_v21, %v4204_v27  ;;  %v1505_v29 = vsel %vm263_vm2, %v1495_v56, 0.0 }
 0xa8d   :  { %1506 = vadd.xlane.f32.xlu0 %v1505_v29  ;;  %3715 = vmatprep.subr.bf16.mxu1 %v3714_v63 }
 0xa8e   :  { %v1496_v13 = vadd.f32 %v1492_v9, %v4476_v59  ;;  %3717 = vmatpush3.bf16.msra.mxu1 %v3714_v63  ;;  %v3101_v9 = vld [vmem:[%s5229_s16] ss:$0 sm:$0xff] }
 0xa8f   :  { %3719 = vmatprep.subr.bf16.mxu1 %v3718_v2 }
 0xa90   :  { %v1508_v30 = vsel %vm263_vm2, %v1496_v13, 0.0 }
 0xa91   :  { %1509 = vadd.xlane.f32.xlu0 %v1508_v30 }
 0xa92   :  { %3721 = vmatpush3.bf16.msra.mxu1 %v3718_v2 }
 0xb12   :  { %v1501_v61 = vpop.xlane.xlu0 %1500 }
 0xb13   :  { %v1511_v37 = vmul.f32 0.03125, %v1501_v61 }
 0xb15   :  { %v1515_v38 = vsub.f32 %v1493_v4, %v1511_v37 }
 0xb16   :  { %v1504_v40 = vpop.xlane.xlu1 %1503 }
 0xb17   :  { %v1512_v15 = vmul.f32 0.03125, %v1504_v40  ;;  %v1519_v44 = vmul.f32 %v1515_v38, %v1515_v38 }
 0xb19   :  { %v1516_v46 = vsub.f32 %v1494_v17, %v1512_v15  ;;  %v1523_v32 = vsel %vm263_vm2, %v1519_v44, 0.0 }
 0xb1a   :  { %1524 = vadd.xlane.f32.xlu1 %v1523_v32  ;;  %v1507_v47 = vpop.xlane.xlu0 %1506 }
 0xb1b   :  { %v1513_v53 = vmul.f32 0.03125, %v1507_v47  ;;  %v1520_v39 = vmul.f32 %v1516_v46, %v1516_v46 }
 0xb1d   :  { %v1517_v45 = vsub.f32 %v1495_v56, %v1513_v53  ;;  %v1526_v36 = vsel %vm263_vm2, %v1520_v39, 0.0 }
 0xb1e   :  { %1527 = vadd.xlane.f32.xlu0 %v1526_v36  ;;  %v1510_v59 = vpop.xlane.xlu0 %1509 }
 0xb1f   :  { %v1514_v35 = vmul.f32 0.03125, %v1510_v59  ;;  %v1521_v54 = vmul.f32 %v1517_v45, %v1517_v45 }
 0xb21   :  { %v1518_v52 = vsub.f32 %v1496_v13, %v1514_v35  ;;  %v1529_v55 = vsel %vm263_vm2, %v1521_v54, 0.0 }
 0xb22   :  { %1530 = vadd.xlane.f32.xlu1 %v1529_v55 }
 0xb23   :  { %v1522_v57 = vmul.f32 %v1518_v52, %v1518_v52 }
 0xb25   :  { %v1532_v50 = vsel %vm263_vm2, %v1522_v57, 0.0 }
 0xb26   :  { %1533 = vadd.xlane.f32.xlu0 %v1532_v50 }
 0xba7   :  { %v1525_v58 = vpop.xlane.xlu1 %1524 }
 0xba8   :  { %v1535_v3 = vmul.f32 0.03125, %v1525_v58 }
 0xbaa   :  { %v1539_v4 = vadd.f32 1e-05, %v1535_v3 }
 0xbab   :  { %v1528_v43 = vpop.xlane.xlu0 %1527 }
 0xbac   :  { %3971 = vrsqrt.f32 %v1539_v4  ;;  %v1536_v5 = vmul.f32 0.03125, %v1528_v43 }
 0xbae   :  { %v1540_v7 = vadd.f32 1e-05, %v1536_v5 }
 0xbaf   :  { %v1531_v8 = vpop.xlane.xlu1 %1530 }
 0xbb0   :  { %3973 = vrsqrt.f32 %v1540_v7  ;;  %v1537_v11 = vmul.f32 0.03125, %v1531_v8 }
 0xbb2   :  { %v1541_v17 = vadd.f32 1e-05, %v1537_v11 }
 0xbb3   :  { %v1534_v10 = vpop.xlane.xlu0 %1533 }
 0xbb4   :  { %3975 = vrsqrt.f32 %v1541_v17  ;;  %v1538_v19 = vmul.f32 0.03125, %v1534_v10 }
 0xbb6   :  { %v3972_v20 = vpop.eup %3971  ;;  %v1542_v21 = vadd.f32 1e-05, %v1538_v19 }
 0xbb7   :  { %v1547_v56 = vmul.f32 %v3972_v20, %v1515_v38 }
 0xbb8   :  { %3977 = vrsqrt.f32 %v1542_v21 }
 0xbb9   :  { %v1557_v29 = vmul.f32 %v3100_v23, %v1547_v56 }
 0xbba   :  { %v3974_v13 = vpop.eup %3973 }
 0xbbb   :  { %v1548_v30 = vmul.f32 %v3974_v13, %v1516_v46  ;;  %v4717_v61 = vadd.f32 %v3101_v9, %v1557_v29 }
 0xbbd   :  { %v1558_v37 = vmul.f32 %v3100_v23, %v1548_v30  ;;  %3478 = vmatprep.mubr.msk.f32.mxu1 %vm263_vm2, %v4717_v61 }
 0xbbe   :  { %v3976_v40 = vpop.eup %3975 }
 0xbbf   :  { %v4721_v15 = vadd.f32 %v3101_v9, %v1558_v37  ;;  %v1549_v44 = vmul.f32 %v3976_v40, %v1517_v45  ;;  %v3107_v45 = vld [vmem:[%s5219_s6 + $0x1] ss:$0 sm:$0xff] }
 0xbc1   :  { %3479 = vmatmul.mubr.msk.f32.vlgmr.msra.gmra.mrb[12].mxu1 %vm263_vm2, %v4721_v15  ;;  %v1559_v38 = vmul.f32 %v3100_v23, %v1549_v44 }
 0xbc2   :  { %v3978_v32 = vpop.eup %3977 }
 0xbc3   :  { %v4725_v47 = vadd.f32 %v3101_v9, %v1559_v38  ;;  %v1550_v53 = vmul.f32 %v3978_v32, %v1518_v52 }
 0xbc5   :  { %3481 = vmatprep.mubr.msk.f32.mxu1 %vm263_vm2, %v4725_v47  ;;  %v1560_v46 = vmul.f32 %v3100_v23, %v1550_v53 }
 0xbc7   :  { %v4729_v39 = vadd.f32 %v3101_v9, %v1560_v46 }
 0xbc9   :  { %3482 = vmatmul.mubr.msk.f32.gmra.mrb[14].mxu1 %vm263_vm2, %v4729_v39 }
 0xc94   :  { %v3480_v36 = vpop.f32.mrb[12].mxu1 }
 0xc95   :  { %v1668_v59 = vadd.f32 %v3480_v36, %v3107_v45  ;;  %v1662_v35 = vpop.f32.mrb[13].mxu1 }
 0xc96   :  { %v1663_v54 = vadd.f32 %v3107_v45, %v1662_v35 }
 0xc98   :  { %3492 = vmatprep.mubr.msk.f32.mxu1 %vm373_vm3, %v1663_v54  ;;  %v4737_v52 = vpack.i.bf16 %v1668_v59, %v1663_v54 }
 0xc9a   :  { %3892 = vrot.lane.b32.xlu1 %v4737_v52, %s4036_s21 }
 0xc9c   :  { %v3483_v55 = vpop.f32.mrb[14].mxu1 }
 0xc9d   :  { %v1678_v57 = vadd.f32 %v3483_v55, %v3107_v45  ;;  %v1672_v50 = vpop.f32.mrb[15].mxu1 }
 0xc9e   :  { %v1673_v60 = vadd.f32 %v3107_v45, %v1672_v50  ;;  %3902 = vrot.lane.b32.xlu1 %v4737_v52, %s4037_s0 }
 0xca0   :  { %v4743_v62 = vpack.i.bf16 %v1678_v57, %v1673_v60 }
 0xca2   :  { %3907 = vrot.lane.b32.xlu1 %v4743_v62, %s4037_s0  ;;  %3897 = vrot.lane.b32.xlu0 %v4743_v62, %s4036_s21 }
 0xca6   :  { %1949 = vrot.lane.b32.xlu1 %v1668_v59, %s4038_s2  ;;  %1947 = vrot.lane.b32.xlu0 %v1663_v54, %s4038_s2 }
 0xcaa   :  { %1953 = vrot.lane.b32.xlu1 %v1678_v57, %s4038_s2  ;;  %1951 = vrot.lane.b32.xlu0 %v1673_v60, %s4038_s2 }
 0xd0c   :  { %v3893_v63 = vpop.permute.xlu1 %3892 }
 0xd0d   :  { %v3895_v0 = vunpack.i.h.bf16 %v3893_v63  ;;  %v3894_v1 = vunpack.i.l.bf16 %v3893_v63 }
 0xd0f   :  { %v3722_v2 = vpack.c.bf16 %v3895_v0, %v3894_v1 }
 0xd10   :  { %v3903_v58 = vpop.permute.xlu1 %3902 }
 0xd11   :  { %v3905_v3 = vunpack.i.h.bf16 %v3903_v58  ;;  %v3904_v4 = vunpack.i.l.bf16 %v3903_v58  ;;  %3724 = vmatprep.subr.msk.bf16.mxu1 %vm4258_vm4, %v3722_v2 }
 0xd12   :  { %3727 = vmatpush3.bf16.xpose.msk.msra.mxu1 %vm4258_vm4, %v3722_v2 }
 0xd13   :  { %v3742_v43 = vpack.c.bf16 %v3905_v3, %v3904_v4 }
 0xd14   :  { %v3908_v5 = vpop.permute.xlu1 %3907  ;;  %v3898_v7 = vpop.permute.xlu0 %3897 }
 0xd15   :  { %v3910_v8 = vunpack.i.h.bf16 %v3908_v5  ;;  %v3909_v11 = vunpack.i.l.bf16 %v3908_v5  ;;  %v3900_v17 = vunpack.i.h.bf16 %v3898_v7  ;;  %v3899_v10 = vunpack.i.l.bf16 %v3898_v7  ;;  %3744 = vmatprep.subr.msk.bf16.mxu0 %vm4258_vm4, %v3742_v43 }
 0xd16   :  { %3747 = vmatpush3.bf16.xpose.msk.msra.mxu0 %vm4258_vm4, %v3742_v43 }
 0xd17   :  { %v3748_v19 = vpack.c.bf16 %v3910_v8, %v3909_v11  ;;  %v3728_v20 = vpack.c.bf16 %v3900_v17, %v3899_v10 }
 0xd18   :  { %v1948_v21 = vpop.permute.xlu0 %1947  ;;  %v1950_v23 = vpop.permute.xlu1 %1949 }
 0xd19   :  { %3730 = vmatprep.subr.msk.bf16.mxu1 %vm4258_vm4, %v3728_v20  ;;  %3750 = vmatprep.subr.msk.bf16.mxu0 %vm4258_vm4, %v3748_v19 }
 0xd1a   :  { %3520 = vmatprep.mubr.msk.f32.mxu0 %vm373_vm3, %v1948_v21  ;;  %3733 = vmatpush3.bf16.xpose.msk.msra.mxu1 %vm4258_vm4, %v3728_v20 }
 0xd1c   :  { %v1952_v56 = vpop.permute.xlu0 %1951  ;;  %v1954_v9 = vpop.permute.xlu1 %1953 }
 0xd1e   :  { %3753 = vmatpush3.bf16.xpose.msk.msra.mxu0 %vm4258_vm4, %v3748_v19 }
 0xd21   :  { %3493 = vmatmul.mubr.msk.f32.vlgmr.msra.gmra.mrb[16].mxu1 %vm373_vm3, %v1668_v59 }
 0xd22   :  { %3495 = vmatprep.mubr.msk.f32.mxu1 %vm373_vm3, %v1673_v60 }
 0xd25   :  { %3496 = vmatmul.mubr.msk.f32.gmra.mrb[18].mxu1 %vm373_vm3, %v1678_v57  ;;  %3521 = vmatmul.mubr.msk.f32.vlgmr.msra.gmra.mrb[28].mxu0 %vm373_vm3, %v1950_v23 }
 0xd26   :  { %3523 = vmatprep.mubr.msk.f32.mxu0 %vm373_vm3, %v1952_v56 }
 0xd29   :  { %3524 = vmatmul.mubr.msk.f32.gmra.mrb[30].mxu0 %vm373_vm3, %v1954_v9 }
 0xdf4   :  { %v3494_v29 = vpop.f32.mrb[16].mxu1 }
 0xdf5   :  { %v1781_v13 = vadd.f32 %v3494_v29, %v4296_v26  ;;  %v1775_v51 = vpop.f32.mrb[17].mxu1 }
 0xdf6   :  { %v1776_v30 = vadd.f32 %v1775_v51, %v4298_v28 }
 0xdf7   :  { %v1797_v37 = vsel %vm263_vm2, %v1781_v13, -inf }
 0xdf8   :  { %v3522_v40 = vpop.f32.mrb[28].mxu0  ;;  %1798 = vmax.xlane.f32.xlu1 %v1797_v37  ;;  %v3497_v44 = vpop.f32.mrb[18].mxu1  ;;  %v1794_v38 = vsel %vm263_vm2, %v1776_v30, -inf }
 0xdf9   :  { %v1785_v32 = vpop.f32.mrb[19].mxu1  ;;  %v2045_v53 = vpop.f32.mrb[29].mxu0  ;;  %1795 = vmax.xlane.f32.xlu0 %v1794_v38  ;;  %v1791_v36 = vadd.f32 %v3497_v44, %v4310_v48  ;;  %v2051_v50 = vadd.f32 %v3522_v40, %v4296_v26 }
 0xdfa   :  { %v4781_v46 = vadd.f32 %v1785_v32, %v4306_v41  ;;  %v2046_v45 = vadd.f32 %v2045_v53, %v4298_v28 }
 0xdfb   :  { %v1803_v28 = vsel %vm263_vm2, %v1791_v36, -inf  ;;  %v2067_v0 = vsel %vm263_vm2, %v2051_v50, -inf }
 0xdfc   :  { %v3525_v59 = vpop.f32.mrb[30].mxu0  ;;  %v2064_v35 = vsel %vm263_vm2, %v2046_v45, -inf  ;;  %v1800_v54 = vsel %vm263_vm2, %v4781_v46, -inf }
 0xdfd   :  { %v2055_v55 = vpop.f32.mrb[31].mxu0  ;;  %2065 = vmax.xlane.f32.xlu1 %v2064_v35  ;;  %1801 = vmax.xlane.f32.xlu0 %v1800_v54  ;;  %v2061_v63 = vadd.f32 %v3525_v59, %v4310_v48 }
 0xdfe   :  { %v4789_v57 = vadd.f32 %v2055_v55, %v4306_v41 }
 0xdff   :  { %v2073_v1 = vsel %vm263_vm2, %v2061_v63, -inf }
 0xe00   :  { %v2070_v60 = vsel %vm263_vm2, %v4789_v57, -inf }
 0xe01   :  { %2071 = vmax.xlane.f32.xlu1 %v2070_v60  ;;  %1804 = vmax.xlane.f32.xlu0 %v1803_v28 }
 0xe05   :  { %2068 = vmax.xlane.f32.xlu0 %v2067_v0 }
 0xe09   :  { %2074 = vmax.xlane.f32.xlu0 %v2073_v1 }
 0xe12   :  { %3912 = vrot.lane.b32.xlu1 %v4737_v52, %s4041_s24 }
 0xe85   :  { %v1799_v41 = vpop.xlane.xlu1 %1798 }
 0xe86   :  { %v1807_v26 = vsub.f32 %v1781_v13, %v1799_v41  ;;  %v1796_v2 = vpop.xlane.xlu0 %1795 }
 0xe87   :  { %v1806_v58 = vsub.f32 %v1776_v30, %v1796_v2 }
 0xe88   :  { %v1812_v3 = vmul.f32 1.442695, %v1807_v26 }
 0xe89   :  { %v1810_v4 = vmul.f32 1.442695, %v1806_v58 }
 0xe8a   :  { %3979 = vpow2.f32 %v1812_v3  ;;  %v2066_v43 = vpop.xlane.xlu1 %2065  ;;  %v1802_v5 = vpop.xlane.xlu0 %1801 }
 0xe8b   :  { %3981 = vpow2.f32 %v1810_v4  ;;  %v2076_v48 = vsub.f32 %v2046_v45, %v2066_v43 }
 0xe8d   :  { %v2080_v7 = vmul.f32 1.442695, %v2076_v48 }
 0xe8e   :  { %v2072_v8 = vpop.xlane.xlu1 %2071  ;;  %v1805_v11 = vpop.xlane.xlu0 %1804 }
 0xe8f   :  { %3983 = vpow2.f32 %v2080_v7  ;;  %v1809_v17 = vsub.f32 %v1791_v36, %v1805_v11  ;;  %v2078_v28 = vsub.f32 %v4789_v57, %v2072_v8 }
 0xe91   :  { %v1816_v29 = vmul.f32 1.442695, %v1809_v17 }
 0xe92   :  { %v3913_v10 = vpop.permute.xlu1 %3912  ;;  %v2069_v19 = vpop.xlane.xlu0 %2068 }
 0xe93   :  { %v3915_v20 = vunpack.i.h.bf16 %v3913_v10  ;;  %v3914_v21 = vunpack.i.l.bf16 %v3913_v10  ;;  %v2077_v23 = vsub.f32 %v2051_v50, %v2069_v19  ;;  %v1808_v50 = vsub.f32 %v4781_v46, %v1802_v5 }
 0xe94   :  { %v4800_v56 = vpop.eup %3979 }
 0xe95   :  { %v3982_v9 = vpop.eup %3981  ;;  %v3734_v13 = vpack.c.bf16 %v3915_v20, %v3914_v21  ;;  %v2082_v51 = vmul.f32 1.442695, %v2077_v23  ;;  %v1821_v30 = vsel %vm263_vm2, %v4800_v56, 0.0  ;;  %v1814_v60 = vmul.f32 1.442695, %v1808_v50 }
 0xe96   :  { %1822 = vadd.xlane.f32.xlu0 %v1821_v30  ;;  %v2075_v37 = vpop.xlane.xlu0 %2074  ;;  %v1818_v40 = vsel %vm263_vm2, %v3982_v9, 0.0 }
 0xe97   :  { %3985 = vpow2.f32 %v2082_v51  ;;  %v2079_v44 = vsub.f32 %v2061_v63, %v2075_v37  ;;  %3735 = vmatprep.subr.bf16.mxu1 %v3734_v13  ;;  %1819 = vadd.xlane.f32.xlu1 %v1818_v40  ;;  %v2084_v63 = vmul.f32 1.442695, %v2078_v28 }
 0xe98   :  { %3737 = vmatpush3.bf16.msra.mxu1 %v3734_v13  ;;  %3987 = vpow2.f32 %v1816_v29 }
 0xe99   :  { %v4805_v38 = vpop.eup %3983  ;;  %v2086_v32 = vmul.f32 1.442695, %v2079_v44 }
 0xe9a   :  { %v2088_v53 = vsel %vm263_vm2, %v4805_v38, 0.0 }
 0xe9b   :  { %2089 = vadd.xlane.f32.xlu1 %v2088_v53  ;;  %3989 = vpow2.f32 %v2086_v32 }
 0xe9c   :  { %3991 = vpow2.f32 %v1814_v60  ;;  %v3137_v60 = vld [vmem:[%s5220_s7 + $0x28] sm:$0xff] }
 0xe9d   :  { %3993 = vpow2.f32 %v2084_v63  ;;  %v3139_v63 = vld [vmem:[%s5220_s7 + $0x38] sm:$0xff] }
 0xea1   :  { %v4809_v45 = vpop.eup %3985 }
 0xea2   :  { %v2091_v36 = vsel %vm263_vm2, %v4809_v45, 0.0  ;;  %v4813_v59 = vpop.eup %3987 }
 0xea3   :  { %2092 = vadd.xlane.f32.xlu0 %v2091_v36  ;;  %v1827_v35 = vsel %vm263_vm2, %v4813_v59, 0.0 }
 0xea5   :  { %v4817_v54 = vpop.eup %3989 }
 0xea6   :  { %v2097_v55 = vsel %vm263_vm2, %v4817_v54, 0.0  ;;  %v3992_v0 = vpop.eup %3991 }
 0xea7   :  { %1828 = vadd.xlane.f32.xlu0 %v1827_v35  ;;  %v1824_v1 = vsel %vm263_vm2, %v3992_v0, 0.0  ;;  %v3994_v41 = vpop.eup %3993 }
 0xea8   :  { %v2094_v26 = vsel %vm263_vm2, %v3994_v41, 0.0 }
 0xeab   :  { %2098 = vadd.xlane.f32.xlu0 %v2097_v55 }
 0xeac   :  { %3922 = vrot.lane.b32.xlu1 %v4737_v52, %s4040_s23 }
 0xec1   :  { %3917 = vrot.lane.b32.xlu0 %v4743_v62, %s4041_s24 }
 0xed0   :  { %1825 = vadd.xlane.f32.xlu1 %v1824_v1 }
 0xed4   :  { %2095 = vadd.xlane.f32.xlu1 %v2094_v26 }
 0xee5   :  { %3927 = vrot.lane.b32.xlu1 %v4743_v62, %s4040_s23 }
 0xf23   :  { %v1823_v46 = vpop.xlane.xlu0 %1822 }
 0xf24   :  { %v1820_v52 = vpop.xlane.xlu1 %1819 }
 0xf25   :  { %3995 = vrcp.f32 %v1820_v52 }
 0xf26   :  { %3997 = vrcp.f32 %v1823_v46 }
 0xf28   :  { %v2090_v3 = vpop.xlane.xlu1 %2089 }
 0xf29   :  { %3999 = vrcp.f32 %v2090_v3 }
 0xf2c   :  { %v3923_v5 = vpop.permute.xlu1 %3922 }
 0xf2d   :  { %v3925_v7 = vunpack.i.h.bf16 %v3923_v5  ;;  %v3924_v8 = vunpack.i.l.bf16 %v3923_v5 }
 0xf2f   :  { %v3996_v57 = vpop.eup %3995  ;;  %v3754_v19 = vpack.c.bf16 %v3925_v7, %v3924_v8 }
 0xf30   :  { %v2093_v2 = vpop.xlane.xlu0 %2092  ;;  %v1834_v58 = vmul.f32 %v3996_v57, %v3982_v9  ;;  %v3998_v62 = vpop.eup %3997 }
 0xf31   :  { %v1835_v20 = vmul.f32 %v3998_v62, %v4800_v56 }
 0xf32   :  { %3506 = vmatprep.mubr.msk.f32.mxu1 %vm263_vm2, %v1834_v58 }
 0xf33   :  { %v4000_v29 = vpop.eup %3999 }
 0xf34   :  { %v1829_v4 = vpop.xlane.xlu0 %1828  ;;  %v2104_v53 = vmul.f32 %v4000_v29, %v4805_v38  ;;  %v3136_v38 = vld [vmem:[%s5220_s7 + $0x20] sm:$0xff] }
 0xf35   :  { %4001 = vrcp.f32 %v1829_v4  ;;  %v3762_v28 = vpack.c.bf16 %v3137_v60, %v3136_v38 }
 0xf38   :  { %v2099_v43 = vpop.xlane.xlu0 %2098 }
 0xf3c   :  { %v3918_v48 = vpop.permute.xlu0 %3917 }
 0xf3d   :  { %v3920_v11 = vunpack.i.h.bf16 %v3918_v48  ;;  %v3919_v17 = vunpack.i.l.bf16 %v3918_v48 }
 0xf3f   :  { %v3738_v10 = vpack.c.bf16 %v3920_v11, %v3919_v17  ;;  %v4002_v30 = vpop.eup %4001  ;;  %v3141_v11 = vld [vmem:[%s5221_s8 + $0x1] ss:$0 sm:$0xff] }
 0xf40   :  { %v1837_v44 = vmul.f32 %v4002_v30, %v4813_v59 }
 0xf41   :  { %3739 = vmatprep.subr.bf16.mxu1 %v3738_v10 }
 0xf42   :  { %3741 = vmatpush3.bf16.msra.mxu1 %v3738_v10 }
 0xf43   :  { %3755 = vmatprep.subr.bf16.mxu1 %v3754_v19 }
 0xf45   :  { %3507 = vmatmul.mubr.msk.f32.vlgmr.msra.gmra.mrb[20].mxu1 %vm263_vm2, %v1835_v20 }
 0xf46   :  { %3757 = vmatpush3.bf16.msra.mxu1 %v3754_v19 }
 0xf5d   :  { %v1826_v21 = vpop.xlane.xlu1 %1825 }
 0xf5e   :  { %4003 = vrcp.f32 %v1826_v21 }
 0xf5f   :  { %4005 = vrcp.f32 %v2093_v2 }
 0xf61   :  { %v2096_v23 = vpop.xlane.xlu1 %2095 }
 0xf62   :  { %4007 = vrcp.f32 %v2096_v23 }
 0xf63   :  { %4009 = vrcp.f32 %v2099_v43 }
 0xf65   :  { %v3928_v9 = vpop.permute.xlu1 %3927 }
 0xf66   :  { %v3930_v13 = vunpack.i.h.bf16 %v3928_v9  ;;  %v3929_v51 = vunpack.i.l.bf16 %v3928_v9 }
 0xf68   :  { %v4004_v37 = vpop.eup %4003  ;;  %v3758_v40 = vpack.c.bf16 %v3930_v13, %v3929_v51 }
 0xf69   :  { %v1836_v56 = vmul.f32 %v4004_v37, %v3992_v0  ;;  %v4006_v32 = vpop.eup %4005 }
 0xf6a   :  { %3759 = vmatprep.subr.bf16.mxu1 %v3758_v40  ;;  %v2105_v35 = vmul.f32 %v4006_v32, %v4809_v45  ;;  %v3138_v45 = vld [vmem:[%s5220_s7 + $0x30] sm:$0xff] }
 0xf6b   :  { %3509 = vmatprep.mubr.msk.f32.mxu1 %vm263_vm2, %v1836_v56  ;;  %3761 = vmatpush3.bf16.msra.mxu1 %v3758_v40 }
 0xf6c   :  { %v4008_v36 = vpop.eup %4007  ;;  %3510 = vmatmul.mubr.msk.f32.gmra.mrb[22].mxu1 %vm263_vm2, %v1837_v44  ;;  %3763 = vmatprep.subr.bf16.mxu1 %v3762_v28 }
 0xf6d   :  { %3534 = vmatprep.mubr.msk.f32.mxu1 %vm263_vm2, %v2104_v53  ;;  %v4010_v55 = vpop.eup %4009  ;;  %v2106_v50 = vmul.f32 %v4008_v36, %v3994_v41 }
 0xf6e   :  { %v2107_v59 = vmul.f32 %v4010_v55, %v4817_v54  ;;  %v3766_v54 = vpack.c.bf16 %v3139_v63, %v3138_v45 }
 0xf70   :  { %3535 = vmatmul.mubr.msk.f32.vlgmr.msra.gmra.mrb[24].mxu1 %vm263_vm2, %v2105_v35 }
 0xf71   :  { %3537 = vmatprep.mubr.msk.f32.mxu1 %vm263_vm2, %v2106_v50  ;;  %3765 = vmatpush3.bf16.msra.mxu1 %v3762_v28 }
 0xf72   :  { %3767 = vmatprep.subr.bf16.mxu1 %v3766_v54 }
 0xf74   :  { %3538 = vmatmul.mubr.msk.f32.gmra.mrb[26].mxu1 %vm263_vm2, %v2107_v59 }
 0xf75   :  { %3769 = vmatpush3.bf16.msra.mxu1 %v3766_v54 }
 0xf76   :  { %3794 = vmatprep.subr.bf16.mxu1 %v4044_v49 }
0x1018   :  { %v3508_v0 = vpop.f32.mrb[20].mxu1 }
0x1019   :  { %v1928_v1 = vpop.f32.mrb[21].mxu1 }
0x103f   :  { %v3511_v41 = vpop.f32.mrb[22].mxu1 }
0x1040   :  { %v1938_v26 = vpop.f32.mrb[23].mxu1 }
0x1043   :  { %v3536_v52 = vpop.f32.mrb[24].mxu1 }
0x1044   :  { %2223 = vrot.lane.b32.xlu1 %v3536_v52, %s5259_s22  ;;  %v2198_v46 = vpop.f32.mrb[25].mxu1  ;;  %v3151_v52 = vld [vmem:[%s5222_s11 + $0x68] sm:$0xff] }
0x1045   :  { %2221 = vrot.lane.b32.xlu0 %v2198_v46, %s5259_s22  ;;  %v3152_v46 = vld [vmem:[%s5222_s11 + $0x70] sm:$0xff] }
0x1047   :  { %v3539_v57 = vpop.f32.mrb[26].mxu1 }
0x1048   :  { %2227 = vrot.lane.b32.xlu1 %v3539_v57, %s5259_s22  ;;  %v2208_v2 = vpop.f32.mrb[27].mxu1 }
0x1049   :  { %2225 = vrot.lane.b32.xlu0 %v2208_v2, %s5259_s22  ;;  %v3153_v2 = vld [vmem:[%s5222_s11 + $0x78] sm:$0xff] }
0x10b6   :  { %v2224_v58 = vpop.permute.xlu1 %2223 }
0x10b7   :  { %v2222_v3 = vpop.permute.xlu0 %2221  ;;  %v2234_v43 = vsel %vm373_vm3, %v3508_v0, %v2224_v58  ;;  %v3774_v58 = vpack.c.bf16 %v3153_v2, %v3152_v46 }
0x10b8   :  { %v2233_v4 = vsel %vm373_vm3, %v1928_v1, %v2222_v3  ;;  %v3154_v3 = vld [vmem:[%s5222_s11 + $0x80] sm:$0xff] }
0x10b9   :  { %3548 = vmatprep.mubr.msk.f32.mxu1 %vm263_vm2, %v2233_v4  ;;  %v3155_v4 = vld [vmem:[%s5222_s11 + $0x88] sm:$0xff] }
0x10ba   :  { %3549 = vmatmul.mubr.msk.f32.vlgmr.msra.gmra.mrb[28].mxu1 %vm263_vm2, %v2234_v43  ;;  %v2228_v5 = vpop.permute.xlu1 %2227  ;;  %v3778_v43 = vpack.c.bf16 %v3155_v4, %v3154_v3 }
0x10bb   :  { %v2226_v48 = vpop.permute.xlu0 %2225  ;;  %v2236_v8 = vsel %vm373_vm3, %v3511_v41, %v2228_v5  ;;  %v3156_v5 = vld [vmem:[%s5222_s11 + $0x90] sm:$0xff] }
0x10bc   :  { %v2235_v7 = vsel %vm373_vm3, %v1938_v26, %v2226_v48  ;;  %v3150_v26 = vld [vmem:[%s5222_s11 + $0x60] sm:$0xff]  ;;  %v3157_v48 = vld [vmem:[%s5222_s11 + $0x98] sm:$0xff] }
0x10bd   :  { %3551 = vmatprep.mubr.msk.f32.mxu1 %vm263_vm2, %v2235_v7  ;;  %v3770_v57 = vpack.c.bf16 %v3151_v52, %v3150_v26  ;;  %v3782_v7 = vpack.c.bf16 %v3157_v48, %v3156_v5 }
0x10be   :  { %3552 = vmatmul.mubr.msk.f32.gmra.mrb[30].mxu1 %vm263_vm2, %v2236_v8 }
0x10bf   :  { %3771 = vmatprep.subr.bf16.mxu0 %v3770_v57 }
0x10c0   :  { %3773 = vmatpush3.bf16.msra.mxu0 %v3770_v57 }
0x10c1   :  { %3775 = vmatprep.subr.bf16.mxu0 %v3774_v58 }
0x10c4   :  { %3777 = vmatpush3.bf16.msra.mxu0 %v3774_v58 }
0x10c5   :  { %3779 = vmatprep.subr.bf16.mxu0 %v3778_v43 }
0x10c8   :  { %3781 = vmatpush3.bf16.msra.mxu0 %v3778_v43 }
0x10c9   :  { %3783 = vmatprep.subr.bf16.mxu0 %v3782_v7 }
0x10cc   :  { %3785 = vmatpush3.bf16.msra.mxu0 %v3782_v7 }
0x118d   :  { %v3550_v17 = vpop.f32.mrb[28].mxu1 }
0x118e   :  { %v2328_v10 = vpop.f32.mrb[29].mxu1  ;;  %v2334_v62 = vadd.f32 %v3550_v17, %v3141_v11 }
0x118f   :  { %v2329_v19 = vadd.f32 %v3141_v11, %v2328_v10 }
0x1190   :  { %v2348_v29 = vadd.f32 %v2334_v62, %v4721_v15 }
0x1191   :  { %v3553_v20 = vpop.f32.mrb[30].mxu1  ;;  %v2347_v21 = vadd.f32 %v2329_v19, %v4717_v61 }
0x1192   :  { %v2344_v23 = vadd.f32 %v3553_v20, %v3141_v11  ;;  %v2338_v9 = vpop.f32.mrb[31].mxu1  ;;  %v2358_v56 = vsel %vm263_vm2, %v2348_v29, 0.0 }
0x1193   :  { %v2339_v13 = vadd.f32 %v3141_v11, %v2338_v9  ;;  %v2355_v51 = vsel %vm263_vm2, %v2347_v21, 0.0 }
0x1194   :  { %2356 = vadd.xlane.f32.xlu0 %v2355_v51  ;;  %v2350_v30 = vadd.f32 %v2344_v23, %v4729_v39 }
0x1195   :  { %v2349_v40 = vadd.f32 %v2339_v13, %v4725_v47 }
0x1196   :  { %v2364_v37 = vsel %vm263_vm2, %v2350_v30, 0.0 }
0x1197   :  { %2365 = vadd.xlane.f32.xlu1 %v2364_v37  ;;  %v2361_v61 = vsel %vm263_vm2, %v2349_v40, 0.0 }
0x1198   :  { %2359 = vadd.xlane.f32.xlu0 %v2358_v56  ;;  %v3159_v56 = vld [vmem:[%s5222_s11 + $0xa8] sm:$0xff] }
0x119c   :  { %2362 = vadd.xlane.f32.xlu0 %v2361_v61  ;;  %v3149_v61 = vld [vmem:[%s5224_s10 + $0x1] ss:$0 sm:$0xff]  ;;  %s5260_s10 = smov 32  }
0x1221   :  { %v2357_v44 = vpop.xlane.xlu0 %2356 }
0x1222   :  { %v2367_v32 = vmul.f32 0.03125, %v2357_v44 }
0x1224   :  { %v2371_v15 = vsub.f32 %v2347_v21, %v2367_v32  ;;  %v2366_v53 = vpop.xlane.xlu1 %2365 }
0x1225   :  { %v2370_v36 = vmul.f32 0.03125, %v2366_v53  ;;  %v2360_v35 = vpop.xlane.xlu0 %2359 }
0x1226   :  { %v2368_v55 = vmul.f32 0.03125, %v2360_v35  ;;  %v2375_v50 = vmul.f32 %v2371_v15, %v2371_v15 }
0x1227   :  { %v2374_v39 = vsub.f32 %v2350_v30, %v2370_v36  ;;  %v3148_v30 = vld [vmem:[%s5223_s9 + $0x1] ss:$0 sm:$0xff] }
0x1228   :  { %v4880_v59 = vsub.f32 %v2348_v29, %v2368_v55  ;;  %v2379_v47 = vsel %vm263_vm2, %v2375_v50, 0.0  ;;  %v3161_v55 = vld [vmem:[%s5222_s11 + $0xb8] sm:$0xff] }
0x1229   :  { %2380 = vadd.xlane.f32.xlu1 %v2379_v47  ;;  %v2363_v38 = vpop.xlane.xlu0 %2362  ;;  %v2378_v60 = vmul.f32 %v2374_v39, %v2374_v39 }
0x122a   :  { %v2369_v45 = vmul.f32 0.03125, %v2363_v38  ;;  %v2376_v28 = vmul.f32 %v4880_v59, %v4880_v59 }
0x122b   :  { %v2388_v63 = vsel %vm263_vm2, %v2378_v60, 0.0 }
0x122c   :  { %v4886_v54 = vsub.f32 %v2349_v40, %v2369_v45  ;;  %2389 = vadd.xlane.f32.xlu0 %v2388_v63  ;;  %v2382_v0 = vsel %vm263_vm2, %v2376_v28, 0.0  ;;  %v3158_v40 = vld [vmem:[%s5222_s11 + $0xa0] sm:$0xff] }
0x122d   :  { %2383 = vadd.xlane.f32.xlu1 %v2382_v0  ;;  %v3786_v44 = vpack.c.bf16 %v3159_v56, %v3158_v40 }
0x122e   :  { %v2377_v1 = vmul.f32 %v4886_v54, %v4886_v54 }
0x122f   :  { %3787 = vmatprep.subr.bf16.mxu0 %v3786_v44 }
0x1230   :  { %v2385_v41 = vsel %vm263_vm2, %v2377_v1, 0.0  ;;  %3789 = vmatpush3.bf16.msra.mxu0 %v3786_v44 }
0x1231   :  { %2386 = vadd.xlane.f32.xlu0 %v2385_v41 }
0x12b6   :  { %v2381_v8 = vpop.xlane.xlu1 %2380 }
0x12b7   :  { %v2391_v11 = vmul.f32 0.03125, %v2381_v8 }
0x12b9   :  { %v2395_v17 = vadd.f32 1e-05, %v2391_v11  ;;  %v2390_v10 = vpop.xlane.xlu0 %2389 }
0x12ba   :  { %v2394_v62 = vmul.f32 0.03125, %v2390_v10  ;;  %v2384_v19 = vpop.xlane.xlu1 %2383 }
0x12bb   :  { %4011 = vrsqrt.f32 %v2395_v17  ;;  %v2392_v20 = vmul.f32 0.03125, %v2384_v19 }
0x12bc   :  { %v2398_v21 = vadd.f32 1e-05, %v2394_v62 }
0x12bd   :  { %v2396_v23 = vadd.f32 1e-05, %v2392_v20 }
0x12be   :  { %4013 = vrsqrt.f32 %v2398_v21  ;;  %v2387_v9 = vpop.xlane.xlu0 %2386 }
0x12bf   :  { %4015 = vrsqrt.f32 %v2396_v23  ;;  %v2393_v29 = vmul.f32 0.03125, %v2387_v9 }
0x12c1   :  { %v2397_v13 = vadd.f32 1e-05, %v2393_v29 }
0x12c3   :  { %4017 = vrsqrt.f32 %v2397_v13 }
0x12c5   :  { %v4012_v51 = vpop.eup %4011 }
0x12c6   :  { %v2403_v37 = vmul.f32 %v4012_v51, %v2371_v15  ;;  %v3160_v15 = vld [vmem:[%s5222_s11 + $0xb0] sm:$0xff] }
0x12c7   :  { %v3790_v38 = vpack.c.bf16 %v3161_v55, %v3160_v15 }
0x12c8   :  { %v4014_v32 = vpop.eup %4013  ;;  %v2413_v53 = vmul.f32 %v3148_v30, %v2403_v37 }
0x12c9   :  { %v4016_v36 = vpop.eup %4015  ;;  %v2406_v35 = vmul.f32 %v4014_v32, %v2374_v39  ;;  %3791 = vmatprep.subr.bf16.mxu0 %v3790_v38 }
0x12ca   :  { %v2404_v50 = vmul.f32 %v4016_v36, %v4880_v59  ;;  %v4935_v47 = vadd.f32 %v3149_v61, %v2413_v53  ;;  %3793 = vmatpush3.bf16.msra.mxu0 %v3790_v38  ;;  %v3168_v38 = vld [vmem:[%s5225_s13 + $0xc0] sm:$0xff] }
0x12cb   :  { %v2416_v60 = vmul.f32 %v3148_v30, %v2406_v35 }
0x12cc   :  { %v2414_v45 = vmul.f32 %v3148_v30, %v2404_v50  ;;  %v2427_v39 = vmul.f32 %v4935_v47, %v4189_v16 }
0x12cd   :  { %v4018_v28 = vpop.eup %4017  ;;  %v4939_v63 = vadd.f32 %v3149_v61, %v2416_v60  ;;  %v3169_v60 = vld [vmem:[%s5225_s13 + $0xc8] sm:$0xff] }
0x12ce   :  { %v2405_v0 = vmul.f32 %v4018_v28, %v4886_v54  ;;  %v4942_v1 = vadd.f32 %v3149_v61, %v2414_v45  ;;  %v2443_v52 = vrot.slane %v2427_v39, 7  ;;  %v2431_v46 = vrot.slane %v2427_v39, 6  ;;  %v3170_v45 = vld [vmem:[%s5225_s13 + $0xd0] sm:$0xff] }
0x12cf   :  { %v2430_v59 = vmul.f32 %v4939_v63, %v4204_v27  ;;  %v3795_v28 = vpack.c.bf16 %v3169_v60, %v3168_v38 }
0x12d0   :  { %v2415_v41 = vmul.f32 %v3148_v30, %v2405_v0  ;;  %v2428_v26 = vmul.f32 %v4942_v1, %v4196_v22 }
0x12d1   :  { %v2434_v57 = vrot.slane %v2430_v59, 6  ;;  %v2446_v58 = vrot.slane %v2430_v59, 7  ;;  %3796 = vmatpush1.bf16.msra.mxu1 %v3795_v28 }
0x12d2   :  { %2477 = vrot.lane.b32.xlu1 %v2428_v26, %s4041_s24  ;;  %v2444_v2 = vrot.slane %v2428_v26, 7  ;;  %v4949_v3 = vadd.f32 %v3149_v61, %v2415_v41  ;;  %v2432_v54 = vrot.slane %v2428_v26, 6  ;;  %3797 = vmatprep.subr.bf16.mxu1 %v4044_v49  ;;  %v3173_v41 = vld [vmem:[%s5225_s13 + $0xe8] sm:$0xff] }
0x12d3   :  { %v2438_v4 = vsel %vm1113_vm5, %v2434_v57, %v2431_v46  ;;  %v2450_v7 = vsel %vm1134_vm6, %v2446_v58, %v2443_v52 }
0x12d4   :  { %v2449_v43 = vsel %vm1134_vm6, %v2443_v52, %v2444_v2  ;;  %v2429_v5 = vmul.f32 %v4949_v3, %v4194_v18  ;;  %v2437_v48 = vsel %vm1113_vm5, %v2431_v46, %v2432_v54  ;;  %v2451_v19 = vsel %vm4501_vm7, %v2450_v7, 0.0  ;;  %v3174_v52 = vld [vmem:[%s5225_s13 + $0xf0] sm:$0xff]  ;;  %v3175_v46 = vld [vmem:[%s5225_s13 + $0xf8] sm:$0xff]  ;;  %v3181_v7 = vld [vmem:[%s5225_s13 + $0x128] sm:$0xff] }
0x12d5   :  { %2461 = vrot.lane.b32.xlu0 %v2449_v43, %s5260_s10  ;;  %v2439_v30 = vsel %vm4529_vm9, %v2438_v4, 0.0  ;;  %v3178_v4 = vld [vmem:[%s5225_s13 + $0x110] sm:$0xff]  ;;  %v3179_v43 = vld [vmem:[%s5225_s13 + $0x118] sm:$0xff] }
0x12d6   :  { %2475 = vrot.lane.b32.xlu1 %v2427_v39, %s4041_s24  ;;  %v2445_v8 = vrot.slane %v2429_v5, 7  ;;  %v2433_v11 = vrot.slane %v2429_v5, 6  ;;  %v3171_v39 = vld [vmem:[%s5225_s13 + $0xd8] sm:$0xff] }
0x12d7   :  { %v3798_v0 = vpack.c.bf16 %v3171_v39, %v3170_v45 }
0x12d8   :  { %v2448_v17 = vsel %vm1134_vm6, %v2444_v2, %v2445_v8  ;;  %v2436_v10 = vsel %vm1113_vm5, %v2432_v54, %v2433_v11  ;;  %v2435_v62 = vsel %vm1113_vm5, %v2433_v11, %v2434_v57  ;;  %v2447_v21 = vsel %vm1134_vm6, %v2445_v8, %v2446_v58  ;;  %v3176_v2 = vld [vmem:[%s5225_s13 + $0x100] sm:$0xff]  ;;  %v3177_v58 = vld [vmem:[%s5225_s13 + $0x108] sm:$0xff]  ;;  %v3182_v11 = vld [vmem:[%s5225_s13 + $0x130] sm:$0xff] }
0x12d9   :  { %v2453_v20 = vsel %vm4508_vm8, %v2448_v17, 0.0  ;;  %v2441_v44 = vsel %vm4533_vm10, %v2436_v10, 0.0  ;;  %3799 = vmatpush1.bf16.msra.mxu1 %v3798_v0  ;;  %v3804_v57 = vpack.c.bf16 %v3175_v46, %v3174_v52  ;;  %v3807_v54 = vpack.c.bf16 %v3177_v58, %v3176_v2  ;;  %v3183_v17 = vld [vmem:[%s5225_s13 + $0x138] sm:$0xff] }
0x12da   :  { %2459 = vrot.lane.b32.xlu1 %v2451_v19, %s5260_s10  ;;  %2463 = vrot.lane.b32.xlu0 %v2453_v20, %s5260_s10  ;;  %v3816_v10 = vpack.c.bf16 %v3183_v17, %v3182_v11  ;;  %v3185_v19 = vld [vmem:[%s5225_s13 + $0x148] sm:$0xff] }
0x12db   :  { %3800 = vmatprep.subr.bf16.mxu1 %v4044_v49 }
0x12de   :  { %2479 = vrot.lane.b32.xlu0 %v2429_v5, %s4041_s24  ;;  %2465 = vrot.lane.b32.xlu1 %v2447_v21, %s5260_s10  ;;  %v3810_v5 = vpack.c.bf16 %v3179_v43, %v3178_v4  ;;  %v3186_v21 = vld [vmem:[%s5225_s13 + $0x150] sm:$0xff] }
0x12e2   :  { %2481 = vrot.lane.b32.xlu1 %v2430_v59, %s4041_s24  ;;  %v3172_v59 = vld [vmem:[%s5225_s13 + $0xe0] sm:$0xff] }
0x12e3   :  { %v3801_v26 = vpack.c.bf16 %v3173_v41, %v3172_v59 }
0x12e5   :  { %3802 = vmatpush1.bf16.msra.mxu1 %v3801_v26 }
0x12e6   :  { %3803 = vmatprep.subr.bf16.mxu1 %v4044_v49 }
0x12e9   :  { %3805 = vmatpush1.bf16.msra.mxu1 %v3804_v57 }
0x12ea   :  { %3806 = vmatprep.subr.bf16.mxu1 %v4044_v49 }
0x12ed   :  { %3808 = vmatpush1.bf16.msra.mxu1 %v3807_v54 }
0x12ee   :  { %3809 = vmatprep.subr.bf16.mxu1 %v4044_v49 }
0x12f1   :  { %3811 = vmatpush1.bf16.msra.mxu1 %v3810_v5 }
0x12f2   :  { %3812 = vmatprep.subr.bf16.mxu1 %v4044_v49 }
0x1344   :  { %v2478_v23 = vpop.permute.xlu1 %2477 }
0x1347   :  { %v2462_v9 = vpop.permute.xlu0 %2461 }
0x1348   :  { %v2476_v29 = vpop.permute.xlu1 %2475  ;;  %v2488_v13 = vsel %vm263_vm2, %v2437_v48, %v2462_v9  ;;  %v3180_v48 = vld [vmem:[%s5225_s13 + $0x120] sm:$0xff] }
0x1349   :  { %v2492_v61 = vsel %vm1187_vm11, %v2488_v13, %v2478_v23  ;;  %v3813_v8 = vpack.c.bf16 %v3181_v7, %v3180_v48  ;;  %v3187_v23 = vld [vmem:[%s5225_s13 + $0x158] sm:$0xff]  ;;  %v3189_v13 = vld [vmem:[%s5225_s13 + $0x168] sm:$0xff] }
0x134a   :  { %v3822_v9 = vpack.c.bf16 %v3187_v23, %v3186_v21 }
0x134b   :  { %3814 = vmatpush1.bf16.msra.mxu1 %v3813_v8 }
0x134c   :  { %v2460_v51 = vpop.permute.xlu1 %2459  ;;  %v2464_v37 = vpop.permute.xlu0 %2463  ;;  %3815 = vmatprep.subr.bf16.mxu1 %v4044_v49 }
0x134d   :  { %v2487_v40 = vsel %vm263_vm2, %v2439_v30, %v2460_v51  ;;  %v2489_v32 = vsel %vm263_vm2, %v2441_v44, %v2464_v37  ;;  %v3190_v30 = vld [vmem:[%s5225_s13 + $0x170] sm:$0xff]  ;;  %v3191_v37 = vld [vmem:[%s5225_s13 + $0x178] sm:$0xff] }
0x134e   :  { %v2491_v56 = vsel %vm1187_vm11, %v2487_v40, %v2476_v29  ;;  %v3188_v29 = vld [vmem:[%s5225_s13 + $0x160] sm:$0xff] }
0x134f   :  { %3578 = vmatprep.mubr.msk.f32.mxu0 %vm1211_vm12, %v2491_v56  ;;  %3817 = vmatpush1.bf16.msra.mxu1 %v3816_v10  ;;  %v3825_v51 = vpack.c.bf16 %v3189_v13, %v3188_v29  ;;  %v3163_v40 = vld [vmem:[%s5226_s12 + $0x1] ss:$0 sm:$0xff]  ;;  %v3828_v56 = vpack.c.bf16 %v3191_v37, %v3190_v30 }
0x1350   :  { %v2466_v53 = vpop.permute.xlu1 %2465  ;;  %3579 = vmatmul.mubr.msk.f32.vlgmr.msra.gmra.mrb[32].mxu0 %vm1211_vm12, %v2492_v61  ;;  %v2480_v36 = vpop.permute.xlu0 %2479  ;;  %3818 = vmatprep.subr.bf16.mxu1 %v4044_v49  ;;  %v3193_v13 = vld [vmem:[%s5227_s14 + $0x1] ss:$0 sm:$0xff] }
0x1351   :  { %v2493_v35 = vsel %vm1187_vm11, %v2489_v32, %v2480_v36  ;;  %v2490_v15 = vsel %vm263_vm2, %v2435_v62, %v2466_v53  ;;  %v3184_v62 = vld [vmem:[%s5225_s13 + $0x140] sm:$0xff] }
0x1352   :  { %3581 = vmatprep.mubr.msk.f32.mxu0 %vm1211_vm12, %v2493_v35  ;;  %v3819_v20 = vpack.c.bf16 %v3185_v19, %v3184_v62 }
0x1354   :  { %v2482_v55 = vpop.permute.xlu1 %2481  ;;  %3820 = vmatpush1.bf16.msra.mxu1 %v3819_v20 }
0x1355   :  { %v2494_v50 = vsel %vm1187_vm11, %v2490_v15, %v2482_v55  ;;  %3821 = vmatprep.subr.bf16.mxu1 %v4044_v49 }
0x1356   :  { %3582 = vmatmul.mubr.msk.f32.gmra.mrb[34].mxu0 %vm1211_vm12, %v2494_v50 }
0x1358   :  { %3823 = vmatpush1.bf16.msra.mxu1 %v3822_v9 }
0x1359   :  { %3824 = vmatprep.subr.bf16.mxu1 %v4044_v49 }
0x135c   :  { %3826 = vmatpush1.bf16.msra.mxu1 %v3825_v51 }
0x135d   :  { %3827 = vmatprep.subr.bf16.mxu1 %v4044_v49 }
0x1360   :  { %3829 = vmatpush1.bf16.msra.mxu1 %v3828_v56 }
0x1423   :  { %v3580_v61 = vpop.f32.mrb[32].mxu0 }
0x1424   :  { %v2600_v44 = vadd.f32 %v3580_v61, %v3163_v40  ;;  %v2594_v32 = vpop.f32.mrb[33].mxu0 }
0x1425   :  { %v2595_v53 = vadd.f32 %v3163_v40, %v2594_v32 }
0x1426   :  { %v2614_v36 = vmax.f32 %v2600_v44, 0.0 }
0x1427   :  { %v2613_v35 = vmax.f32 %v2595_v53, 0.0 }
0x1428   :  { %v2618_v15 = vmul.f32 %v2614_v36, %v4196_v22 }
0x1429   :  { %v2617_v55 = vmul.f32 %v2613_v35, %v4189_v16  ;;  %v3583_v50 = vpop.f32.mrb[34].mxu0 }
0x142a   :  { %v2634_v38 = vrot.slane %v2618_v15, 7  ;;  %v2610_v60 = vadd.f32 %v3583_v50, %v3163_v40  ;;  %v2604_v45 = vpop.f32.mrb[35].mxu0  ;;  %v2622_v48 = vrot.slane %v2618_v15, 6 }
0x142b   :  { %v2633_v28 = vrot.slane %v2617_v55, 7  ;;  %v2605_v39 = vadd.f32 %v3163_v40, %v2604_v45  ;;  %3194 = vmatprep.mubr.msk.f32.mxu1 %vm1187_vm11, %v2617_v55  ;;  %v2621_v5 = vrot.slane %v2617_v55, 6 }
0x142c   :  { %v2616_v0 = vmax.f32 %v2610_v60, 0.0 }
0x142d   :  { %v2615_v49 = vmax.f32 %v2605_v39, 0.0  ;;  %v2639_v59 = vsel %vm1134_vm6, %v2633_v28, %v2634_v38  ;;  %v2627_v14 = vsel %vm1113_vm5, %v2621_v5, %v2622_v48 }
0x142e   :  { %v2620_v41 = vmul.f32 %v2616_v0, %v4204_v27  ;;  %2651 = vrot.lane.b32.xlu1 %v2639_v59, %s4041_s24 }
0x142f   :  { %v2619_v26 = vmul.f32 %v2615_v49, %v4194_v18 }
0x1430   :  { %v2636_v52 = vrot.slane %v2620_v41, 7  ;;  %v2624_v43 = vrot.slane %v2620_v41, 6 }
0x1431   :  { %v2635_v46 = vrot.slane %v2619_v26, 7  ;;  %v2623_v11 = vrot.slane %v2619_v26, 6 }
0x1432   :  { %v2640_v57 = vsel %vm1134_vm6, %v2636_v52, %v2633_v28  ;;  %v2628_v12 = vsel %vm1113_vm5, %v2624_v43, %v2621_v5 }
0x1433   :  { %v2641_v2 = vsel %vm4501_vm7, %v2640_v57, 0.0  ;;  %v2637_v58 = vsel %vm1134_vm6, %v2635_v46, %v2636_v52  ;;  %v2638_v54 = vsel %vm1134_vm6, %v2634_v38, %v2635_v46  ;;  %v2629_v8 = vsel %vm4529_vm9, %v2628_v12, 0.0 }
0x1434   :  { %2649 = vrot.lane.b32.xlu0 %v2641_v2, %s4041_s24  ;;  %2655 = vrot.lane.b32.xlu1 %v2637_v58, %s4041_s24  ;;  %v2643_v4 = vsel %vm4508_vm8, %v2638_v54, 0.0  ;;  %v2626_v19 = vsel %vm1113_vm5, %v2622_v48, %v2623_v11  ;;  %v2625_v9 = vsel %vm1113_vm5, %v2623_v11, %v2624_v43 }
0x1435   :  { %v2631_v42 = vsel %vm4533_vm10, %v2626_v19, 0.0  ;;  %v2890_v19 = vld [vmem:[%s5230_s17 + $0x18] sm:$0xff] }
0x1438   :  { %2653 = vrot.lane.b32.xlu0 %v2643_v4, %s4041_s24 }
0x14a0   :  { %v2652_v10 = vpop.permute.xlu1 %2651 }
0x14a1   :  { %v2662_v62 = vsel %vm1187_vm11, %v2627_v14, %v2652_v10  ;;  %v2888_v10 = vld [vmem:[%s5230_s17 + $0x8] sm:$0xff] }
0x14a6   :  { %v2650_v7 = vpop.permute.xlu0 %2649  ;;  %v2656_v23 = vpop.permute.xlu1 %2655 }
0x14a7   :  { %v2661_v17 = vsel %vm1187_vm11, %v2629_v8, %v2650_v7  ;;  %v2664_v29 = vsel %vm1187_vm11, %v2625_v9, %v2656_v23 }
0x14a8   :  { %2775 = vmatmul.mubr.f32.vlgmr.msra.gmra.mrb[32].mxu1 %v2661_v17  ;;  %v2887_v17 = vld [vmem:[%s5230_s17] sm:$0xff] }
0x14a9   :  { %3195 = vmatprep.mubr.msk.f32.mxu1 %vm1187_vm11, %v2618_v15  ;;  %v3830_v14 = vpack.c.bf16 %v2888_v10, %v2887_v17 }
0x14aa   :  { %v2654_v20 = vpop.permute.xlu0 %2653 }
0x14ab   :  { %v2663_v21 = vsel %vm1187_vm11, %v2631_v42, %v2654_v20  ;;  %3831 = vmatprep.subr.bf16.mxu0 %v3830_v14 }
0x14ac   :  { %2780 = vmatmul.mubr.f32.gmra.mrb[34].mxu1 %v2662_v62  ;;  %3833 = vmatpush3.bf16.msra.mxu0 %v3830_v14  ;;  %v2889_v62 = vld [vmem:[%s5230_s17 + $0x10] sm:$0xff] }
0x14ad   :  { %3196 = vmatprep.mubr.msk.f32.mxu1 %vm1187_vm11, %v2619_v26  ;;  %v3834_v20 = vpack.c.bf16 %v2890_v19, %v2889_v62 }
0x14af   :  { %3835 = vmatprep.subr.bf16.mxu0 %v3834_v20 }
0x14b0   :  { %2785 = vmatmul.mubr.f32.gmra.mrb[36].mxu1 %v2663_v21  ;;  %3837 = vmatpush3.bf16.msra.mxu0 %v3834_v20  ;;  %v67_v20 = vld [vmem:[%s5232_s1 + $0x8] sm:$0xff] }
0x14b1   :  { %3197 = vmatprep.mubr.msk.f32.mxu1 %vm1187_vm11, %v2620_v41 }
0x14b4   :  { %2790 = vmatmul.mubr.f32.gmra.mrb[38].mxu1 %v2664_v29 }
0x157b   :  { %v2776_v51 = vpop.f32.mrb[32].mxu1 }
0x157c   :  { %v2777_v30 = vadd.f32 %v3193_v13, %v2776_v51  ;;  %v2778_v31 = vpop.f32.mrb[33].mxu1 }
0x157e   :  { %v2795_v37 = vmul.f32 %v2777_v30, %v4189_v16 }
0x157f   :  { %v2781_v40 = vpop.f32.mrb[34].mxu1 }
0x1580   :  { %v2782_v56 = vadd.f32 %v3193_v13, %v2781_v40  ;;  %v2783_v61 = vpop.f32.mrb[35].mxu1  ;;  %v2799_v44 = vadd.f32 %v2795_v37, %v4935_v47 }
0x1581   :  { %v3200_v61 = vld [vmem:[%s5228_s15 + $0x1] ss:$0 sm:$0xff] }
0x1582   :  { %v2796_v6 = vmul.f32 %v2782_v56, %v4196_v22  ;;  %v2807_v32 = vsel %vm263_vm2, %v2799_v44, 0.0 }
0x1583   :  { %2808 = vadd.xlane.f32.xlu0 %v2807_v32  ;;  %v2786_v53 = vpop.f32.mrb[36].mxu1  ;;  %v3201_v32 = vld [vmem:[%s5229_s16 + $0x1] ss:$0 sm:$0xff] }
0x1584   :  { %v2787_v36 = vadd.f32 %v3193_v13, %v2786_v53  ;;  %v2788_v35 = vpop.f32.mrb[37].mxu1  ;;  %v2800_v15 = vadd.f32 %v2796_v6, %v4942_v1 }
0x1586   :  { %v2797_v55 = vmul.f32 %v2787_v36, %v4194_v18  ;;  %v2810_v50 = vsel %vm263_vm2, %v2800_v15, 0.0 }
0x1587   :  { %2811 = vadd.xlane.f32.xlu1 %v2810_v50  ;;  %v2791_v38 = vpop.f32.mrb[38].mxu1 }
0x1588   :  { %v2792_v60 = vadd.f32 %v3193_v13, %v2791_v38  ;;  %v2793_v45 = vpop.f32.mrb[39].mxu1  ;;  %v2801_v47 = vadd.f32 %v2797_v55, %v4949_v3 }
0x158a   :  { %v2798_v28 = vmul.f32 %v2792_v60, %v4204_v27  ;;  %v2813_v39 = vsel %vm263_vm2, %v2801_v47, 0.0 }
0x158b   :  { %2814 = vadd.xlane.f32.xlu0 %v2813_v39 }
0x158c   :  { %v2802_v0 = vadd.f32 %v2798_v28, %v4939_v63 }
0x158e   :  { %v2816_v49 = vsel %vm263_vm2, %v2802_v0, 0.0 }
0x158f   :  { %2817 = vadd.xlane.f32.xlu0 %v2816_v49 }
0x1610   :  { %v2809_v1 = vpop.xlane.xlu0 %2808 }
0x1611   :  { %v2819_v59 = vmul.f32 0.03125, %v2809_v1 }
0x1613   :  { %v2823_v41 = vsub.f32 %v2799_v44, %v2819_v59 }
0x1614   :  { %v2812_v26 = vpop.xlane.xlu1 %2811 }
0x1615   :  { %v2820_v52 = vmul.f32 0.03125, %v2812_v26  ;;  %v2827_v46 = vmul.f32 %v2823_v41, %v2823_v41 }
0x1617   :  { %v2824_v57 = vsub.f32 %v2800_v15, %v2820_v52  ;;  %v2831_v2 = vsel %vm263_vm2, %v2827_v46, 0.0 }
0x1618   :  { %2832 = vadd.xlane.f32.xlu1 %v2831_v2  ;;  %v2815_v3 = vpop.xlane.xlu0 %2814 }
0x1619   :  { %v2821_v58 = vmul.f32 0.03125, %v2815_v3  ;;  %v2828_v54 = vmul.f32 %v2824_v57, %v2824_v57 }
0x161b   :  { %v2825_v4 = vsub.f32 %v2801_v47, %v2821_v58  ;;  %v2834_v43 = vsel %vm263_vm2, %v2828_v54, 0.0 }
0x161c   :  { %2835 = vadd.xlane.f32.xlu0 %v2834_v43  ;;  %v2818_v63 = vpop.xlane.xlu0 %2817 }
0x161d   :  { %v2822_v5 = vmul.f32 0.03125, %v2818_v63  ;;  %v2829_v12 = vmul.f32 %v2825_v4, %v2825_v4 }
0x161f   :  { %v2826_v48 = vsub.f32 %v2802_v0, %v2822_v5  ;;  %v2837_v7 = vsel %vm263_vm2, %v2829_v12, 0.0 }
0x1620   :  { %2838 = vadd.xlane.f32.xlu1 %v2837_v7 }
0x1621   :  { %v2830_v8 = vmul.f32 %v2826_v48, %v2826_v48 }
0x1623   :  { %v2840_v11 = vsel %vm263_vm2, %v2830_v8, 0.0 }
0x1624   :  { %2841 = vadd.xlane.f32.xlu0 %v2840_v11 }
0x16a5   :  { %v2833_v42 = vpop.xlane.xlu1 %2832 }
0x16a6   :  { %v2843_v21 = vmul.f32 0.03125, %v2833_v42  ;;  %v66_v42 = vld [vmem:[%s5232_s1] sm:$0xff] }
0x16a8   :  { %v2847_v23 = vadd.f32 1e-05, %v2843_v21 }
0x16a9   :  { %v2836_v9 = vpop.xlane.xlu0 %2835 }
0x16aa   :  { %4019 = vrsqrt.f32 %v2847_v23  ;;  %v2844_v29 = vmul.f32 0.03125, %v2836_v9 }
0x16ac   :  { %v2848_v13 = vadd.f32 1e-05, %v2844_v29 }
0x16ad   :  { %v2839_v51 = vpop.xlane.xlu1 %2838 }
0x16ae   :  { %4021 = vrsqrt.f32 %v2848_v13  ;;  %v2845_v30 = vmul.f32 0.03125, %v2839_v51 }
0x16b0   :  { %v2849_v31 = vadd.f32 1e-05, %v2845_v30 }
0x16b1   :  { %v2842_v37 = vpop.xlane.xlu0 %2841 }
0x16b2   :  { %4023 = vrsqrt.f32 %v2849_v31  ;;  %v2846_v40 = vmul.f32 0.03125, %v2842_v37 }
0x16b4   :  { %v4020_v56 = vpop.eup %4019  ;;  %v2850_v44 = vadd.f32 1e-05, %v2846_v40  ;;  %v68_v40 = vld [vmem:[%s5232_s1 + $0x10] sm:$0xff] }
0x16b5   :  { %v2855_v6 = vmul.f32 %v4020_v56, %v2823_v41 }
0x16b6   :  { %4025 = vrsqrt.f32 %v2850_v44 }
0x16b7   :  { %v2865_v53 = vmul.f32 %v3200_v61, %v2855_v6 }
0x16b8   :  { %v4022_v36 = vpop.eup %4021 }
0x16b9   :  { %v2856_v35 = vmul.f32 %v4022_v36, %v2824_v57  ;;  %v2875_v15 = vadd.f32 %v3201_v32, %v2865_v53 }
0x16bb   :  { %v2866_v55 = vmul.f32 %v3200_v61, %v2856_v35  ;;  %v2879_v50 = vmul.f32 %v2875_v15, %v4189_v16 }
0x16bc   :  { %v4024_v38 = vpop.eup %4023 }
0x16bd   :  { %v2876_v60 = vadd.f32 %v3201_v32, %v2866_v55  ;;  %v2857_v45 = vmul.f32 %v4024_v38, %v2825_v4  ;;  %v2883_v47 = vadd.f32 %v2879_v50, %v4202_v25 }
0x16bf   :  { %v2880_v28 = vmul.f32 %v2876_v60, %v4196_v22  ;;  %3592 = vmatprep.mubr.msk.f32.mxu0 %vm263_vm2, %v2883_v47  ;;  %v2867_v39 = vmul.f32 %v3200_v61, %v2857_v45 }
0x16c0   :  { %v4026_v0 = vpop.eup %4025 }
0x16c1   :  { %v2858_v49 = vmul.f32 %v4026_v0, %v2826_v48  ;;  %v2884_v1 = vadd.f32 %v2880_v28, %v4199_v24  ;;  %v2877_v59 = vadd.f32 %v3201_v32, %v2867_v39  ;;  %v3202_v24 = vld [vmem:[%s5231_s18] ss:$0 sm:$0xff]  ;;  %s4045_s18 = smov 126  }
0x16c3   :  { %3593 = vmatmul.mubr.msk.f32.vlgmr.msra.gmra.mrb[36].mxu0 %vm263_vm2, %v2884_v1  ;;  %v2881_v41 = vmul.f32 %v2877_v59, %v4194_v18  ;;  %v2868_v26 = vmul.f32 %v3200_v61, %v2858_v49  ;;  %v69_v61 = vld [vmem:[%s5232_s1 + $0x18] sm:$0xff] }
0x16c5   :  { %v2885_v52 = vadd.f32 %v2881_v41, %v4218_v34  ;;  %v2878_v46 = vadd.f32 %v3201_v32, %v2868_v26 }
0x16c7   :  { %3595 = vmatprep.mubr.msk.f32.mxu0 %vm263_vm2, %v2885_v52  ;;  %v2882_v25 = vmul.f32 %v2878_v46, %v4204_v27 }
0x16c9   :  { %v2886_v57 = vadd.f32 %v2882_v25, %v4215_v33 }
0x16cb   :  { %3596 = vmatmul.mubr.msk.f32.gmra.mrb[38].mxu0 %vm263_vm2, %v2886_v57  ;;  %vm3039_vm2 = vcmask 31744  }
0x1796   :  { %v3594_v2 = vpop.f32.mrb[36].mxu0 }
0x1797   :  { %v2982_v3 = vadd.f32 %v3594_v2, %v3202_v24  ;;  %v2976_v58 = vpop.f32.mrb[37].mxu0 }
0x1798   :  { %v2977_v54 = vadd.f32 %v3202_v24, %v2976_v58 }
0x1799   :  { %v2996_v4 = vmul.f32 %v2982_v3, %v4196_v22 }
0x179a   :  { %v2995_v34 = vmul.f32 %v2977_v54, %v4189_v16 }
0x179b   :  { %v3001_v43 = vmul.f32 1.442695, %v2996_v4 }
0x179c   :  { %v2999_v63 = vmul.f32 1.442695, %v2995_v34 }
0x179d   :  { %4027 = vpow2.f32 %v3001_v43 }
0x179e   :  { %4029 = vpow2.f32 %v2999_v63  ;;  %v3597_v5 = vpop.f32.mrb[38].mxu0 }
0x179f   :  { %v2992_v33 = vadd.f32 %v3597_v5, %v3202_v24  ;;  %v2986_v12 = vpop.f32.mrb[39].mxu0 }
0x17a0   :  { %v2987_v48 = vadd.f32 %v3202_v24, %v2986_v12 }
0x17a1   :  { %v2998_v7 = vmul.f32 %v2992_v33, %v4204_v27 }
0x17a2   :  { %v2997_v8 = vmul.f32 %v2987_v48, %v4194_v18 }
0x17a3   :  { %v3005_v17 = vmul.f32 1.442695, %v2998_v7 }
0x17a4   :  { %v3003_v11 = vmul.f32 1.442695, %v2997_v8 }
0x17a6   :  { %4031 = vpow2.f32 %v3003_v11 }
0x17a7   :  { %v4028_v10 = vpop.eup %4027  ;;  %4033 = vpow2.f32 %v3005_v17 }
0x17a8   :  { %v4030_v14 = vpop.eup %4029  ;;  %3013 = vrot.lane.b32.xlu0 %v4028_v10, %s4045_s18 }
0x17a9   :  { %3011 = vrot.lane.b32.xlu1 %v4030_v14, %s4045_s18 }
0x17b0   :  { %v4032_v62 = vpop.eup %4031 }
0x17b1   :  { %3015 = vrot.lane.b32.xlu1 %v4032_v62, %s4045_s18  ;;  %v4034_v19 = vpop.eup %4033 }
0x17b5   :  { %3017 = vrot.lane.b32.xlu1 %v4034_v19, %s4045_s18 }
0x181a   :  { %v3014_v21 = vpop.permute.xlu0 %3013 }
0x181b   :  { %v3024_v23 = vmul.f32 %v3014_v21, %v67_v20  ;;  %v3012_v9 = vpop.permute.xlu1 %3011 }
0x181c   :  { %v3023_v29 = vmul.f32 %v3012_v9, %v66_v42 }
0x181d   :  { %v3028_v13 = vmul.f32 %v3024_v23, %v4196_v22 }
0x181e   :  { %v3027_v51 = vmul.f32 %v3023_v29, %v4189_v16 }
0x181f   :  { %v3032_v30 = vadd.f32 %v3028_v13, %v2996_v4 }
0x1820   :  { %v3031_v31 = vadd.f32 %v3027_v51, %v2995_v34 }
0x1821   :  { %v3036_v37 = vsel %vm122_vm1, %v3032_v30, %v2996_v4 }
0x1822   :  { %3041 = vst.msk [vmem:[%s5233_s19 + $0x8] sm:$0xff] %vm3039_vm2, %v3036_v37  ;;  %v3035_v56 = vsel %vm122_vm1, %v3031_v31, %v2995_v34 }
0x1823   :  { %3040 = vst.msk [vmem:[%s5233_s19] sm:$0xff] %vm3039_vm2, %v3035_v56  ;;  %v3016_v16 = vpop.permute.xlu1 %3015 }
0x1824   :  { %v3025_v22 = vmul.f32 %v3016_v16, %v68_v40 }
0x1826   :  { %v3029_v44 = vmul.f32 %v3025_v22, %v4194_v18 }
0x1827   :  { %v3018_v6 = vpop.permute.xlu1 %3017 }
0x1828   :  { %v3033_v32 = vadd.f32 %v3029_v44, %v2997_v8  ;;  %v3026_v53 = vmul.f32 %v3018_v6, %v69_v61 }
0x182a   :  { %v3037_v36 = vsel %vm122_vm1, %v3033_v32, %v2997_v8  ;;  %v3030_v35 = vmul.f32 %v3026_v53, %v4204_v27 }
0x182b   :  { %3042 = vst.msk [vmem:[%s5233_s19 + $0x10] sm:$0xff] %vm3039_vm2, %v3037_v36 }
0x182c   :  { %v3034_v15 = vadd.f32 %v3030_v35, %v2998_v7 }
0x182e   :  { %v3038_v55 = vsel %vm122_vm1, %v3034_v15, %v2998_v7 }
0x182f   :  { %3043 = vst.msk [vmem:[%s5233_s19 + $0x18] sm:$0xff] %vm3039_vm2, %v3038_v55 }

</bundles_post_ra>
